<compile_context>
chip_gen: v6e
topology: v6e:2x2x1
jax: 0.10.0
libtpu: 0.0.40
codegen_flags: <defaults>
</compile_context>

<pallas_src>
import numpy as np
import jax
import jax.numpy as jnp
from jax.experimental import pallas as pl
from jax.experimental.pallas import tpu as pltpu

_LANES = 128
_SUBLANES = 8


# ----------------------------------------------------------------------------
# Host-side packing of the conv weights into one lane-padded slab
# ----------------------------------------------------------------------------
def _pack_weights(layers, row_start):
    """Pack [(w(Cout,Cin,K), b(Cout,), relu), ...] into 8-row-aligned blocks
    of a single (rows, 128) f32 slab.

    Per-layer column layout: im2col columns in (k outer, c inner) order,
    followed by the bias column.  Returns (blocks, metas, next_row)."""
    blocks, metas = [], []
    row = row_start
    for (w, b, relu) in layers:
        cout, cin, K = w.shape
        assert K % 2 == 1, "odd kernel size required for 'same' padding"
        ncols = cin * K + 1
        assert ncols <= _LANES, "augmented weight wider than one lane tile"
        w_col = jnp.transpose(w, (0, 2, 1)).reshape(cout, cin * K)   # (k,c) order
        w_aug = jnp.concatenate([w_col, b[:, None]], axis=1)         # (cout, ncols)
        prows = -(-cout // _SUBLANES) * _SUBLANES
        blk = jnp.zeros((prows, _LANES), jnp.float32)
        blk = blk.at[:cout, :ncols].set(w_aug)
        blocks.append(blk)
        metas.append(dict(row=row, cout=int(cout), cin=int(cin), K=int(K),
                          relu=bool(relu)))
        row += prows
    return blocks, metas, row


# ----------------------------------------------------------------------------
# Fused kernel
# ----------------------------------------------------------------------------
def _make_kernel(metas_b, metas_a, metas_lf, N, L):
    W = N * L
    all_metas = metas_b + metas_a + metas_lf
    offsets = sorted({k - (m["K"] - 1) // 2
                      for m in all_metas for k in range(m["K"])} - {0})

    def kernel(x_ref, w_ref, o_ref):
        x_all = x_ref[...]                                   # (2, W) f32
        w_all = w_ref[...]                                   # (rows, 128) f32

        # Hoisted constants: bias partner row and per-offset sample-boundary
        # masks (built once, reused by every layer).
        ones_row = jnp.ones((1, W), jnp.float32)
        j = jax.lax.broadcasted_iota(jnp.int32, (1, W), 1)
        pos = j                                              # j mod L without
        for n in range(1, N):                                # vector remainder
            pos = pos - jnp.where(j >= n * L, L, 0)
        masks = {d: (pos + d >= 0) & (pos + d < L) for d in offsets}

        def conv(x, m):
            cin, cout, K = m["cin"], m["cout"], m["K"]
            pad = (K - 1) // 2
            ncols = cin * K
            w_blk = w_all[m["row"]:m["row"] + cout, :]       # (cout, 128)

            # K shifted views of x: pltpu.roll keeps every operand 128-lane
            # aligned (XLU slot); masks zero out cross-sample leakage.
            views = []
            for k in range(K):
                d = k - pad
                if d == 0:
                    views.append(x)
                else:
                    v = pltpu.roll(x, shift=(-d) % W, axis=1)
                    views.append(jnp.where(masks[d], v, 0.0))

            if cout <= 2 or ncols + 1 <= 16:
                # Degenerate layer: MXU push/pop latency-bound, so run it as
                # an unrolled VPU multiply-add chain over the im2col columns.
                y = None
                col = 0
                for k in range(K):
                    vk = views[k]
                    for c in range(cin):
                        t = w_blk[:, col:col + 1] * vk[c:c + 1, :]
                        y = t if y is None else y + t
                        col += 1
                y = y + w_blk[:, ncols:ncols + 1]            # bias broadcast
            else:
                # One im2col MXU dot; bias folded in via the ones row.
                x_aug = jnp.concatenate(views + [ones_row], axis=0)
                y = jnp.dot(w_blk[:, :ncols + 1], x_aug,
                            preferred_element_type=jnp.float32)
            if m["relu"]:
                y = jnp.maximum(y, 0.0)
            return y

        s_b = x_all[0:1, :]                                  # (1, W)
        for m in metas_b:
            s_b = conv(s_b, m)
        s_a = x_all[1:2, :]                                  # (1, W)
        for m in metas_a:
            s_a = conv(s_a, m)
        s = jnp.concatenate([s_b, s_a], axis=0)              # (2, W) late fusion
        for m in metas_lf:
            s = conv(s, m)
        o_ref[...] = s                                       # (1, W)

    return kernel


def fcnlf_fused(params, x_bcm, x_acm):
    """Fused fcnlf forward: one pallas_call, no grid, two packed inputs."""
    N, cin_b, L = x_bcm.shape
    assert cin_b == 1 and x_acm.shape == (N, 1, L)
    W = N * L

    blk_b, metas_b, row = _pack_weights(params["fcn_b"], 0)
    blk_a, metas_a, row = _pack_weights(params["fcn_a"], row)
    blk_lf, metas_lf, row = _pack_weights(params["fcn_lf"], row)
    w_slab = jnp.concatenate(blk_b + blk_a + blk_lf, axis=0)   # (rows, 128)

    # Lane-concatenate the batch: sample n occupies lanes [n*L, (n+1)*L).
    x_in = jnp.concatenate([x_bcm.reshape(1, W), x_acm.reshape(1, W)], axis=0)

    kernel = _make_kernel(metas_b, metas_a, metas_lf, N, L)

    out = pl.pallas_call(
        kernel,
        out_shape=jax.ShapeDtypeStruct((1, W), jnp.float32),
        in_specs=[pl.BlockSpec(x_in.shape, lambda: (0, 0)),
                  pl.BlockSpec(w_slab.shape, lambda: (0, 0))],
        out_specs=pl.BlockSpec((1, W), lambda: (0, 0)),
    )(x_in, w_slab)
    return out.reshape(N, 1, L)


# ----------------------------------------------------------------------------
# Pure-JAX reference (correctness check)
# ----------------------------------------------------------------------------
def conv1d_ref(x, w, b, relu):
    pad = (w.shape[2] - 1) // 2
    y = jax.lax.conv_general_dilated(
        x, w, window_strides=(1,), padding=[(pad, pad)],
        dimension_numbers=("NCH", "OIH", "NCH"))
    y = y + b[None, :, None]
    return jnp.maximum(y, 0.0) if relu else y


def fcnlf_forward_ref(params, x_bcm, x_acm):
    s_b = x_bcm
    for (w, b, relu) in params["fcn_b"]:
        s_b = conv1d_ref(s_b, w, b, relu)
    s_a = x_acm
    for (w, b, relu) in params["fcn_a"]:
        s_a = conv1d_ref(s_a, w, b, relu)
    s = jnp.concatenate([s_b, s_a], axis=1)
    for (w, b, relu) in params["fcn_lf"]:
        s = conv1d_ref(s, w, b, relu)
    return s


# ----------------------------------------------------------------------------
# Parameter init (mirrors nn.Conv1d default init)
# ----------------------------------------------------------------------------
def _init_conv(key, cin, cout, k):
    kw, kb = jax.random.split(key)
    bound = 1.0 / np.sqrt(cin * k)
    w = jax.random.uniform(kw, (cout, cin, k), jnp.float32, -bound, bound)
    b = jax.random.uniform(kb, (cout,), jnp.float32, -bound, bound)
    return w, b


def init_fcnlf_params(key, a_depth, a_channels, a_kernel_size,
                      b_channels, b_kernel_size, lf_channels, lf_kernel_size):
    params = {"fcn_a": [], "fcn_b": [], "fcn_lf": []}

    # fcn_a: a_depth x (conv + ReLU), then a final conv without ReLU
    for i in range(a_depth):
        key, sub = jax.random.split(key)
        cin = 1 if i == 0 else a_channels
        w, b = _init_conv(sub, cin, a_channels, a_kernel_size)
        params["fcn_a"].append((w, b, True))
    key, sub = jax.random.split(key)
    w, b = _init_conv(sub, a_channels, 1, a_kernel_size)
    params["fcn_a"].append((w, b, False))

    # fcn_b: conv + ReLU per stage
    channel = 1
    for i in range(len(b_channels)):
        key, sub = jax.random.split(key)
        w, b = _init_conv(sub, channel, b_channels[i], b_kernel_size[i])
        params["fcn_b"].append((w, b, True))
        channel = b_channels[i]

    # fcn_lf: conv(2->lf) + ReLU, conv(lf->1) no ReLU
    key, sub = jax.random.split(key)
    w, b = _init_conv(sub, 2, lf_channels, lf_kernel_size)
    params["fcn_lf"].append((w, b, True))
    key, sub = jax.random.split(key)
    w, b = _init_conv(sub, lf_channels, 1, lf_kernel_size)
    params["fcn_lf"].append((w, b, False))

    return params


# ----------------------------------------------------------------------------
if __name__ == "__main__":
    # Small, module-consistent configuration (all kernel sizes odd -> 'same').
    N, L = 2, 128
    cfg = dict(a_depth=2, a_channels=8, a_kernel_size=5,
               b_channels=[1, 3, 5, 1], b_kernel_size=[7, 1, 5, 9],
               lf_channels=8, lf_kernel_size=5)

    key = jax.random.PRNGKey(0)
    key, kp, kx1, kx2 = jax.random.split(key, 4)
    params = init_fcnlf_params(kp, **cfg)
    x_bcm = jax.random.normal(kx1, (N, 1, L), jnp.float32)
    x_acm = jax.random.normal(kx2, (N, 1, L), jnp.float32)

    out = fcnlf_fused(params, x_bcm, x_acm)
    out = jax.block_until_ready(out)
    assert out.shape == (N, 1, L)

    ref = fcnlf_forward_ref(params, x_bcm, x_acm)
    ref = jax.block_until_ready(ref)
    np.testing.assert_allclose(np.asarray(out), np.asarray(ref),
                               rtol=1e-4, atol=1e-4)

    print("KERNEL_OK")
</pallas_src>

<mosaic_0001>
module attributes {stable_mosaic.version = 11 : i64} {
  func.func @kernel(%arg0: memref<2x256xf32, #tpu.memory_space<vmem>>, %arg1: memref<72x128xf32, #tpu.memory_space<vmem>>, %arg2: memref<1x256xf32, #tpu.memory_space<vmem>>) attributes {dimension_semantics = [], scalar_prefetch = 0 : i64, scratch_operands = 0 : i64, tpu.core_type = #tpu.core_type<tc>} {
    %c0 = arith.constant 0 : index
    %c0_0 = arith.constant 0 : index
    %0 = vector.load %arg0[%c0, %c0_0] : memref<2x256xf32, #tpu.memory_space<vmem>>, vector<2x256xf32>
    %c0_1 = arith.constant 0 : index
    %c0_2 = arith.constant 0 : index
    %1 = vector.load %arg1[%c0_1, %c0_2] : memref<72x128xf32, #tpu.memory_space<vmem>>, vector<72x128xf32>
    %cst = arith.constant 1.000000e+00 : f32
    %2 = vector.broadcast %cst : f32 to vector<1x256xf32>
    %3 = tpu.iota {dimensions = array<i32: 1>} : vector<1x256xi32>
    %c128_i32 = arith.constant 128 : i32
    %4 = vector.broadcast %c128_i32 : i32 to vector<1x256xi32>
    %5 = arith.cmpi sge, %3, %4 : vector<1x256xi32>
    %c128_i32_3 = arith.constant 128 : i32
    %c0_i32 = arith.constant 0 : i32
    %6 = vector.broadcast %c128_i32_3 : i32 to vector<1x256xi32>
    %7 = vector.broadcast %c0_i32 : i32 to vector<1x256xi32>
    %8 = arith.select %5, %6, %7 : vector<1x256xi1>, vector<1x256xi32>
    %9 = arith.subi %3, %8 : vector<1x256xi32>
    %c-4_i32 = arith.constant -4 : i32
    %10 = vector.broadcast %c-4_i32 : i32 to vector<1x256xi32>
    %11 = arith.addi %9, %10 : vector<1x256xi32>
    %c0_i32_4 = arith.constant 0 : i32
    %12 = vector.broadcast %c0_i32_4 : i32 to vector<1x256xi32>
    %13 = arith.cmpi sge, %11, %12 : vector<1x256xi32>
    %c-4_i32_5 = arith.constant -4 : i32
    %14 = vector.broadcast %c-4_i32_5 : i32 to vector<1x256xi32>
    %15 = arith.addi %9, %14 : vector<1x256xi32>
    %c128_i32_6 = arith.constant 128 : i32
    %16 = vector.broadcast %c128_i32_6 : i32 to vector<1x256xi32>
    %17 = arith.cmpi slt, %15, %16 : vector<1x256xi32>
    %18 = arith.andi %13, %17 : vector<1x256xi1>
    %c-3_i32 = arith.constant -3 : i32
    %19 = vector.broadcast %c-3_i32 : i32 to vector<1x256xi32>
    %20 = arith.addi %9, %19 : vector<1x256xi32>
    %c0_i32_7 = arith.constant 0 : i32
    %21 = vector.broadcast %c0_i32_7 : i32 to vector<1x256xi32>
    %22 = arith.cmpi sge, %20, %21 : vector<1x256xi32>
    %c-3_i32_8 = arith.constant -3 : i32
    %23 = vector.broadcast %c-3_i32_8 : i32 to vector<1x256xi32>
    %24 = arith.addi %9, %23 : vector<1x256xi32>
    %c128_i32_9 = arith.constant 128 : i32
    %25 = vector.broadcast %c128_i32_9 : i32 to vector<1x256xi32>
    %26 = arith.cmpi slt, %24, %25 : vector<1x256xi32>
    %27 = arith.andi %22, %26 : vector<1x256xi1>
    %c-2_i32 = arith.constant -2 : i32
    %28 = vector.broadcast %c-2_i32 : i32 to vector<1x256xi32>
    %29 = arith.addi %9, %28 : vector<1x256xi32>
    %c0_i32_10 = arith.constant 0 : i32
    %30 = vector.broadcast %c0_i32_10 : i32 to vector<1x256xi32>
    %31 = arith.cmpi sge, %29, %30 : vector<1x256xi32>
    %c-2_i32_11 = arith.constant -2 : i32
    %32 = vector.broadcast %c-2_i32_11 : i32 to vector<1x256xi32>
    %33 = arith.addi %9, %32 : vector<1x256xi32>
    %c128_i32_12 = arith.constant 128 : i32
    %34 = vector.broadcast %c128_i32_12 : i32 to vector<1x256xi32>
    %35 = arith.cmpi slt, %33, %34 : vector<1x256xi32>
    %36 = arith.andi %31, %35 : vector<1x256xi1>
    %c-1_i32 = arith.constant -1 : i32
    %37 = vector.broadcast %c-1_i32 : i32 to vector<1x256xi32>
    %38 = arith.addi %9, %37 : vector<1x256xi32>
    %c0_i32_13 = arith.constant 0 : i32
    %39 = vector.broadcast %c0_i32_13 : i32 to vector<1x256xi32>
    %40 = arith.cmpi sge, %38, %39 : vector<1x256xi32>
    %c-1_i32_14 = arith.constant -1 : i32
    %41 = vector.broadcast %c-1_i32_14 : i32 to vector<1x256xi32>
    %42 = arith.addi %9, %41 : vector<1x256xi32>
    %c128_i32_15 = arith.constant 128 : i32
    %43 = vector.broadcast %c128_i32_15 : i32 to vector<1x256xi32>
    %44 = arith.cmpi slt, %42, %43 : vector<1x256xi32>
    %45 = arith.andi %40, %44 : vector<1x256xi1>
    %c1_i32 = arith.constant 1 : i32
    %46 = vector.broadcast %c1_i32 : i32 to vector<1x256xi32>
    %47 = arith.addi %9, %46 : vector<1x256xi32>
    %c0_i32_16 = arith.constant 0 : i32
    %48 = vector.broadcast %c0_i32_16 : i32 to vector<1x256xi32>
    %49 = arith.cmpi sge, %47, %48 : vector<1x256xi32>
    %c1_i32_17 = arith.constant 1 : i32
    %50 = vector.broadcast %c1_i32_17 : i32 to vector<1x256xi32>
    %51 = arith.addi %9, %50 : vector<1x256xi32>
    %c128_i32_18 = arith.constant 128 : i32
    %52 = vector.broadcast %c128_i32_18 : i32 to vector<1x256xi32>
    %53 = arith.cmpi slt, %51, %52 : vector<1x256xi32>
    %54 = arith.andi %49, %53 : vector<1x256xi1>
    %c2_i32 = arith.constant 2 : i32
    %55 = vector.broadcast %c2_i32 : i32 to vector<1x256xi32>
    %56 = arith.addi %9, %55 : vector<1x256xi32>
    %c0_i32_19 = arith.constant 0 : i32
    %57 = vector.broadcast %c0_i32_19 : i32 to vector<1x256xi32>
    %58 = arith.cmpi sge, %56, %57 : vector<1x256xi32>
    %c2_i32_20 = arith.constant 2 : i32
    %59 = vector.broadcast %c2_i32_20 : i32 to vector<1x256xi32>
    %60 = arith.addi %9, %59 : vector<1x256xi32>
    %c128_i32_21 = arith.constant 128 : i32
    %61 = vector.broadcast %c128_i32_21 : i32 to vector<1x256xi32>
    %62 = arith.cmpi slt, %60, %61 : vector<1x256xi32>
    %63 = arith.andi %58, %62 : vector<1x256xi1>
    %c3_i32 = arith.constant 3 : i32
    %64 = vector.broadcast %c3_i32 : i32 to vector<1x256xi32>
    %65 = arith.addi %9, %64 : vector<1x256xi32>
    %c0_i32_22 = arith.constant 0 : i32
    %66 = vector.broadcast %c0_i32_22 : i32 to vector<1x256xi32>
    %67 = arith.cmpi sge, %65, %66 : vector<1x256xi32>
    %c3_i32_23 = arith.constant 3 : i32
    %68 = vector.broadcast %c3_i32_23 : i32 to vector<1x256xi32>
    %69 = arith.addi %9, %68 : vector<1x256xi32>
    %c128_i32_24 = arith.constant 128 : i32
    %70 = vector.broadcast %c128_i32_24 : i32 to vector<1x256xi32>
    %71 = arith.cmpi slt, %69, %70 : vector<1x256xi32>
    %72 = arith.andi %67, %71 : vector<1x256xi1>
    %c4_i32 = arith.constant 4 : i32
    %73 = vector.broadcast %c4_i32 : i32 to vector<1x256xi32>
    %74 = arith.addi %9, %73 : vector<1x256xi32>
    %c0_i32_25 = arith.constant 0 : i32
    %75 = vector.broadcast %c0_i32_25 : i32 to vector<1x256xi32>
    %76 = arith.cmpi sge, %74, %75 : vector<1x256xi32>
    %c4_i32_26 = arith.constant 4 : i32
    %77 = vector.broadcast %c4_i32_26 : i32 to vector<1x256xi32>
    %78 = arith.addi %9, %77 : vector<1x256xi32>
    %c128_i32_27 = arith.constant 128 : i32
    %79 = vector.broadcast %c128_i32_27 : i32 to vector<1x256xi32>
    %80 = arith.cmpi slt, %78, %79 : vector<1x256xi32>
    %81 = arith.andi %76, %80 : vector<1x256xi1>
    %82 = vector.extract_strided_slice %0 {offsets = [0, 0], sizes = [1, 256], strides = [1, 1]} : vector<2x256xf32> to vector<1x256xf32>
    %83 = vector.extract_strided_slice %1 {offsets = [0, 0], sizes = [1, 128], strides = [1, 1]} : vector<72x128xf32> to vector<1x128xf32>
    %c3_i32_28 = arith.constant 3 : i32
    %84 = tpu.dynamic_rotate %82 by %c3_i32_28 dim 1 : vector<1x256xf32>, i32 -> vector<1x256xf32>
    %cst_29 = arith.constant 0.000000e+00 : f32
    %85 = vector.broadcast %cst_29 : f32 to vector<1x256xf32>
    %86 = arith.select %27, %84, %85 : vector<1x256xi1>, vector<1x256xf32>
    %c2_i32_30 = arith.constant 2 : i32
    %87 = tpu.dynamic_rotate %82 by %c2_i32_30 dim 1 : vector<1x256xf32>, i32 -> vector<1x256xf32>
    %cst_31 = arith.constant 0.000000e+00 : f32
    %88 = vector.broadcast %cst_31 : f32 to vector<1x256xf32>
    %89 = arith.select %36, %87, %88 : vector<1x256xi1>, vector<1x256xf32>
    %c1_i32_32 = arith.constant 1 : i32
    %90 = tpu.dynamic_rotate %82 by %c1_i32_32 dim 1 : vector<1x256xf32>, i32 -> vector<1x256xf32>
    %cst_33 = arith.constant 0.000000e+00 : f32
    %91 = vector.broadcast %cst_33 : f32 to vector<1x256xf32>
    %92 = arith.select %45, %90, %91 : vector<1x256xi1>, vector<1x256xf32>
    %c255_i32 = arith.constant 255 : i32
    %93 = tpu.dynamic_rotate %82 by %c255_i32 dim 1 : vector<1x256xf32>, i32 -> vector<1x256xf32>
    %cst_34 = arith.constant 0.000000e+00 : f32
    %94 = vector.broadcast %cst_34 : f32 to vector<1x256xf32>
    %95 = arith.select %54, %93, %94 : vector<1x256xi1>, vector<1x256xf32>
    %c254_i32 = arith.constant 254 : i32
    %96 = tpu.dynamic_rotate %82 by %c254_i32 dim 1 : vector<1x256xf32>, i32 -> vector<1x256xf32>
    %cst_35 = arith.constant 0.000000e+00 : f32
    %97 = vector.broadcast %cst_35 : f32 to vector<1x256xf32>
    %98 = arith.select %63, %96, %97 : vector<1x256xi1>, vector<1x256xf32>
    %c253_i32 = arith.constant 253 : i32
    %99 = tpu.dynamic_rotate %82 by %c253_i32 dim 1 : vector<1x256xf32>, i32 -> vector<1x256xf32>
    %cst_36 = arith.constant 0.000000e+00 : f32
    %100 = vector.broadcast %cst_36 : f32 to vector<1x256xf32>
    %101 = arith.select %72, %99, %100 : vector<1x256xi1>, vector<1x256xf32>
    %102 = vector.extract_strided_slice %83 {offsets = [0, 0], sizes = [1, 1], strides = [1, 1]} : vector<1x128xf32> to vector<1x1xf32>
    %103 = vector.broadcast %102 : vector<1x1xf32> to vector<1x256xf32>
    %104 = arith.mulf %103, %86 : vector<1x256xf32>
    %105 = vector.extract_strided_slice %83 {offsets = [0, 1], sizes = [1, 1], strides = [1, 1]} : vector<1x128xf32> to vector<1x1xf32>
    %106 = vector.broadcast %105 : vector<1x1xf32> to vector<1x256xf32>
    %107 = arith.mulf %106, %89 : vector<1x256xf32>
    %108 = arith.addf %104, %107 : vector<1x256xf32>
    %109 = vector.extract_strided_slice %83 {offsets = [0, 2], sizes = [1, 1], strides = [1, 1]} : vector<1x128xf32> to vector<1x1xf32>
    %110 = vector.broadcast %109 : vector<1x1xf32> to vector<1x256xf32>
    %111 = arith.mulf %110, %92 : vector<1x256xf32>
    %112 = arith.addf %108, %111 : vector<1x256xf32>
    %113 = vector.extract_strided_slice %83 {offsets = [0, 3], sizes = [1, 1], strides = [1, 1]} : vector<1x128xf32> to vector<1x1xf32>
    %114 = vector.broadcast %113 : vector<1x1xf32> to vector<1x256xf32>
    %115 = arith.mulf %114, %82 : vector<1x256xf32>
    %116 = arith.addf %112, %115 : vector<1x256xf32>
    %117 = vector.extract_strided_slice %83 {offsets = [0, 4], sizes = [1, 1], strides = [1, 1]} : vector<1x128xf32> to vector<1x1xf32>
    %118 = vector.broadcast %117 : vector<1x1xf32> to vector<1x256xf32>
    %119 = arith.mulf %118, %95 : vector<1x256xf32>
    %120 = arith.addf %116, %119 : vector<1x256xf32>
    %121 = vector.extract_strided_slice %83 {offsets = [0, 5], sizes = [1, 1], strides = [1, 1]} : vector<1x128xf32> to vector<1x1xf32>
    %122 = vector.broadcast %121 : vector<1x1xf32> to vector<1x256xf32>
    %123 = arith.mulf %122, %98 : vector<1x256xf32>
    %124 = arith.addf %120, %123 : vector<1x256xf32>
    %125 = vector.extract_strided_slice %83 {offsets = [0, 6], sizes = [1, 1], strides = [1, 1]} : vector<1x128xf32> to vector<1x1xf32>
    %126 = vector.broadcast %125 : vector<1x1xf32> to vector<1x256xf32>
    %127 = arith.mulf %126, %101 : vector<1x256xf32>
    %128 = arith.addf %124, %127 : vector<1x256xf32>
    %129 = vector.extract_strided_slice %83 {offsets = [0, 7], sizes = [1, 1], strides = [1, 1]} : vector<1x128xf32> to vector<1x1xf32>
    %130 = vector.broadcast %129 : vector<1x1xf32> to vector<1x256xf32>
    %131 = arith.addf %128, %130 : vector<1x256xf32>
    %cst_37 = arith.constant 0.000000e+00 : f32
    %132 = vector.broadcast %cst_37 : f32 to vector<1x256xf32>
    %133 = arith.maximumf %131, %132 : vector<1x256xf32>
    %134 = vector.extract_strided_slice %1 {offsets = [8, 0], sizes = [3, 128], strides = [1, 1]} : vector<72x128xf32> to vector<3x128xf32>
    %135 = vector.extract_strided_slice %134 {offsets = [0, 0], sizes = [3, 1], strides = [1, 1]} : vector<3x128xf32> to vector<3x1xf32>
    %136 = vector.broadcast %135 : vector<3x1xf32> to vector<3x256xf32>
    %137 = vector.broadcast %133 : vector<1x256xf32> to vector<3x256xf32>
    %138 = arith.mulf %136, %137 : vector<3x256xf32>
    %139 = vector.extract_strided_slice %134 {offsets = [0, 1], sizes = [3, 1], strides = [1, 1]} : vector<3x128xf32> to vector<3x1xf32>
    %140 = vector.broadcast %139 : vector<3x1xf32> to vector<3x256xf32>
    %141 = arith.addf %138, %140 : vector<3x256xf32>
    %cst_38 = arith.constant 0.000000e+00 : f32
    %142 = vector.broadcast %cst_38 : f32 to vector<3x256xf32>
    %143 = arith.maximumf %141, %142 : vector<3x256xf32>
    %144 = vector.extract_strided_slice %1 {offsets = [16, 0], sizes = [5, 128], strides = [1, 1]} : vector<72x128xf32> to vector<5x128xf32>
    %c2_i32_39 = arith.constant 2 : i32
    %145 = tpu.dynamic_rotate %143 by %c2_i32_39 dim 1 : vector<3x256xf32>, i32 -> vector<3x256xf32>
    %cst_40 = arith.constant 0.000000e+00 : f32
    %146 = vector.shape_cast %36 : vector<1x256xi1> to vector<1x256xi1>
    %147 = vector.broadcast %146 : vector<1x256xi1> to vector<3x256xi1>
    %148 = vector.broadcast %cst_40 : f32 to vector<3x256xf32>
    %149 = arith.select %147, %145, %148 : vector<3x256xi1>, vector<3x256xf32>
    %c1_i32_41 = arith.constant 1 : i32
    %150 = tpu.dynamic_rotate %143 by %c1_i32_41 dim 1 : vector<3x256xf32>, i32 -> vector<3x256xf32>
    %cst_42 = arith.constant 0.000000e+00 : f32
    %151 = vector.shape_cast %45 : vector<1x256xi1> to vector<1x256xi1>
    %152 = vector.broadcast %151 : vector<1x256xi1> to vector<3x256xi1>
    %153 = vector.broadcast %cst_42 : f32 to vector<3x256xf32>
    %154 = arith.select %152, %150, %153 : vector<3x256xi1>, vector<3x256xf32>
    %c255_i32_43 = arith.constant 255 : i32
    %155 = tpu.dynamic_rotate %143 by %c255_i32_43 dim 1 : vector<3x256xf32>, i32 -> vector<3x256xf32>
    %cst_44 = arith.constant 0.000000e+00 : f32
    %156 = vector.shape_cast %54 : vector<1x256xi1> to vector<1x256xi1>
    %157 = vector.broadcast %156 : vector<1x256xi1> to vector<3x256xi1>
    %158 = vector.broadcast %cst_44 : f32 to vector<3x256xf32>
    %159 = arith.select %157, %155, %158 : vector<3x256xi1>, vector<3x256xf32>
    %c254_i32_45 = arith.constant 254 : i32
    %160 = tpu.dynamic_rotate %143 by %c254_i32_45 dim 1 : vector<3x256xf32>, i32 -> vector<3x256xf32>
    %cst_46 = arith.constant 0.000000e+00 : f32
    %161 = vector.shape_cast %63 : vector<1x256xi1> to vector<1x256xi1>
    %162 = vector.broadcast %161 : vector<1x256xi1> to vector<3x256xi1>
    %163 = vector.broadcast %cst_46 : f32 to vector<3x256xf32>
    %164 = arith.select %162, %160, %163 : vector<3x256xi1>, vector<3x256xf32>
    %165 = vector.extract_strided_slice %144 {offsets = [0, 0], sizes = [5, 1], strides = [1, 1]} : vector<5x128xf32> to vector<5x1xf32>
    %166 = vector.extract_strided_slice %149 {offsets = [0, 0], sizes = [1, 256], strides = [1, 1]} : vector<3x256xf32> to vector<1x256xf32>
    %167 = vector.broadcast %165 : vector<5x1xf32> to vector<5x256xf32>
    %168 = vector.broadcast %166 : vector<1x256xf32> to vector<5x256xf32>
    %169 = arith.mulf %167, %168 : vector<5x256xf32>
    %170 = vector.extract_strided_slice %144 {offsets = [0, 1], sizes = [5, 1], strides = [1, 1]} : vector<5x128xf32> to vector<5x1xf32>
    %171 = vector.extract_strided_slice %149 {offsets = [1, 0], sizes = [1, 256], strides = [1, 1]} : vector<3x256xf32> to vector<1x256xf32>
    %172 = vector.broadcast %170 : vector<5x1xf32> to vector<5x256xf32>
    %173 = vector.broadcast %171 : vector<1x256xf32> to vector<5x256xf32>
    %174 = arith.mulf %172, %173 : vector<5x256xf32>
    %175 = arith.addf %169, %174 : vector<5x256xf32>
    %176 = vector.extract_strided_slice %144 {offsets = [0, 2], sizes = [5, 1], strides = [1, 1]} : vector<5x128xf32> to vector<5x1xf32>
    %177 = vector.extract_strided_slice %149 {offsets = [2, 0], sizes = [1, 256], strides = [1, 1]} : vector<3x256xf32> to vector<1x256xf32>
    %178 = vector.broadcast %176 : vector<5x1xf32> to vector<5x256xf32>
    %179 = vector.broadcast %177 : vector<1x256xf32> to vector<5x256xf32>
    %180 = arith.mulf %178, %179 : vector<5x256xf32>
    %181 = arith.addf %175, %180 : vector<5x256xf32>
    %182 = vector.extract_strided_slice %144 {offsets = [0, 3], sizes = [5, 1], strides = [1, 1]} : vector<5x128xf32> to vector<5x1xf32>
    %183 = vector.extract_strided_slice %154 {offsets = [0, 0], sizes = [1, 256], strides = [1, 1]} : vector<3x256xf32> to vector<1x256xf32>
    %184 = vector.broadcast %182 : vector<5x1xf32> to vector<5x256xf32>
    %185 = vector.broadcast %183 : vector<1x256xf32> to vector<5x256xf32>
    %186 = arith.mulf %184, %185 : vector<5x256xf32>
    %187 = arith.addf %181, %186 : vector<5x256xf32>
    %188 = vector.extract_strided_slice %144 {offsets = [0, 4], sizes = [5, 1], strides = [1, 1]} : vector<5x128xf32> to vector<5x1xf32>
    %189 = vector.extract_strided_slice %154 {offsets = [1, 0], sizes = [1, 256], strides = [1, 1]} : vector<3x256xf32> to vector<1x256xf32>
    %190 = vector.broadcast %188 : vector<5x1xf32> to vector<5x256xf32>
    %191 = vector.broadcast %189 : vector<1x256xf32> to vector<5x256xf32>
    %192 = arith.mulf %190, %191 : vector<5x256xf32>
    %193 = arith.addf %187, %192 : vector<5x256xf32>
    %194 = vector.extract_strided_slice %144 {offsets = [0, 5], sizes = [5, 1], strides = [1, 1]} : vector<5x128xf32> to vector<5x1xf32>
    %195 = vector.extract_strided_slice %154 {offsets = [2, 0], sizes = [1, 256], strides = [1, 1]} : vector<3x256xf32> to vector<1x256xf32>
    %196 = vector.broadcast %194 : vector<5x1xf32> to vector<5x256xf32>
    %197 = vector.broadcast %195 : vector<1x256xf32> to vector<5x256xf32>
    %198 = arith.mulf %196, %197 : vector<5x256xf32>
    %199 = arith.addf %193, %198 : vector<5x256xf32>
    %200 = vector.extract_strided_slice %144 {offsets = [0, 6], sizes = [5, 1], strides = [1, 1]} : vector<5x128xf32> to vector<5x1xf32>
    %201 = vector.extract_strided_slice %143 {offsets = [0, 0], sizes = [1, 256], strides = [1, 1]} : vector<3x256xf32> to vector<1x256xf32>
    %202 = vector.broadcast %200 : vector<5x1xf32> to vector<5x256xf32>
    %203 = vector.broadcast %201 : vector<1x256xf32> to vector<5x256xf32>
    %204 = arith.mulf %202, %203 : vector<5x256xf32>
    %205 = arith.addf %199, %204 : vector<5x256xf32>
    %206 = vector.extract_strided_slice %144 {offsets = [0, 7], sizes = [5, 1], strides = [1, 1]} : vector<5x128xf32> to vector<5x1xf32>
    %207 = vector.extract_strided_slice %143 {offsets = [1, 0], sizes = [1, 256], strides = [1, 1]} : vector<3x256xf32> to vector<1x256xf32>
    %208 = vector.broadcast %206 : vector<5x1xf32> to vector<5x256xf32>
    %209 = vector.broadcast %207 : vector<1x256xf32> to vector<5x256xf32>
    %210 = arith.mulf %208, %209 : vector<5x256xf32>
    %211 = arith.addf %205, %210 : vector<5x256xf32>
    %212 = vector.extract_strided_slice %144 {offsets = [0, 8], sizes = [5, 1], strides = [1, 1]} : vector<5x128xf32> to vector<5x1xf32>
    %213 = vector.extract_strided_slice %143 {offsets = [2, 0], sizes = [1, 256], strides = [1, 1]} : vector<3x256xf32> to vector<1x256xf32>
    %214 = vector.broadcast %212 : vector<5x1xf32> to vector<5x256xf32>
    %215 = vector.broadcast %213 : vector<1x256xf32> to vector<5x256xf32>
    %216 = arith.mulf %214, %215 : vector<5x256xf32>
    %217 = arith.addf %211, %216 : vector<5x256xf32>
    %218 = vector.extract_strided_slice %144 {offsets = [0, 9], sizes = [5, 1], strides = [1, 1]} : vector<5x128xf32> to vector<5x1xf32>
    %219 = vector.extract_strided_slice %159 {offsets = [0, 0], sizes = [1, 256], strides = [1, 1]} : vector<3x256xf32> to vector<1x256xf32>
    %220 = vector.broadcast %218 : vector<5x1xf32> to vector<5x256xf32>
    %221 = vector.broadcast %219 : vector<1x256xf32> to vector<5x256xf32>
    %222 = arith.mulf %220, %221 : vector<5x256xf32>
    %223 = arith.addf %217, %222 : vector<5x256xf32>
    %224 = vector.extract_strided_slice %144 {offsets = [0, 10], sizes = [5, 1], strides = [1, 1]} : vector<5x128xf32> to vector<5x1xf32>
    %225 = vector.extract_strided_slice %159 {offsets = [1, 0], sizes = [1, 256], strides = [1, 1]} : vector<3x256xf32> to vector<1x256xf32>
    %226 = vector.broadcast %224 : vector<5x1xf32> to vector<5x256xf32>
    %227 = vector.broadcast %225 : vector<1x256xf32> to vector<5x256xf32>
    %228 = arith.mulf %226, %227 : vector<5x256xf32>
    %229 = arith.addf %223, %228 : vector<5x256xf32>
    %230 = vector.extract_strided_slice %144 {offsets = [0, 11], sizes = [5, 1], strides = [1, 1]} : vector<5x128xf32> to vector<5x1xf32>
    %231 = vector.extract_strided_slice %159 {offsets = [2, 0], sizes = [1, 256], strides = [1, 1]} : vector<3x256xf32> to vector<1x256xf32>
    %232 = vector.broadcast %230 : vector<5x1xf32> to vector<5x256xf32>
    %233 = vector.broadcast %231 : vector<1x256xf32> to vector<5x256xf32>
    %234 = arith.mulf %232, %233 : vector<5x256xf32>
    %235 = arith.addf %229, %234 : vector<5x256xf32>
    %236 = vector.extract_strided_slice %144 {offsets = [0, 12], sizes = [5, 1], strides = [1, 1]} : vector<5x128xf32> to vector<5x1xf32>
    %237 = vector.extract_strided_slice %164 {offsets = [0, 0], sizes = [1, 256], strides = [1, 1]} : vector<3x256xf32> to vector<1x256xf32>
    %238 = vector.broadcast %236 : vector<5x1xf32> to vector<5x256xf32>
    %239 = vector.broadcast %237 : vector<1x256xf32> to vector<5x256xf32>
    %240 = arith.mulf %238, %239 : vector<5x256xf32>
    %241 = arith.addf %235, %240 : vector<5x256xf32>
    %242 = vector.extract_strided_slice %144 {offsets = [0, 13], sizes = [5, 1], strides = [1, 1]} : vector<5x128xf32> to vector<5x1xf32>
    %243 = vector.extract_strided_slice %164 {offsets = [1, 0], sizes = [1, 256], strides = [1, 1]} : vector<3x256xf32> to vector<1x256xf32>
    %244 = vector.broadcast %242 : vector<5x1xf32> to vector<5x256xf32>
    %245 = vector.broadcast %243 : vector<1x256xf32> to vector<5x256xf32>
    %246 = arith.mulf %244, %245 : vector<5x256xf32>
    %247 = arith.addf %241, %246 : vector<5x256xf32>
    %248 = vector.extract_strided_slice %144 {offsets = [0, 14], sizes = [5, 1], strides = [1, 1]} : vector<5x128xf32> to vector<5x1xf32>
    %249 = vector.extract_strided_slice %164 {offsets = [2, 0], sizes = [1, 256], strides = [1, 1]} : vector<3x256xf32> to vector<1x256xf32>
    %250 = vector.broadcast %248 : vector<5x1xf32> to vector<5x256xf32>
    %251 = vector.broadcast %249 : vector<1x256xf32> to vector<5x256xf32>
    %252 = arith.mulf %250, %251 : vector<5x256xf32>
    %253 = arith.addf %247, %252 : vector<5x256xf32>
    %254 = vector.extract_strided_slice %144 {offsets = [0, 15], sizes = [5, 1], strides = [1, 1]} : vector<5x128xf32> to vector<5x1xf32>
    %255 = vector.broadcast %254 : vector<5x1xf32> to vector<5x256xf32>
    %256 = arith.addf %253, %255 : vector<5x256xf32>
    %cst_47 = arith.constant 0.000000e+00 : f32
    %257 = vector.broadcast %cst_47 : f32 to vector<5x256xf32>
    %258 = arith.maximumf %256, %257 : vector<5x256xf32>
    %259 = vector.extract_strided_slice %1 {offsets = [24, 0], sizes = [1, 128], strides = [1, 1]} : vector<72x128xf32> to vector<1x128xf32>
    %c4_i32_48 = arith.constant 4 : i32
    %260 = tpu.dynamic_rotate %258 by %c4_i32_48 dim 1 : vector<5x256xf32>, i32 -> vector<5x256xf32>
    %cst_49 = arith.constant 0.000000e+00 : f32
    %261 = vector.shape_cast %18 : vector<1x256xi1> to vector<1x256xi1>
    %262 = vector.broadcast %261 : vector<1x256xi1> to vector<5x256xi1>
    %263 = vector.broadcast %cst_49 : f32 to vector<5x256xf32>
    %264 = arith.select %262, %260, %263 : vector<5x256xi1>, vector<5x256xf32>
    %c3_i32_50 = arith.constant 3 : i32
    %265 = tpu.dynamic_rotate %258 by %c3_i32_50 dim 1 : vector<5x256xf32>, i32 -> vector<5x256xf32>
    %cst_51 = arith.constant 0.000000e+00 : f32
    %266 = vector.shape_cast %27 : vector<1x256xi1> to vector<1x256xi1>
    %267 = vector.broadcast %266 : vector<1x256xi1> to vector<5x256xi1>
    %268 = vector.broadcast %cst_51 : f32 to vector<5x256xf32>
    %269 = arith.select %267, %265, %268 : vector<5x256xi1>, vector<5x256xf32>
    %c2_i32_52 = arith.constant 2 : i32
    %270 = tpu.dynamic_rotate %258 by %c2_i32_52 dim 1 : vector<5x256xf32>, i32 -> vector<5x256xf32>
    %cst_53 = arith.constant 0.000000e+00 : f32
    %271 = vector.shape_cast %36 : vector<1x256xi1> to vector<1x256xi1>
    %272 = vector.broadcast %271 : vector<1x256xi1> to vector<5x256xi1>
    %273 = vector.broadcast %cst_53 : f32 to vector<5x256xf32>
    %274 = arith.select %272, %270, %273 : vector<5x256xi1>, vector<5x256xf32>
    %c1_i32_54 = arith.constant 1 : i32
    %275 = tpu.dynamic_rotate %258 by %c1_i32_54 dim 1 : vector<5x256xf32>, i32 -> vector<5x256xf32>
    %cst_55 = arith.constant 0.000000e+00 : f32
    %276 = vector.shape_cast %45 : vector<1x256xi1> to vector<1x256xi1>
    %277 = vector.broadcast %276 : vector<1x256xi1> to vector<5x256xi1>
    %278 = vector.broadcast %cst_55 : f32 to vector<5x256xf32>
    %279 = arith.select %277, %275, %278 : vector<5x256xi1>, vector<5x256xf32>
    %c255_i32_56 = arith.constant 255 : i32
    %280 = tpu.dynamic_rotate %258 by %c255_i32_56 dim 1 : vector<5x256xf32>, i32 -> vector<5x256xf32>
    %cst_57 = arith.constant 0.000000e+00 : f32
    %281 = vector.shape_cast %54 : vector<1x256xi1> to vector<1x256xi1>
    %282 = vector.broadcast %281 : vector<1x256xi1> to vector<5x256xi1>
    %283 = vector.broadcast %cst_57 : f32 to vector<5x256xf32>
    %284 = arith.select %282, %280, %283 : vector<5x256xi1>, vector<5x256xf32>
    %c254_i32_58 = arith.constant 254 : i32
    %285 = tpu.dynamic_rotate %258 by %c254_i32_58 dim 1 : vector<5x256xf32>, i32 -> vector<5x256xf32>
    %cst_59 = arith.constant 0.000000e+00 : f32
    %286 = vector.shape_cast %63 : vector<1x256xi1> to vector<1x256xi1>
    %287 = vector.broadcast %286 : vector<1x256xi1> to vector<5x256xi1>
    %288 = vector.broadcast %cst_59 : f32 to vector<5x256xf32>
    %289 = arith.select %287, %285, %288 : vector<5x256xi1>, vector<5x256xf32>
    %c253_i32_60 = arith.constant 253 : i32
    %290 = tpu.dynamic_rotate %258 by %c253_i32_60 dim 1 : vector<5x256xf32>, i32 -> vector<5x256xf32>
    %cst_61 = arith.constant 0.000000e+00 : f32
    %291 = vector.shape_cast %72 : vector<1x256xi1> to vector<1x256xi1>
    %292 = vector.broadcast %291 : vector<1x256xi1> to vector<5x256xi1>
    %293 = vector.broadcast %cst_61 : f32 to vector<5x256xf32>
    %294 = arith.select %292, %290, %293 : vector<5x256xi1>, vector<5x256xf32>
    %c252_i32 = arith.constant 252 : i32
    %295 = tpu.dynamic_rotate %258 by %c252_i32 dim 1 : vector<5x256xf32>, i32 -> vector<5x256xf32>
    %cst_62 = arith.constant 0.000000e+00 : f32
    %296 = vector.shape_cast %81 : vector<1x256xi1> to vector<1x256xi1>
    %297 = vector.broadcast %296 : vector<1x256xi1> to vector<5x256xi1>
    %298 = vector.broadcast %cst_62 : f32 to vector<5x256xf32>
    %299 = arith.select %297, %295, %298 : vector<5x256xi1>, vector<5x256xf32>
    %300 = vector.extract_strided_slice %259 {offsets = [0, 0], sizes = [1, 1], strides = [1, 1]} : vector<1x128xf32> to vector<1x1xf32>
    %301 = vector.extract_strided_slice %264 {offsets = [0, 0], sizes = [1, 256], strides = [1, 1]} : vector<5x256xf32> to vector<1x256xf32>
    %302 = vector.broadcast %300 : vector<1x1xf32> to vector<1x256xf32>
    %303 = arith.mulf %302, %301 : vector<1x256xf32>
    %304 = vector.extract_strided_slice %259 {offsets = [0, 1], sizes = [1, 1], strides = [1, 1]} : vector<1x128xf32> to vector<1x1xf32>
    %305 = vector.extract_strided_slice %264 {offsets = [1, 0], sizes = [1, 256], strides = [1, 1]} : vector<5x256xf32> to vector<1x256xf32>
    %306 = vector.broadcast %304 : vector<1x1xf32> to vector<1x256xf32>
    %307 = arith.mulf %306, %305 : vector<1x256xf32>
    %308 = arith.addf %303, %307 : vector<1x256xf32>
    %309 = vector.extract_strided_slice %259 {offsets = [0, 2], sizes = [1, 1], strides = [1, 1]} : vector<1x128xf32> to vector<1x1xf32>
    %310 = vector.extract_strided_slice %264 {offsets = [2, 0], sizes = [1, 256], strides = [1, 1]} : vector<5x256xf32> to vector<1x256xf32>
    %311 = vector.broadcast %309 : vector<1x1xf32> to vector<1x256xf32>
    %312 = arith.mulf %311, %310 : vector<1x256xf32>
    %313 = arith.addf %308, %312 : vector<1x256xf32>
    %314 = vector.extract_strided_slice %259 {offsets = [0, 3], sizes = [1, 1], strides = [1, 1]} : vector<1x128xf32> to vector<1x1xf32>
    %315 = vector.extract_strided_slice %264 {offsets = [3, 0], sizes = [1, 256], strides = [1, 1]} : vector<5x256xf32> to vector<1x256xf32>
    %316 = vector.broadcast %314 : vector<1x1xf32> to vector<1x256xf32>
    %317 = arith.mulf %316, %315 : vector<1x256xf32>
    %318 = arith.addf %313, %317 : vector<1x256xf32>
    %319 = vector.extract_strided_slice %259 {offsets = [0, 4], sizes = [1, 1], strides = [1, 1]} : vector<1x128xf32> to vector<1x1xf32>
    %320 = vector.extract_strided_slice %264 {offsets = [4, 0], sizes = [1, 256], strides = [1, 1]} : vector<5x256xf32> to vector<1x256xf32>
    %321 = vector.broadcast %319 : vector<1x1xf32> to vector<1x256xf32>
    %322 = arith.mulf %321, %320 : vector<1x256xf32>
    %323 = arith.addf %318, %322 : vector<1x256xf32>
    %324 = vector.extract_strided_slice %259 {offsets = [0, 5], sizes = [1, 1], strides = [1, 1]} : vector<1x128xf32> to vector<1x1xf32>
    %325 = vector.extract_strided_slice %269 {offsets = [0, 0], sizes = [1, 256], strides = [1, 1]} : vector<5x256xf32> to vector<1x256xf32>
    %326 = vector.broadcast %324 : vector<1x1xf32> to vector<1x256xf32>
    %327 = arith.mulf %326, %325 : vector<1x256xf32>
    %328 = arith.addf %323, %327 : vector<1x256xf32>
    %329 = vector.extract_strided_slice %259 {offsets = [0, 6], sizes = [1, 1], strides = [1, 1]} : vector<1x128xf32> to vector<1x1xf32>
    %330 = vector.extract_strided_slice %269 {offsets = [1, 0], sizes = [1, 256], strides = [1, 1]} : vector<5x256xf32> to vector<1x256xf32>
    %331 = vector.broadcast %329 : vector<1x1xf32> to vector<1x256xf32>
    %332 = arith.mulf %331, %330 : vector<1x256xf32>
    %333 = arith.addf %328, %332 : vector<1x256xf32>
    %334 = vector.extract_strided_slice %259 {offsets = [0, 7], sizes = [1, 1], strides = [1, 1]} : vector<1x128xf32> to vector<1x1xf32>
    %335 = vector.extract_strided_slice %269 {offsets = [2, 0], sizes = [1, 256], strides = [1, 1]} : vector<5x256xf32> to vector<1x256xf32>
    %336 = vector.broadcast %334 : vector<1x1xf32> to vector<1x256xf32>
    %337 = arith.mulf %336, %335 : vector<1x256xf32>
    %338 = arith.addf %333, %337 : vector<1x256xf32>
    %339 = vector.extract_strided_slice %259 {offsets = [0, 8], sizes = [1, 1], strides = [1, 1]} : vector<1x128xf32> to vector<1x1xf32>
    %340 = vector.extract_strided_slice %269 {offsets = [3, 0], sizes = [1, 256], strides = [1, 1]} : vector<5x256xf32> to vector<1x256xf32>
    %341 = vector.broadcast %339 : vector<1x1xf32> to vector<1x256xf32>
    %342 = arith.mulf %341, %340 : vector<1x256xf32>
    %343 = arith.addf %338, %342 : vector<1x256xf32>
    %344 = vector.extract_strided_slice %259 {offsets = [0, 9], sizes = [1, 1], strides = [1, 1]} : vector<1x128xf32> to vector<1x1xf32>
    %345 = vector.extract_strided_slice %269 {offsets = [4, 0], sizes = [1, 256], strides = [1, 1]} : vector<5x256xf32> to vector<1x256xf32>
    %346 = vector.broadcast %344 : vector<1x1xf32> to vector<1x256xf32>
    %347 = arith.mulf %346, %345 : vector<1x256xf32>
    %348 = arith.addf %343, %347 : vector<1x256xf32>
    %349 = vector.extract_strided_slice %259 {offsets = [0, 10], sizes = [1, 1], strides = [1, 1]} : vector<1x128xf32> to vector<1x1xf32>
    %350 = vector.extract_strided_slice %274 {offsets = [0, 0], sizes = [1, 256], strides = [1, 1]} : vector<5x256xf32> to vector<1x256xf32>
    %351 = vector.broadcast %349 : vector<1x1xf32> to vector<1x256xf32>
    %352 = arith.mulf %351, %350 : vector<1x256xf32>
    %353 = arith.addf %348, %352 : vector<1x256xf32>
    %354 = vector.extract_strided_slice %259 {offsets = [0, 11], sizes = [1, 1], strides = [1, 1]} : vector<1x128xf32> to vector<1x1xf32>
    %355 = vector.extract_strided_slice %274 {offsets = [1, 0], sizes = [1, 256], strides = [1, 1]} : vector<5x256xf32> to vector<1x256xf32>
    %356 = vector.broadcast %354 : vector<1x1xf32> to vector<1x256xf32>
    %357 = arith.mulf %356, %355 : vector<1x256xf32>
    %358 = arith.addf %353, %357 : vector<1x256xf32>
    %359 = vector.extract_strided_slice %259 {offsets = [0, 12], sizes = [1, 1], strides = [1, 1]} : vector<1x128xf32> to vector<1x1xf32>
    %360 = vector.extract_strided_slice %274 {offsets = [2, 0], sizes = [1, 256], strides = [1, 1]} : vector<5x256xf32> to vector<1x256xf32>
    %361 = vector.broadcast %359 : vector<1x1xf32> to vector<1x256xf32>
    %362 = arith.mulf %361, %360 : vector<1x256xf32>
    %363 = arith.addf %358, %362 : vector<1x256xf32>
    %364 = vector.extract_strided_slice %259 {offsets = [0, 13], sizes = [1, 1], strides = [1, 1]} : vector<1x128xf32> to vector<1x1xf32>
    %365 = vector.extract_strided_slice %274 {offsets = [3, 0], sizes = [1, 256], strides = [1, 1]} : vector<5x256xf32> to vector<1x256xf32>
    %366 = vector.broadcast %364 : vector<1x1xf32> to vector<1x256xf32>
    %367 = arith.mulf %366, %365 : vector<1x256xf32>
    %368 = arith.addf %363, %367 : vector<1x256xf32>
    %369 = vector.extract_strided_slice %259 {offsets = [0, 14], sizes = [1, 1], strides = [1, 1]} : vector<1x128xf32> to vector<1x1xf32>
    %370 = vector.extract_strided_slice %274 {offsets = [4, 0], sizes = [1, 256], strides = [1, 1]} : vector<5x256xf32> to vector<1x256xf32>
    %371 = vector.broadcast %369 : vector<1x1xf32> to vector<1x256xf32>
    %372 = arith.mulf %371, %370 : vector<1x256xf32>
    %373 = arith.addf %368, %372 : vector<1x256xf32>
    %374 = vector.extract_strided_slice %259 {offsets = [0, 15], sizes = [1, 1], strides = [1, 1]} : vector<1x128xf32> to vector<1x1xf32>
    %375 = vector.extract_strided_slice %279 {offsets = [0, 0], sizes = [1, 256], strides = [1, 1]} : vector<5x256xf32> to vector<1x256xf32>
    %376 = vector.broadcast %374 : vector<1x1xf32> to vector<1x256xf32>
    %377 = arith.mulf %376, %375 : vector<1x256xf32>
    %378 = arith.addf %373, %377 : vector<1x256xf32>
    %379 = vector.extract_strided_slice %259 {offsets = [0, 16], sizes = [1, 1], strides = [1, 1]} : vector<1x128xf32> to vector<1x1xf32>
    %380 = vector.extract_strided_slice %279 {offsets = [1, 0], sizes = [1, 256], strides = [1, 1]} : vector<5x256xf32> to vector<1x256xf32>
    %381 = vector.broadcast %379 : vector<1x1xf32> to vector<1x256xf32>
    %382 = arith.mulf %381, %380 : vector<1x256xf32>
    %383 = arith.addf %378, %382 : vector<1x256xf32>
    %384 = vector.extract_strided_slice %259 {offsets = [0, 17], sizes = [1, 1], strides = [1, 1]} : vector<1x128xf32> to vector<1x1xf32>
    %385 = vector.extract_strided_slice %279 {offsets = [2, 0], sizes = [1, 256], strides = [1, 1]} : vector<5x256xf32> to vector<1x256xf32>
    %386 = vector.broadcast %384 : vector<1x1xf32> to vector<1x256xf32>
    %387 = arith.mulf %386, %385 : vector<1x256xf32>
    %388 = arith.addf %383, %387 : vector<1x256xf32>
    %389 = vector.extract_strided_slice %259 {offsets = [0, 18], sizes = [1, 1], strides = [1, 1]} : vector<1x128xf32> to vector<1x1xf32>
    %390 = vector.extract_strided_slice %279 {offsets = [3, 0], sizes = [1, 256], strides = [1, 1]} : vector<5x256xf32> to vector<1x256xf32>
    %391 = vector.broadcast %389 : vector<1x1xf32> to vector<1x256xf32>
    %392 = arith.mulf %391, %390 : vector<1x256xf32>
    %393 = arith.addf %388, %392 : vector<1x256xf32>
    %394 = vector.extract_strided_slice %259 {offsets = [0, 19], sizes = [1, 1], strides = [1, 1]} : vector<1x128xf32> to vector<1x1xf32>
    %395 = vector.extract_strided_slice %279 {offsets = [4, 0], sizes = [1, 256], strides = [1, 1]} : vector<5x256xf32> to vector<1x256xf32>
    %396 = vector.broadcast %394 : vector<1x1xf32> to vector<1x256xf32>
    %397 = arith.mulf %396, %395 : vector<1x256xf32>
    %398 = arith.addf %393, %397 : vector<1x256xf32>
    %399 = vector.extract_strided_slice %259 {offsets = [0, 20], sizes = [1, 1], strides = [1, 1]} : vector<1x128xf32> to vector<1x1xf32>
    %400 = vector.extract_strided_slice %258 {offsets = [0, 0], sizes = [1, 256], strides = [1, 1]} : vector<5x256xf32> to vector<1x256xf32>
    %401 = vector.broadcast %399 : vector<1x1xf32> to vector<1x256xf32>
    %402 = arith.mulf %401, %400 : vector<1x256xf32>
    %403 = arith.addf %398, %402 : vector<1x256xf32>
    %404 = vector.extract_strided_slice %259 {offsets = [0, 21], sizes = [1, 1], strides = [1, 1]} : vector<1x128xf32> to vector<1x1xf32>
    %405 = vector.extract_strided_slice %258 {offsets = [1, 0], sizes = [1, 256], strides = [1, 1]} : vector<5x256xf32> to vector<1x256xf32>
    %406 = vector.broadcast %404 : vector<1x1xf32> to vector<1x256xf32>
    %407 = arith.mulf %406, %405 : vector<1x256xf32>
    %408 = arith.addf %403, %407 : vector<1x256xf32>
    %409 = vector.extract_strided_slice %259 {offsets = [0, 22], sizes = [1, 1], strides = [1, 1]} : vector<1x128xf32> to vector<1x1xf32>
    %410 = vector.extract_strided_slice %258 {offsets = [2, 0], sizes = [1, 256], strides = [1, 1]} : vector<5x256xf32> to vector<1x256xf32>
    %411 = vector.broadcast %409 : vector<1x1xf32> to vector<1x256xf32>
    %412 = arith.mulf %411, %410 : vector<1x256xf32>
    %413 = arith.addf %408, %412 : vector<1x256xf32>
    %414 = vector.extract_strided_slice %259 {offsets = [0, 23], sizes = [1, 1], strides = [1, 1]} : vector<1x128xf32> to vector<1x1xf32>
    %415 = vector.extract_strided_slice %258 {offsets = [3, 0], sizes = [1, 256], strides = [1, 1]} : vector<5x256xf32> to vector<1x256xf32>
    %416 = vector.broadcast %414 : vector<1x1xf32> to vector<1x256xf32>
    %417 = arith.mulf %416, %415 : vector<1x256xf32>
    %418 = arith.addf %413, %417 : vector<1x256xf32>
    %419 = vector.extract_strided_slice %259 {offsets = [0, 24], sizes = [1, 1], strides = [1, 1]} : vector<1x128xf32> to vector<1x1xf32>
    %420 = vector.extract_strided_slice %258 {offsets = [4, 0], sizes = [1, 256], strides = [1, 1]} : vector<5x256xf32> to vector<1x256xf32>
    %421 = vector.broadcast %419 : vector<1x1xf32> to vector<1x256xf32>
    %422 = arith.mulf %421, %420 : vector<1x256xf32>
    %423 = arith.addf %418, %422 : vector<1x256xf32>
    %424 = vector.extract_strided_slice %259 {offsets = [0, 25], sizes = [1, 1], strides = [1, 1]} : vector<1x128xf32> to vector<1x1xf32>
    %425 = vector.extract_strided_slice %284 {offsets = [0, 0], sizes = [1, 256], strides = [1, 1]} : vector<5x256xf32> to vector<1x256xf32>
    %426 = vector.broadcast %424 : vector<1x1xf32> to vector<1x256xf32>
    %427 = arith.mulf %426, %425 : vector<1x256xf32>
    %428 = arith.addf %423, %427 : vector<1x256xf32>
    %429 = vector.extract_strided_slice %259 {offsets = [0, 26], sizes = [1, 1], strides = [1, 1]} : vector<1x128xf32> to vector<1x1xf32>
    %430 = vector.extract_strided_slice %284 {offsets = [1, 0], sizes = [1, 256], strides = [1, 1]} : vector<5x256xf32> to vector<1x256xf32>
    %431 = vector.broadcast %429 : vector<1x1xf32> to vector<1x256xf32>
    %432 = arith.mulf %431, %430 : vector<1x256xf32>
    %433 = arith.addf %428, %432 : vector<1x256xf32>
    %434 = vector.extract_strided_slice %259 {offsets = [0, 27], sizes = [1, 1], strides = [1, 1]} : vector<1x128xf32> to vector<1x1xf32>
    %435 = vector.extract_strided_slice %284 {offsets = [2, 0], sizes = [1, 256], strides = [1, 1]} : vector<5x256xf32> to vector<1x256xf32>
    %436 = vector.broadcast %434 : vector<1x1xf32> to vector<1x256xf32>
    %437 = arith.mulf %436, %435 : vector<1x256xf32>
    %438 = arith.addf %433, %437 : vector<1x256xf32>
    %439 = vector.extract_strided_slice %259 {offsets = [0, 28], sizes = [1, 1], strides = [1, 1]} : vector<1x128xf32> to vector<1x1xf32>
    %440 = vector.extract_strided_slice %284 {offsets = [3, 0], sizes = [1, 256], strides = [1, 1]} : vector<5x256xf32> to vector<1x256xf32>
    %441 = vector.broadcast %439 : vector<1x1xf32> to vector<1x256xf32>
    %442 = arith.mulf %441, %440 : vector<1x256xf32>
    %443 = arith.addf %438, %442 : vector<1x256xf32>
    %444 = vector.extract_strided_slice %259 {offsets = [0, 29], sizes = [1, 1], strides = [1, 1]} : vector<1x128xf32> to vector<1x1xf32>
    %445 = vector.extract_strided_slice %284 {offsets = [4, 0], sizes = [1, 256], strides = [1, 1]} : vector<5x256xf32> to vector<1x256xf32>
    %446 = vector.broadcast %444 : vector<1x1xf32> to vector<1x256xf32>
    %447 = arith.mulf %446, %445 : vector<1x256xf32>
    %448 = arith.addf %443, %447 : vector<1x256xf32>
    %449 = vector.extract_strided_slice %259 {offsets = [0, 30], sizes = [1, 1], strides = [1, 1]} : vector<1x128xf32> to vector<1x1xf32>
    %450 = vector.extract_strided_slice %289 {offsets = [0, 0], sizes = [1, 256], strides = [1, 1]} : vector<5x256xf32> to vector<1x256xf32>
    %451 = vector.broadcast %449 : vector<1x1xf32> to vector<1x256xf32>
    %452 = arith.mulf %451, %450 : vector<1x256xf32>
    %453 = arith.addf %448, %452 : vector<1x256xf32>
    %454 = vector.extract_strided_slice %259 {offsets = [0, 31], sizes = [1, 1], strides = [1, 1]} : vector<1x128xf32> to vector<1x1xf32>
    %455 = vector.extract_strided_slice %289 {offsets = [1, 0], sizes = [1, 256], strides = [1, 1]} : vector<5x256xf32> to vector<1x256xf32>
    %456 = vector.broadcast %454 : vector<1x1xf32> to vector<1x256xf32>
    %457 = arith.mulf %456, %455 : vector<1x256xf32>
    %458 = arith.addf %453, %457 : vector<1x256xf32>
    %459 = vector.extract_strided_slice %259 {offsets = [0, 32], sizes = [1, 1], strides = [1, 1]} : vector<1x128xf32> to vector<1x1xf32>
    %460 = vector.extract_strided_slice %289 {offsets = [2, 0], sizes = [1, 256], strides = [1, 1]} : vector<5x256xf32> to vector<1x256xf32>
    %461 = vector.broadcast %459 : vector<1x1xf32> to vector<1x256xf32>
    %462 = arith.mulf %461, %460 : vector<1x256xf32>
    %463 = arith.addf %458, %462 : vector<1x256xf32>
    %464 = vector.extract_strided_slice %259 {offsets = [0, 33], sizes = [1, 1], strides = [1, 1]} : vector<1x128xf32> to vector<1x1xf32>
    %465 = vector.extract_strided_slice %289 {offsets = [3, 0], sizes = [1, 256], strides = [1, 1]} : vector<5x256xf32> to vector<1x256xf32>
    %466 = vector.broadcast %464 : vector<1x1xf32> to vector<1x256xf32>
    %467 = arith.mulf %466, %465 : vector<1x256xf32>
    %468 = arith.addf %463, %467 : vector<1x256xf32>
    %469 = vector.extract_strided_slice %259 {offsets = [0, 34], sizes = [1, 1], strides = [1, 1]} : vector<1x128xf32> to vector<1x1xf32>
    %470 = vector.extract_strided_slice %289 {offsets = [4, 0], sizes = [1, 256], strides = [1, 1]} : vector<5x256xf32> to vector<1x256xf32>
    %471 = vector.broadcast %469 : vector<1x1xf32> to vector<1x256xf32>
    %472 = arith.mulf %471, %470 : vector<1x256xf32>
    %473 = arith.addf %468, %472 : vector<1x256xf32>
    %474 = vector.extract_strided_slice %259 {offsets = [0, 35], sizes = [1, 1], strides = [1, 1]} : vector<1x128xf32> to vector<1x1xf32>
    %475 = vector.extract_strided_slice %294 {offsets = [0, 0], sizes = [1, 256], strides = [1, 1]} : vector<5x256xf32> to vector<1x256xf32>
    %476 = vector.broadcast %474 : vector<1x1xf32> to vector<1x256xf32>
    %477 = arith.mulf %476, %475 : vector<1x256xf32>
    %478 = arith.addf %473, %477 : vector<1x256xf32>
    %479 = vector.extract_strided_slice %259 {offsets = [0, 36], sizes = [1, 1], strides = [1, 1]} : vector<1x128xf32> to vector<1x1xf32>
    %480 = vector.extract_strided_slice %294 {offsets = [1, 0], sizes = [1, 256], strides = [1, 1]} : vector<5x256xf32> to vector<1x256xf32>
    %481 = vector.broadcast %479 : vector<1x1xf32> to vector<1x256xf32>
    %482 = arith.mulf %481, %480 : vector<1x256xf32>
    %483 = arith.addf %478, %482 : vector<1x256xf32>
    %484 = vector.extract_strided_slice %259 {offsets = [0, 37], sizes = [1, 1], strides = [1, 1]} : vector<1x128xf32> to vector<1x1xf32>
    %485 = vector.extract_strided_slice %294 {offsets = [2, 0], sizes = [1, 256], strides = [1, 1]} : vector<5x256xf32> to vector<1x256xf32>
    %486 = vector.broadcast %484 : vector<1x1xf32> to vector<1x256xf32>
    %487 = arith.mulf %486, %485 : vector<1x256xf32>
    %488 = arith.addf %483, %487 : vector<1x256xf32>
    %489 = vector.extract_strided_slice %259 {offsets = [0, 38], sizes = [1, 1], strides = [1, 1]} : vector<1x128xf32> to vector<1x1xf32>
    %490 = vector.extract_strided_slice %294 {offsets = [3, 0], sizes = [1, 256], strides = [1, 1]} : vector<5x256xf32> to vector<1x256xf32>
    %491 = vector.broadcast %489 : vector<1x1xf32> to vector<1x256xf32>
    %492 = arith.mulf %491, %490 : vector<1x256xf32>
    %493 = arith.addf %488, %492 : vector<1x256xf32>
    %494 = vector.extract_strided_slice %259 {offsets = [0, 39], sizes = [1, 1], strides = [1, 1]} : vector<1x128xf32> to vector<1x1xf32>
    %495 = vector.extract_strided_slice %294 {offsets = [4, 0], sizes = [1, 256], strides = [1, 1]} : vector<5x256xf32> to vector<1x256xf32>
    %496 = vector.broadcast %494 : vector<1x1xf32> to vector<1x256xf32>
    %497 = arith.mulf %496, %495 : vector<1x256xf32>
    %498 = arith.addf %493, %497 : vector<1x256xf32>
    %499 = vector.extract_strided_slice %259 {offsets = [0, 40], sizes = [1, 1], strides = [1, 1]} : vector<1x128xf32> to vector<1x1xf32>
    %500 = vector.extract_strided_slice %299 {offsets = [0, 0], sizes = [1, 256], strides = [1, 1]} : vector<5x256xf32> to vector<1x256xf32>
    %501 = vector.broadcast %499 : vector<1x1xf32> to vector<1x256xf32>
    %502 = arith.mulf %501, %500 : vector<1x256xf32>
    %503 = arith.addf %498, %502 : vector<1x256xf32>
    %504 = vector.extract_strided_slice %259 {offsets = [0, 41], sizes = [1, 1], strides = [1, 1]} : vector<1x128xf32> to vector<1x1xf32>
    %505 = vector.extract_strided_slice %299 {offsets = [1, 0], sizes = [1, 256], strides = [1, 1]} : vector<5x256xf32> to vector<1x256xf32>
    %506 = vector.broadcast %504 : vector<1x1xf32> to vector<1x256xf32>
    %507 = arith.mulf %506, %505 : vector<1x256xf32>
    %508 = arith.addf %503, %507 : vector<1x256xf32>
    %509 = vector.extract_strided_slice %259 {offsets = [0, 42], sizes = [1, 1], strides = [1, 1]} : vector<1x128xf32> to vector<1x1xf32>
    %510 = vector.extract_strided_slice %299 {offsets = [2, 0], sizes = [1, 256], strides = [1, 1]} : vector<5x256xf32> to vector<1x256xf32>
    %511 = vector.broadcast %509 : vector<1x1xf32> to vector<1x256xf32>
    %512 = arith.mulf %511, %510 : vector<1x256xf32>
    %513 = arith.addf %508, %512 : vector<1x256xf32>
    %514 = vector.extract_strided_slice %259 {offsets = [0, 43], sizes = [1, 1], strides = [1, 1]} : vector<1x128xf32> to vector<1x1xf32>
    %515 = vector.extract_strided_slice %299 {offsets = [3, 0], sizes = [1, 256], strides = [1, 1]} : vector<5x256xf32> to vector<1x256xf32>
    %516 = vector.broadcast %514 : vector<1x1xf32> to vector<1x256xf32>
    %517 = arith.mulf %516, %515 : vector<1x256xf32>
    %518 = arith.addf %513, %517 : vector<1x256xf32>
    %519 = vector.extract_strided_slice %259 {offsets = [0, 44], sizes = [1, 1], strides = [1, 1]} : vector<1x128xf32> to vector<1x1xf32>
    %520 = vector.extract_strided_slice %299 {offsets = [4, 0], sizes = [1, 256], strides = [1, 1]} : vector<5x256xf32> to vector<1x256xf32>
    %521 = vector.broadcast %519 : vector<1x1xf32> to vector<1x256xf32>
    %522 = arith.mulf %521, %520 : vector<1x256xf32>
    %523 = arith.addf %518, %522 : vector<1x256xf32>
    %524 = vector.extract_strided_slice %259 {offsets = [0, 45], sizes = [1, 1], strides = [1, 1]} : vector<1x128xf32> to vector<1x1xf32>
    %525 = vector.broadcast %524 : vector<1x1xf32> to vector<1x256xf32>
    %526 = arith.addf %523, %525 : vector<1x256xf32>
    %cst_63 = arith.constant 0.000000e+00 : f32
    %527 = vector.broadcast %cst_63 : f32 to vector<1x256xf32>
    %528 = arith.maximumf %526, %527 : vector<1x256xf32>
    %529 = vector.extract_strided_slice %0 {offsets = [1, 0], sizes = [1, 256], strides = [1, 1]} : vector<2x256xf32> to vector<1x256xf32>
    %530 = vector.extract_strided_slice %1 {offsets = [32, 0], sizes = [8, 128], strides = [1, 1]} : vector<72x128xf32> to vector<8x128xf32>
    %c2_i32_64 = arith.constant 2 : i32
    %531 = tpu.dynamic_rotate %529 by %c2_i32_64 dim 1 : vector<1x256xf32>, i32 -> vector<1x256xf32>
    %cst_65 = arith.constant 0.000000e+00 : f32
    %532 = vector.broadcast %cst_65 : f32 to vector<1x256xf32>
    %533 = arith.select %36, %531, %532 : vector<1x256xi1>, vector<1x256xf32>
    %c1_i32_66 = arith.constant 1 : i32
    %534 = tpu.dynamic_rotate %529 by %c1_i32_66 dim 1 : vector<1x256xf32>, i32 -> vector<1x256xf32>
    %cst_67 = arith.constant 0.000000e+00 : f32
    %535 = vector.broadcast %cst_67 : f32 to vector<1x256xf32>
    %536 = arith.select %45, %534, %535 : vector<1x256xi1>, vector<1x256xf32>
    %c255_i32_68 = arith.constant 255 : i32
    %537 = tpu.dynamic_rotate %529 by %c255_i32_68 dim 1 : vector<1x256xf32>, i32 -> vector<1x256xf32>
    %cst_69 = arith.constant 0.000000e+00 : f32
    %538 = vector.broadcast %cst_69 : f32 to vector<1x256xf32>
    %539 = arith.select %54, %537, %538 : vector<1x256xi1>, vector<1x256xf32>
    %c254_i32_70 = arith.constant 254 : i32
    %540 = tpu.dynamic_rotate %529 by %c254_i32_70 dim 1 : vector<1x256xf32>, i32 -> vector<1x256xf32>
    %cst_71 = arith.constant 0.000000e+00 : f32
    %541 = vector.broadcast %cst_71 : f32 to vector<1x256xf32>
    %542 = arith.select %63, %540, %541 : vector<1x256xi1>, vector<1x256xf32>
    %543 = vector.extract_strided_slice %530 {offsets = [0, 0], sizes = [8, 1], strides = [1, 1]} : vector<8x128xf32> to vector<8x1xf32>
    %544 = vector.broadcast %543 : vector<8x1xf32> to vector<8x256xf32>
    %545 = vector.broadcast %533 : vector<1x256xf32> to vector<8x256xf32>
    %546 = arith.mulf %544, %545 : vector<8x256xf32>
    %547 = vector.extract_strided_slice %530 {offsets = [0, 1], sizes = [8, 1], strides = [1, 1]} : vector<8x128xf32> to vector<8x1xf32>
    %548 = vector.broadcast %547 : vector<8x1xf32> to vector<8x256xf32>
    %549 = vector.broadcast %536 : vector<1x256xf32> to vector<8x256xf32>
    %550 = arith.mulf %548, %549 : vector<8x256xf32>
    %551 = arith.addf %546, %550 : vector<8x256xf32>
    %552 = vector.extract_strided_slice %530 {offsets = [0, 2], sizes = [8, 1], strides = [1, 1]} : vector<8x128xf32> to vector<8x1xf32>
    %553 = vector.broadcast %552 : vector<8x1xf32> to vector<8x256xf32>
    %554 = vector.broadcast %529 : vector<1x256xf32> to vector<8x256xf32>
    %555 = arith.mulf %553, %554 : vector<8x256xf32>
    %556 = arith.addf %551, %555 : vector<8x256xf32>
    %557 = vector.extract_strided_slice %530 {offsets = [0, 3], sizes = [8, 1], strides = [1, 1]} : vector<8x128xf32> to vector<8x1xf32>
    %558 = vector.broadcast %557 : vector<8x1xf32> to vector<8x256xf32>
    %559 = vector.broadcast %539 : vector<1x256xf32> to vector<8x256xf32>
    %560 = arith.mulf %558, %559 : vector<8x256xf32>
    %561 = arith.addf %556, %560 : vector<8x256xf32>
    %562 = vector.extract_strided_slice %530 {offsets = [0, 4], sizes = [8, 1], strides = [1, 1]} : vector<8x128xf32> to vector<8x1xf32>
    %563 = vector.broadcast %562 : vector<8x1xf32> to vector<8x256xf32>
    %564 = vector.broadcast %542 : vector<1x256xf32> to vector<8x256xf32>
    %565 = arith.mulf %563, %564 : vector<8x256xf32>
    %566 = arith.addf %561, %565 : vector<8x256xf32>
    %567 = vector.extract_strided_slice %530 {offsets = [0, 5], sizes = [8, 1], strides = [1, 1]} : vector<8x128xf32> to vector<8x1xf32>
    %568 = vector.broadcast %567 : vector<8x1xf32> to vector<8x256xf32>
    %569 = arith.addf %566, %568 : vector<8x256xf32>
    %cst_72 = arith.constant 0.000000e+00 : f32
    %570 = vector.broadcast %cst_72 : f32 to vector<8x256xf32>
    %571 = arith.maximumf %569, %570 : vector<8x256xf32>
    %572 = vector.extract_strided_slice %1 {offsets = [40, 0], sizes = [8, 128], strides = [1, 1]} : vector<72x128xf32> to vector<8x128xf32>
    %c2_i32_73 = arith.constant 2 : i32
    %573 = tpu.dynamic_rotate %571 by %c2_i32_73 dim 1 : vector<8x256xf32>, i32 -> vector<8x256xf32>
    %cst_74 = arith.constant 0.000000e+00 : f32
    %574 = vector.shape_cast %36 : vector<1x256xi1> to vector<1x256xi1>
    %575 = vector.broadcast %574 : vector<1x256xi1> to vector<8x256xi1>
    %576 = vector.broadcast %cst_74 : f32 to vector<8x256xf32>
    %577 = arith.select %575, %573, %576 : vector<8x256xi1>, vector<8x256xf32>
    %c1_i32_75 = arith.constant 1 : i32
    %578 = tpu.dynamic_rotate %571 by %c1_i32_75 dim 1 : vector<8x256xf32>, i32 -> vector<8x256xf32>
    %cst_76 = arith.constant 0.000000e+00 : f32
    %579 = vector.shape_cast %45 : vector<1x256xi1> to vector<1x256xi1>
    %580 = vector.broadcast %579 : vector<1x256xi1> to vector<8x256xi1>
    %581 = vector.broadcast %cst_76 : f32 to vector<8x256xf32>
    %582 = arith.select %580, %578, %581 : vector<8x256xi1>, vector<8x256xf32>
    %c255_i32_77 = arith.constant 255 : i32
    %583 = tpu.dynamic_rotate %571 by %c255_i32_77 dim 1 : vector<8x256xf32>, i32 -> vector<8x256xf32>
    %cst_78 = arith.constant 0.000000e+00 : f32
    %584 = vector.shape_cast %54 : vector<1x256xi1> to vector<1x256xi1>
    %585 = vector.broadcast %584 : vector<1x256xi1> to vector<8x256xi1>
    %586 = vector.broadcast %cst_78 : f32 to vector<8x256xf32>
    %587 = arith.select %585, %583, %586 : vector<8x256xi1>, vector<8x256xf32>
    %c254_i32_79 = arith.constant 254 : i32
    %588 = tpu.dynamic_rotate %571 by %c254_i32_79 dim 1 : vector<8x256xf32>, i32 -> vector<8x256xf32>
    %cst_80 = arith.constant 0.000000e+00 : f32
    %589 = vector.shape_cast %63 : vector<1x256xi1> to vector<1x256xi1>
    %590 = vector.broadcast %589 : vector<1x256xi1> to vector<8x256xi1>
    %591 = vector.broadcast %cst_80 : f32 to vector<8x256xf32>
    %592 = arith.select %590, %588, %591 : vector<8x256xi1>, vector<8x256xf32>
    %593 = tpu.concatenate %577, %582, %571, %587, %592, %2 in 0 : vector<8x256xf32>, vector<8x256xf32>, vector<8x256xf32>, vector<8x256xf32>, vector<8x256xf32>, vector<1x256xf32> -> vector<41x256xf32>
    %594 = vector.extract_strided_slice %572 {offsets = [0, 0], sizes = [8, 41], strides = [1, 1]} : vector<8x128xf32> to vector<8x41xf32>
    %cst_81 = arith.constant dense<0.000000e+00> : vector<8x256xf32>
    %595 = tpu.matmul %594, %593, %cst_81 {dimension_numbers = #tpu.dot_dimension_numbers<[1], [0], [0], [1], [0, 0, 1, 1], [], []>} : vector<8x41xf32>, vector<41x256xf32>, vector<8x256xf32> -> vector<8x256xf32>
    %cst_82 = arith.constant 0.000000e+00 : f32
    %596 = vector.broadcast %cst_82 : f32 to vector<8x256xf32>
    %597 = arith.maximumf %595, %596 : vector<8x256xf32>
    %598 = vector.extract_strided_slice %1 {offsets = [48, 0], sizes = [1, 128], strides = [1, 1]} : vector<72x128xf32> to vector<1x128xf32>
    %c2_i32_83 = arith.constant 2 : i32
    %599 = tpu.dynamic_rotate %597 by %c2_i32_83 dim 1 : vector<8x256xf32>, i32 -> vector<8x256xf32>
    %cst_84 = arith.constant 0.000000e+00 : f32
    %600 = vector.shape_cast %36 : vector<1x256xi1> to vector<1x256xi1>
    %601 = vector.broadcast %600 : vector<1x256xi1> to vector<8x256xi1>
    %602 = vector.broadcast %cst_84 : f32 to vector<8x256xf32>
    %603 = arith.select %601, %599, %602 : vector<8x256xi1>, vector<8x256xf32>
    %c1_i32_85 = arith.constant 1 : i32
    %604 = tpu.dynamic_rotate %597 by %c1_i32_85 dim 1 : vector<8x256xf32>, i32 -> vector<8x256xf32>
    %cst_86 = arith.constant 0.000000e+00 : f32
    %605 = vector.shape_cast %45 : vector<1x256xi1> to vector<1x256xi1>
    %606 = vector.broadcast %605 : vector<1x256xi1> to vector<8x256xi1>
    %607 = vector.broadcast %cst_86 : f32 to vector<8x256xf32>
    %608 = arith.select %606, %604, %607 : vector<8x256xi1>, vector<8x256xf32>
    %c255_i32_87 = arith.constant 255 : i32
    %609 = tpu.dynamic_rotate %597 by %c255_i32_87 dim 1 : vector<8x256xf32>, i32 -> vector<8x256xf32>
    %cst_88 = arith.constant 0.000000e+00 : f32
    %610 = vector.shape_cast %54 : vector<1x256xi1> to vector<1x256xi1>
    %611 = vector.broadcast %610 : vector<1x256xi1> to vector<8x256xi1>
    %612 = vector.broadcast %cst_88 : f32 to vector<8x256xf32>
    %613 = arith.select %611, %609, %612 : vector<8x256xi1>, vector<8x256xf32>
    %c254_i32_89 = arith.constant 254 : i32
    %614 = tpu.dynamic_rotate %597 by %c254_i32_89 dim 1 : vector<8x256xf32>, i32 -> vector<8x256xf32>
    %cst_90 = arith.constant 0.000000e+00 : f32
    %615 = vector.shape_cast %63 : vector<1x256xi1> to vector<1x256xi1>
    %616 = vector.broadcast %615 : vector<1x256xi1> to vector<8x256xi1>
    %617 = vector.broadcast %cst_90 : f32 to vector<8x256xf32>
    %618 = arith.select %616, %614, %617 : vector<8x256xi1>, vector<8x256xf32>
    %619 = vector.extract_strided_slice %598 {offsets = [0, 0], sizes = [1, 1], strides = [1, 1]} : vector<1x128xf32> to vector<1x1xf32>
    %620 = vector.extract_strided_slice %603 {offsets = [0, 0], sizes = [1, 256], strides = [1, 1]} : vector<8x256xf32> to vector<1x256xf32>
    %621 = vector.broadcast %619 : vector<1x1xf32> to vector<1x256xf32>
    %622 = arith.mulf %621, %620 : vector<1x256xf32>
    %623 = vector.extract_strided_slice %598 {offsets = [0, 1], sizes = [1, 1], strides = [1, 1]} : vector<1x128xf32> to vector<1x1xf32>
    %624 = vector.extract_strided_slice %603 {offsets = [1, 0], sizes = [1, 256], strides = [1, 1]} : vector<8x256xf32> to vector<1x256xf32>
    %625 = vector.broadcast %623 : vector<1x1xf32> to vector<1x256xf32>
    %626 = arith.mulf %625, %624 : vector<1x256xf32>
    %627 = arith.addf %622, %626 : vector<1x256xf32>
    %628 = vector.extract_strided_slice %598 {offsets = [0, 2], sizes = [1, 1], strides = [1, 1]} : vector<1x128xf32> to vector<1x1xf32>
    %629 = vector.extract_strided_slice %603 {offsets = [2, 0], sizes = [1, 256], strides = [1, 1]} : vector<8x256xf32> to vector<1x256xf32>
    %630 = vector.broadcast %628 : vector<1x1xf32> to vector<1x256xf32>
    %631 = arith.mulf %630, %629 : vector<1x256xf32>
    %632 = arith.addf %627, %631 : vector<1x256xf32>
    %633 = vector.extract_strided_slice %598 {offsets = [0, 3], sizes = [1, 1], strides = [1, 1]} : vector<1x128xf32> to vector<1x1xf32>
    %634 = vector.extract_strided_slice %603 {offsets = [3, 0], sizes = [1, 256], strides = [1, 1]} : vector<8x256xf32> to vector<1x256xf32>
    %635 = vector.broadcast %633 : vector<1x1xf32> to vector<1x256xf32>
    %636 = arith.mulf %635, %634 : vector<1x256xf32>
    %637 = arith.addf %632, %636 : vector<1x256xf32>
    %638 = vector.extract_strided_slice %598 {offsets = [0, 4], sizes = [1, 1], strides = [1, 1]} : vector<1x128xf32> to vector<1x1xf32>
    %639 = vector.extract_strided_slice %603 {offsets = [4, 0], sizes = [1, 256], strides = [1, 1]} : vector<8x256xf32> to vector<1x256xf32>
    %640 = vector.broadcast %638 : vector<1x1xf32> to vector<1x256xf32>
    %641 = arith.mulf %640, %639 : vector<1x256xf32>
    %642 = arith.addf %637, %641 : vector<1x256xf32>
    %643 = vector.extract_strided_slice %598 {offsets = [0, 5], sizes = [1, 1], strides = [1, 1]} : vector<1x128xf32> to vector<1x1xf32>
    %644 = vector.extract_strided_slice %603 {offsets = [5, 0], sizes = [1, 256], strides = [1, 1]} : vector<8x256xf32> to vector<1x256xf32>
    %645 = vector.broadcast %643 : vector<1x1xf32> to vector<1x256xf32>
    %646 = arith.mulf %645, %644 : vector<1x256xf32>
    %647 = arith.addf %642, %646 : vector<1x256xf32>
    %648 = vector.extract_strided_slice %598 {offsets = [0, 6], sizes = [1, 1], strides = [1, 1]} : vector<1x128xf32> to vector<1x1xf32>
    %649 = vector.extract_strided_slice %603 {offsets = [6, 0], sizes = [1, 256], strides = [1, 1]} : vector<8x256xf32> to vector<1x256xf32>
    %650 = vector.broadcast %648 : vector<1x1xf32> to vector<1x256xf32>
    %651 = arith.mulf %650, %649 : vector<1x256xf32>
    %652 = arith.addf %647, %651 : vector<1x256xf32>
    %653 = vector.extract_strided_slice %598 {offsets = [0, 7], sizes = [1, 1], strides = [1, 1]} : vector<1x128xf32> to vector<1x1xf32>
    %654 = vector.extract_strided_slice %603 {offsets = [7, 0], sizes = [1, 256], strides = [1, 1]} : vector<8x256xf32> to vector<1x256xf32>
    %655 = vector.broadcast %653 : vector<1x1xf32> to vector<1x256xf32>
    %656 = arith.mulf %655, %654 : vector<1x256xf32>
    %657 = arith.addf %652, %656 : vector<1x256xf32>
    %658 = vector.extract_strided_slice %598 {offsets = [0, 8], sizes = [1, 1], strides = [1, 1]} : vector<1x128xf32> to vector<1x1xf32>
    %659 = vector.extract_strided_slice %608 {offsets = [0, 0], sizes = [1, 256], strides = [1, 1]} : vector<8x256xf32> to vector<1x256xf32>
    %660 = vector.broadcast %658 : vector<1x1xf32> to vector<1x256xf32>
    %661 = arith.mulf %660, %659 : vector<1x256xf32>
    %662 = arith.addf %657, %661 : vector<1x256xf32>
    %663 = vector.extract_strided_slice %598 {offsets = [0, 9], sizes = [1, 1], strides = [1, 1]} : vector<1x128xf32> to vector<1x1xf32>
    %664 = vector.extract_strided_slice %608 {offsets = [1, 0], sizes = [1, 256], strides = [1, 1]} : vector<8x256xf32> to vector<1x256xf32>
    %665 = vector.broadcast %663 : vector<1x1xf32> to vector<1x256xf32>
    %666 = arith.mulf %665, %664 : vector<1x256xf32>
    %667 = arith.addf %662, %666 : vector<1x256xf32>
    %668 = vector.extract_strided_slice %598 {offsets = [0, 10], sizes = [1, 1], strides = [1, 1]} : vector<1x128xf32> to vector<1x1xf32>
    %669 = vector.extract_strided_slice %608 {offsets = [2, 0], sizes = [1, 256], strides = [1, 1]} : vector<8x256xf32> to vector<1x256xf32>
    %670 = vector.broadcast %668 : vector<1x1xf32> to vector<1x256xf32>
    %671 = arith.mulf %670, %669 : vector<1x256xf32>
    %672 = arith.addf %667, %671 : vector<1x256xf32>
    %673 = vector.extract_strided_slice %598 {offsets = [0, 11], sizes = [1, 1], strides = [1, 1]} : vector<1x128xf32> to vector<1x1xf32>
    %674 = vector.extract_strided_slice %608 {offsets = [3, 0], sizes = [1, 256], strides = [1, 1]} : vector<8x256xf32> to vector<1x256xf32>
    %675 = vector.broadcast %673 : vector<1x1xf32> to vector<1x256xf32>
    %676 = arith.mulf %675, %674 : vector<1x256xf32>
    %677 = arith.addf %672, %676 : vector<1x256xf32>
    %678 = vector.extract_strided_slice %598 {offsets = [0, 12], sizes = [1, 1], strides = [1, 1]} : vector<1x128xf32> to vector<1x1xf32>
    %679 = vector.extract_strided_slice %608 {offsets = [4, 0], sizes = [1, 256], strides = [1, 1]} : vector<8x256xf32> to vector<1x256xf32>
    %680 = vector.broadcast %678 : vector<1x1xf32> to vector<1x256xf32>
    %681 = arith.mulf %680, %679 : vector<1x256xf32>
    %682 = arith.addf %677, %681 : vector<1x256xf32>
    %683 = vector.extract_strided_slice %598 {offsets = [0, 13], sizes = [1, 1], strides = [1, 1]} : vector<1x128xf32> to vector<1x1xf32>
    %684 = vector.extract_strided_slice %608 {offsets = [5, 0], sizes = [1, 256], strides = [1, 1]} : vector<8x256xf32> to vector<1x256xf32>
    %685 = vector.broadcast %683 : vector<1x1xf32> to vector<1x256xf32>
    %686 = arith.mulf %685, %684 : vector<1x256xf32>
    %687 = arith.addf %682, %686 : vector<1x256xf32>
    %688 = vector.extract_strided_slice %598 {offsets = [0, 14], sizes = [1, 1], strides = [1, 1]} : vector<1x128xf32> to vector<1x1xf32>
    %689 = vector.extract_strided_slice %608 {offsets = [6, 0], sizes = [1, 256], strides = [1, 1]} : vector<8x256xf32> to vector<1x256xf32>
    %690 = vector.broadcast %688 : vector<1x1xf32> to vector<1x256xf32>
    %691 = arith.mulf %690, %689 : vector<1x256xf32>
    %692 = arith.addf %687, %691 : vector<1x256xf32>
    %693 = vector.extract_strided_slice %598 {offsets = [0, 15], sizes = [1, 1], strides = [1, 1]} : vector<1x128xf32> to vector<1x1xf32>
    %694 = vector.extract_strided_slice %608 {offsets = [7, 0], sizes = [1, 256], strides = [1, 1]} : vector<8x256xf32> to vector<1x256xf32>
    %695 = vector.broadcast %693 : vector<1x1xf32> to vector<1x256xf32>
    %696 = arith.mulf %695, %694 : vector<1x256xf32>
    %697 = arith.addf %692, %696 : vector<1x256xf32>
    %698 = vector.extract_strided_slice %598 {offsets = [0, 16], sizes = [1, 1], strides = [1, 1]} : vector<1x128xf32> to vector<1x1xf32>
    %699 = vector.extract_strided_slice %597 {offsets = [0, 0], sizes = [1, 256], strides = [1, 1]} : vector<8x256xf32> to vector<1x256xf32>
    %700 = vector.broadcast %698 : vector<1x1xf32> to vector<1x256xf32>
    %701 = arith.mulf %700, %699 : vector<1x256xf32>
    %702 = arith.addf %697, %701 : vector<1x256xf32>
    %703 = vector.extract_strided_slice %598 {offsets = [0, 17], sizes = [1, 1], strides = [1, 1]} : vector<1x128xf32> to vector<1x1xf32>
    %704 = vector.extract_strided_slice %597 {offsets = [1, 0], sizes = [1, 256], strides = [1, 1]} : vector<8x256xf32> to vector<1x256xf32>
    %705 = vector.broadcast %703 : vector<1x1xf32> to vector<1x256xf32>
    %706 = arith.mulf %705, %704 : vector<1x256xf32>
    %707 = arith.addf %702, %706 : vector<1x256xf32>
    %708 = vector.extract_strided_slice %598 {offsets = [0, 18], sizes = [1, 1], strides = [1, 1]} : vector<1x128xf32> to vector<1x1xf32>
    %709 = vector.extract_strided_slice %597 {offsets = [2, 0], sizes = [1, 256], strides = [1, 1]} : vector<8x256xf32> to vector<1x256xf32>
    %710 = vector.broadcast %708 : vector<1x1xf32> to vector<1x256xf32>
    %711 = arith.mulf %710, %709 : vector<1x256xf32>
    %712 = arith.addf %707, %711 : vector<1x256xf32>
    %713 = vector.extract_strided_slice %598 {offsets = [0, 19], sizes = [1, 1], strides = [1, 1]} : vector<1x128xf32> to vector<1x1xf32>
    %714 = vector.extract_strided_slice %597 {offsets = [3, 0], sizes = [1, 256], strides = [1, 1]} : vector<8x256xf32> to vector<1x256xf32>
    %715 = vector.broadcast %713 : vector<1x1xf32> to vector<1x256xf32>
    %716 = arith.mulf %715, %714 : vector<1x256xf32>
    %717 = arith.addf %712, %716 : vector<1x256xf32>
    %718 = vector.extract_strided_slice %598 {offsets = [0, 20], sizes = [1, 1], strides = [1, 1]} : vector<1x128xf32> to vector<1x1xf32>
    %719 = vector.extract_strided_slice %597 {offsets = [4, 0], sizes = [1, 256], strides = [1, 1]} : vector<8x256xf32> to vector<1x256xf32>
    %720 = vector.broadcast %718 : vector<1x1xf32> to vector<1x256xf32>
    %721 = arith.mulf %720, %719 : vector<1x256xf32>
    %722 = arith.addf %717, %721 : vector<1x256xf32>
    %723 = vector.extract_strided_slice %598 {offsets = [0, 21], sizes = [1, 1], strides = [1, 1]} : vector<1x128xf32> to vector<1x1xf32>
    %724 = vector.extract_strided_slice %597 {offsets = [5, 0], sizes = [1, 256], strides = [1, 1]} : vector<8x256xf32> to vector<1x256xf32>
    %725 = vector.broadcast %723 : vector<1x1xf32> to vector<1x256xf32>
    %726 = arith.mulf %725, %724 : vector<1x256xf32>
    %727 = arith.addf %722, %726 : vector<1x256xf32>
    %728 = vector.extract_strided_slice %598 {offsets = [0, 22], sizes = [1, 1], strides = [1, 1]} : vector<1x128xf32> to vector<1x1xf32>
    %729 = vector.extract_strided_slice %597 {offsets = [6, 0], sizes = [1, 256], strides = [1, 1]} : vector<8x256xf32> to vector<1x256xf32>
    %730 = vector.broadcast %728 : vector<1x1xf32> to vector<1x256xf32>
    %731 = arith.mulf %730, %729 : vector<1x256xf32>
    %732 = arith.addf %727, %731 : vector<1x256xf32>
    %733 = vector.extract_strided_slice %598 {offsets = [0, 23], sizes = [1, 1], strides = [1, 1]} : vector<1x128xf32> to vector<1x1xf32>
    %734 = vector.extract_strided_slice %597 {offsets = [7, 0], sizes = [1, 256], strides = [1, 1]} : vector<8x256xf32> to vector<1x256xf32>
    %735 = vector.broadcast %733 : vector<1x1xf32> to vector<1x256xf32>
    %736 = arith.mulf %735, %734 : vector<1x256xf32>
    %737 = arith.addf %732, %736 : vector<1x256xf32>
    %738 = vector.extract_strided_slice %598 {offsets = [0, 24], sizes = [1, 1], strides = [1, 1]} : vector<1x128xf32> to vector<1x1xf32>
    %739 = vector.extract_strided_slice %613 {offsets = [0, 0], sizes = [1, 256], strides = [1, 1]} : vector<8x256xf32> to vector<1x256xf32>
    %740 = vector.broadcast %738 : vector<1x1xf32> to vector<1x256xf32>
    %741 = arith.mulf %740, %739 : vector<1x256xf32>
    %742 = arith.addf %737, %741 : vector<1x256xf32>
    %743 = vector.extract_strided_slice %598 {offsets = [0, 25], sizes = [1, 1], strides = [1, 1]} : vector<1x128xf32> to vector<1x1xf32>
    %744 = vector.extract_strided_slice %613 {offsets = [1, 0], sizes = [1, 256], strides = [1, 1]} : vector<8x256xf32> to vector<1x256xf32>
    %745 = vector.broadcast %743 : vector<1x1xf32> to vector<1x256xf32>
    %746 = arith.mulf %745, %744 : vector<1x256xf32>
    %747 = arith.addf %742, %746 : vector<1x256xf32>
    %748 = vector.extract_strided_slice %598 {offsets = [0, 26], sizes = [1, 1], strides = [1, 1]} : vector<1x128xf32> to vector<1x1xf32>
    %749 = vector.extract_strided_slice %613 {offsets = [2, 0], sizes = [1, 256], strides = [1, 1]} : vector<8x256xf32> to vector<1x256xf32>
    %750 = vector.broadcast %748 : vector<1x1xf32> to vector<1x256xf32>
    %751 = arith.mulf %750, %749 : vector<1x256xf32>
    %752 = arith.addf %747, %751 : vector<1x256xf32>
    %753 = vector.extract_strided_slice %598 {offsets = [0, 27], sizes = [1, 1], strides = [1, 1]} : vector<1x128xf32> to vector<1x1xf32>
    %754 = vector.extract_strided_slice %613 {offsets = [3, 0], sizes = [1, 256], strides = [1, 1]} : vector<8x256xf32> to vector<1x256xf32>
    %755 = vector.broadcast %753 : vector<1x1xf32> to vector<1x256xf32>
    %756 = arith.mulf %755, %754 : vector<1x256xf32>
    %757 = arith.addf %752, %756 : vector<1x256xf32>
    %758 = vector.extract_strided_slice %598 {offsets = [0, 28], sizes = [1, 1], strides = [1, 1]} : vector<1x128xf32> to vector<1x1xf32>
    %759 = vector.extract_strided_slice %613 {offsets = [4, 0], sizes = [1, 256], strides = [1, 1]} : vector<8x256xf32> to vector<1x256xf32>
    %760 = vector.broadcast %758 : vector<1x1xf32> to vector<1x256xf32>
    %761 = arith.mulf %760, %759 : vector<1x256xf32>
    %762 = arith.addf %757, %761 : vector<1x256xf32>
    %763 = vector.extract_strided_slice %598 {offsets = [0, 29], sizes = [1, 1], strides = [1, 1]} : vector<1x128xf32> to vector<1x1xf32>
    %764 = vector.extract_strided_slice %613 {offsets = [5, 0], sizes = [1, 256], strides = [1, 1]} : vector<8x256xf32> to vector<1x256xf32>
    %765 = vector.broadcast %763 : vector<1x1xf32> to vector<1x256xf32>
    %766 = arith.mulf %765, %764 : vector<1x256xf32>
    %767 = arith.addf %762, %766 : vector<1x256xf32>
    %768 = vector.extract_strided_slice %598 {offsets = [0, 30], sizes = [1, 1], strides = [1, 1]} : vector<1x128xf32> to vector<1x1xf32>
    %769 = vector.extract_strided_slice %613 {offsets = [6, 0], sizes = [1, 256], strides = [1, 1]} : vector<8x256xf32> to vector<1x256xf32>
    %770 = vector.broadcast %768 : vector<1x1xf32> to vector<1x256xf32>
    %771 = arith.mulf %770, %769 : vector<1x256xf32>
    %772 = arith.addf %767, %771 : vector<1x256xf32>
    %773 = vector.extract_strided_slice %598 {offsets = [0, 31], sizes = [1, 1], strides = [1, 1]} : vector<1x128xf32> to vector<1x1xf32>
    %774 = vector.extract_strided_slice %613 {offsets = [7, 0], sizes = [1, 256], strides = [1, 1]} : vector<8x256xf32> to vector<1x256xf32>
    %775 = vector.broadcast %773 : vector<1x1xf32> to vector<1x256xf32>
    %776 = arith.mulf %775, %774 : vector<1x256xf32>
    %777 = arith.addf %772, %776 : vector<1x256xf32>
    %778 = vector.extract_strided_slice %598 {offsets = [0, 32], sizes = [1, 1], strides = [1, 1]} : vector<1x128xf32> to vector<1x1xf32>
    %779 = vector.extract_strided_slice %618 {offsets = [0, 0], sizes = [1, 256], strides = [1, 1]} : vector<8x256xf32> to vector<1x256xf32>
    %780 = vector.broadcast %778 : vector<1x1xf32> to vector<1x256xf32>
    %781 = arith.mulf %780, %779 : vector<1x256xf32>
    %782 = arith.addf %777, %781 : vector<1x256xf32>
    %783 = vector.extract_strided_slice %598 {offsets = [0, 33], sizes = [1, 1], strides = [1, 1]} : vector<1x128xf32> to vector<1x1xf32>
    %784 = vector.extract_strided_slice %618 {offsets = [1, 0], sizes = [1, 256], strides = [1, 1]} : vector<8x256xf32> to vector<1x256xf32>
    %785 = vector.broadcast %783 : vector<1x1xf32> to vector<1x256xf32>
    %786 = arith.mulf %785, %784 : vector<1x256xf32>
    %787 = arith.addf %782, %786 : vector<1x256xf32>
    %788 = vector.extract_strided_slice %598 {offsets = [0, 34], sizes = [1, 1], strides = [1, 1]} : vector<1x128xf32> to vector<1x1xf32>
    %789 = vector.extract_strided_slice %618 {offsets = [2, 0], sizes = [1, 256], strides = [1, 1]} : vector<8x256xf32> to vector<1x256xf32>
    %790 = vector.broadcast %788 : vector<1x1xf32> to vector<1x256xf32>
    %791 = arith.mulf %790, %789 : vector<1x256xf32>
    %792 = arith.addf %787, %791 : vector<1x256xf32>
    %793 = vector.extract_strided_slice %598 {offsets = [0, 35], sizes = [1, 1], strides = [1, 1]} : vector<1x128xf32> to vector<1x1xf32>
    %794 = vector.extract_strided_slice %618 {offsets = [3, 0], sizes = [1, 256], strides = [1, 1]} : vector<8x256xf32> to vector<1x256xf32>
    %795 = vector.broadcast %793 : vector<1x1xf32> to vector<1x256xf32>
    %796 = arith.mulf %795, %794 : vector<1x256xf32>
    %797 = arith.addf %792, %796 : vector<1x256xf32>
    %798 = vector.extract_strided_slice %598 {offsets = [0, 36], sizes = [1, 1], strides = [1, 1]} : vector<1x128xf32> to vector<1x1xf32>
    %799 = vector.extract_strided_slice %618 {offsets = [4, 0], sizes = [1, 256], strides = [1, 1]} : vector<8x256xf32> to vector<1x256xf32>
    %800 = vector.broadcast %798 : vector<1x1xf32> to vector<1x256xf32>
    %801 = arith.mulf %800, %799 : vector<1x256xf32>
    %802 = arith.addf %797, %801 : vector<1x256xf32>
    %803 = vector.extract_strided_slice %598 {offsets = [0, 37], sizes = [1, 1], strides = [1, 1]} : vector<1x128xf32> to vector<1x1xf32>
    %804 = vector.extract_strided_slice %618 {offsets = [5, 0], sizes = [1, 256], strides = [1, 1]} : vector<8x256xf32> to vector<1x256xf32>
    %805 = vector.broadcast %803 : vector<1x1xf32> to vector<1x256xf32>
    %806 = arith.mulf %805, %804 : vector<1x256xf32>
    %807 = arith.addf %802, %806 : vector<1x256xf32>
    %808 = vector.extract_strided_slice %598 {offsets = [0, 38], sizes = [1, 1], strides = [1, 1]} : vector<1x128xf32> to vector<1x1xf32>
    %809 = vector.extract_strided_slice %618 {offsets = [6, 0], sizes = [1, 256], strides = [1, 1]} : vector<8x256xf32> to vector<1x256xf32>
    %810 = vector.broadcast %808 : vector<1x1xf32> to vector<1x256xf32>
    %811 = arith.mulf %810, %809 : vector<1x256xf32>
    %812 = arith.addf %807, %811 : vector<1x256xf32>
    %813 = vector.extract_strided_slice %598 {offsets = [0, 39], sizes = [1, 1], strides = [1, 1]} : vector<1x128xf32> to vector<1x1xf32>
    %814 = vector.extract_strided_slice %618 {offsets = [7, 0], sizes = [1, 256], strides = [1, 1]} : vector<8x256xf32> to vector<1x256xf32>
    %815 = vector.broadcast %813 : vector<1x1xf32> to vector<1x256xf32>
    %816 = arith.mulf %815, %814 : vector<1x256xf32>
    %817 = arith.addf %812, %816 : vector<1x256xf32>
    %818 = vector.extract_strided_slice %598 {offsets = [0, 40], sizes = [1, 1], strides = [1, 1]} : vector<1x128xf32> to vector<1x1xf32>
    %819 = vector.broadcast %818 : vector<1x1xf32> to vector<1x256xf32>
    %820 = arith.addf %817, %819 : vector<1x256xf32>
    %821 = tpu.concatenate %528, %820 in 0 : vector<1x256xf32>, vector<1x256xf32> -> vector<2x256xf32>
    %822 = vector.extract_strided_slice %1 {offsets = [56, 0], sizes = [8, 128], strides = [1, 1]} : vector<72x128xf32> to vector<8x128xf32>
    %c2_i32_91 = arith.constant 2 : i32
    %823 = tpu.dynamic_rotate %821 by %c2_i32_91 dim 1 : vector<2x256xf32>, i32 -> vector<2x256xf32>
    %cst_92 = arith.constant 0.000000e+00 : f32
    %824 = vector.shape_cast %36 : vector<1x256xi1> to vector<1x256xi1>
    %825 = vector.broadcast %824 : vector<1x256xi1> to vector<2x256xi1>
    %826 = vector.broadcast %cst_92 : f32 to vector<2x256xf32>
    %827 = arith.select %825, %823, %826 : vector<2x256xi1>, vector<2x256xf32>
    %c1_i32_93 = arith.constant 1 : i32
    %828 = tpu.dynamic_rotate %821 by %c1_i32_93 dim 1 : vector<2x256xf32>, i32 -> vector<2x256xf32>
    %cst_94 = arith.constant 0.000000e+00 : f32
    %829 = vector.shape_cast %45 : vector<1x256xi1> to vector<1x256xi1>
    %830 = vector.broadcast %829 : vector<1x256xi1> to vector<2x256xi1>
    %831 = vector.broadcast %cst_94 : f32 to vector<2x256xf32>
    %832 = arith.select %830, %828, %831 : vector<2x256xi1>, vector<2x256xf32>
    %c255_i32_95 = arith.constant 255 : i32
    %833 = tpu.dynamic_rotate %821 by %c255_i32_95 dim 1 : vector<2x256xf32>, i32 -> vector<2x256xf32>
    %cst_96 = arith.constant 0.000000e+00 : f32
    %834 = vector.shape_cast %54 : vector<1x256xi1> to vector<1x256xi1>
    %835 = vector.broadcast %834 : vector<1x256xi1> to vector<2x256xi1>
    %836 = vector.broadcast %cst_96 : f32 to vector<2x256xf32>
    %837 = arith.select %835, %833, %836 : vector<2x256xi1>, vector<2x256xf32>
    %c254_i32_97 = arith.constant 254 : i32
    %838 = tpu.dynamic_rotate %821 by %c254_i32_97 dim 1 : vector<2x256xf32>, i32 -> vector<2x256xf32>
    %cst_98 = arith.constant 0.000000e+00 : f32
    %839 = vector.shape_cast %63 : vector<1x256xi1> to vector<1x256xi1>
    %840 = vector.broadcast %839 : vector<1x256xi1> to vector<2x256xi1>
    %841 = vector.broadcast %cst_98 : f32 to vector<2x256xf32>
    %842 = arith.select %840, %838, %841 : vector<2x256xi1>, vector<2x256xf32>
    %843 = vector.extract_strided_slice %822 {offsets = [0, 0], sizes = [8, 1], strides = [1, 1]} : vector<8x128xf32> to vector<8x1xf32>
    %844 = vector.extract_strided_slice %827 {offsets = [0, 0], sizes = [1, 256], strides = [1, 1]} : vector<2x256xf32> to vector<1x256xf32>
    %845 = vector.broadcast %843 : vector<8x1xf32> to vector<8x256xf32>
    %846 = vector.broadcast %844 : vector<1x256xf32> to vector<8x256xf32>
    %847 = arith.mulf %845, %846 : vector<8x256xf32>
    %848 = vector.extract_strided_slice %822 {offsets = [0, 1], sizes = [8, 1], strides = [1, 1]} : vector<8x128xf32> to vector<8x1xf32>
    %849 = vector.extract_strided_slice %827 {offsets = [1, 0], sizes = [1, 256], strides = [1, 1]} : vector<2x256xf32> to vector<1x256xf32>
    %850 = vector.broadcast %848 : vector<8x1xf32> to vector<8x256xf32>
    %851 = vector.broadcast %849 : vector<1x256xf32> to vector<8x256xf32>
    %852 = arith.mulf %850, %851 : vector<8x256xf32>
    %853 = arith.addf %847, %852 : vector<8x256xf32>
    %854 = vector.extract_strided_slice %822 {offsets = [0, 2], sizes = [8, 1], strides = [1, 1]} : vector<8x128xf32> to vector<8x1xf32>
    %855 = vector.extract_strided_slice %832 {offsets = [0, 0], sizes = [1, 256], strides = [1, 1]} : vector<2x256xf32> to vector<1x256xf32>
    %856 = vector.broadcast %854 : vector<8x1xf32> to vector<8x256xf32>
    %857 = vector.broadcast %855 : vector<1x256xf32> to vector<8x256xf32>
    %858 = arith.mulf %856, %857 : vector<8x256xf32>
    %859 = arith.addf %853, %858 : vector<8x256xf32>
    %860 = vector.extract_strided_slice %822 {offsets = [0, 3], sizes = [8, 1], strides = [1, 1]} : vector<8x128xf32> to vector<8x1xf32>
    %861 = vector.extract_strided_slice %832 {offsets = [1, 0], sizes = [1, 256], strides = [1, 1]} : vector<2x256xf32> to vector<1x256xf32>
    %862 = vector.broadcast %860 : vector<8x1xf32> to vector<8x256xf32>
    %863 = vector.broadcast %861 : vector<1x256xf32> to vector<8x256xf32>
    %864 = arith.mulf %862, %863 : vector<8x256xf32>
    %865 = arith.addf %859, %864 : vector<8x256xf32>
    %866 = vector.extract_strided_slice %822 {offsets = [0, 4], sizes = [8, 1], strides = [1, 1]} : vector<8x128xf32> to vector<8x1xf32>
    %867 = vector.extract_strided_slice %821 {offsets = [0, 0], sizes = [1, 256], strides = [1, 1]} : vector<2x256xf32> to vector<1x256xf32>
    %868 = vector.broadcast %866 : vector<8x1xf32> to vector<8x256xf32>
    %869 = vector.broadcast %867 : vector<1x256xf32> to vector<8x256xf32>
    %870 = arith.mulf %868, %869 : vector<8x256xf32>
    %871 = arith.addf %865, %870 : vector<8x256xf32>
    %872 = vector.extract_strided_slice %822 {offsets = [0, 5], sizes = [8, 1], strides = [1, 1]} : vector<8x128xf32> to vector<8x1xf32>
    %873 = vector.extract_strided_slice %821 {offsets = [1, 0], sizes = [1, 256], strides = [1, 1]} : vector<2x256xf32> to vector<1x256xf32>
    %874 = vector.broadcast %872 : vector<8x1xf32> to vector<8x256xf32>
    %875 = vector.broadcast %873 : vector<1x256xf32> to vector<8x256xf32>
    %876 = arith.mulf %874, %875 : vector<8x256xf32>
    %877 = arith.addf %871, %876 : vector<8x256xf32>
    %878 = vector.extract_strided_slice %822 {offsets = [0, 6], sizes = [8, 1], strides = [1, 1]} : vector<8x128xf32> to vector<8x1xf32>
    %879 = vector.extract_strided_slice %837 {offsets = [0, 0], sizes = [1, 256], strides = [1, 1]} : vector<2x256xf32> to vector<1x256xf32>
    %880 = vector.broadcast %878 : vector<8x1xf32> to vector<8x256xf32>
    %881 = vector.broadcast %879 : vector<1x256xf32> to vector<8x256xf32>
    %882 = arith.mulf %880, %881 : vector<8x256xf32>
    %883 = arith.addf %877, %882 : vector<8x256xf32>
    %884 = vector.extract_strided_slice %822 {offsets = [0, 7], sizes = [8, 1], strides = [1, 1]} : vector<8x128xf32> to vector<8x1xf32>
    %885 = vector.extract_strided_slice %837 {offsets = [1, 0], sizes = [1, 256], strides = [1, 1]} : vector<2x256xf32> to vector<1x256xf32>
    %886 = vector.broadcast %884 : vector<8x1xf32> to vector<8x256xf32>
    %887 = vector.broadcast %885 : vector<1x256xf32> to vector<8x256xf32>
    %888 = arith.mulf %886, %887 : vector<8x256xf32>
    %889 = arith.addf %883, %888 : vector<8x256xf32>
    %890 = vector.extract_strided_slice %822 {offsets = [0, 8], sizes = [8, 1], strides = [1, 1]} : vector<8x128xf32> to vector<8x1xf32>
    %891 = vector.extract_strided_slice %842 {offsets = [0, 0], sizes = [1, 256], strides = [1, 1]} : vector<2x256xf32> to vector<1x256xf32>
    %892 = vector.broadcast %890 : vector<8x1xf32> to vector<8x256xf32>
    %893 = vector.broadcast %891 : vector<1x256xf32> to vector<8x256xf32>
    %894 = arith.mulf %892, %893 : vector<8x256xf32>
    %895 = arith.addf %889, %894 : vector<8x256xf32>
    %896 = vector.extract_strided_slice %822 {offsets = [0, 9], sizes = [8, 1], strides = [1, 1]} : vector<8x128xf32> to vector<8x1xf32>
    %897 = vector.extract_strided_slice %842 {offsets = [1, 0], sizes = [1, 256], strides = [1, 1]} : vector<2x256xf32> to vector<1x256xf32>
    %898 = vector.broadcast %896 : vector<8x1xf32> to vector<8x256xf32>
    %899 = vector.broadcast %897 : vector<1x256xf32> to vector<8x256xf32>
    %900 = arith.mulf %898, %899 : vector<8x256xf32>
    %901 = arith.addf %895, %900 : vector<8x256xf32>
    %902 = vector.extract_strided_slice %822 {offsets = [0, 10], sizes = [8, 1], strides = [1, 1]} : vector<8x128xf32> to vector<8x1xf32>
    %903 = vector.broadcast %902 : vector<8x1xf32> to vector<8x256xf32>
    %904 = arith.addf %901, %903 : vector<8x256xf32>
    %cst_99 = arith.constant 0.000000e+00 : f32
    %905 = vector.broadcast %cst_99 : f32 to vector<8x256xf32>
    %906 = arith.maximumf %904, %905 : vector<8x256xf32>
    %907 = vector.extract_strided_slice %1 {offsets = [64, 0], sizes = [1, 128], strides = [1, 1]} : vector<72x128xf32> to vector<1x128xf32>
    %c2_i32_100 = arith.constant 2 : i32
    %908 = tpu.dynamic_rotate %906 by %c2_i32_100 dim 1 : vector<8x256xf32>, i32 -> vector<8x256xf32>
    %cst_101 = arith.constant 0.000000e+00 : f32
    %909 = vector.shape_cast %36 : vector<1x256xi1> to vector<1x256xi1>
    %910 = vector.broadcast %909 : vector<1x256xi1> to vector<8x256xi1>
    %911 = vector.broadcast %cst_101 : f32 to vector<8x256xf32>
    %912 = arith.select %910, %908, %911 : vector<8x256xi1>, vector<8x256xf32>
    %c1_i32_102 = arith.constant 1 : i32
    %913 = tpu.dynamic_rotate %906 by %c1_i32_102 dim 1 : vector<8x256xf32>, i32 -> vector<8x256xf32>
    %cst_103 = arith.constant 0.000000e+00 : f32
    %914 = vector.shape_cast %45 : vector<1x256xi1> to vector<1x256xi1>
    %915 = vector.broadcast %914 : vector<1x256xi1> to vector<8x256xi1>
    %916 = vector.broadcast %cst_103 : f32 to vector<8x256xf32>
    %917 = arith.select %915, %913, %916 : vector<8x256xi1>, vector<8x256xf32>
    %c255_i32_104 = arith.constant 255 : i32
    %918 = tpu.dynamic_rotate %906 by %c255_i32_104 dim 1 : vector<8x256xf32>, i32 -> vector<8x256xf32>
    %cst_105 = arith.constant 0.000000e+00 : f32
    %919 = vector.shape_cast %54 : vector<1x256xi1> to vector<1x256xi1>
    %920 = vector.broadcast %919 : vector<1x256xi1> to vector<8x256xi1>
    %921 = vector.broadcast %cst_105 : f32 to vector<8x256xf32>
    %922 = arith.select %920, %918, %921 : vector<8x256xi1>, vector<8x256xf32>
    %c254_i32_106 = arith.constant 254 : i32
    %923 = tpu.dynamic_rotate %906 by %c254_i32_106 dim 1 : vector<8x256xf32>, i32 -> vector<8x256xf32>
    %cst_107 = arith.constant 0.000000e+00 : f32
    %924 = vector.shape_cast %63 : vector<1x256xi1> to vector<1x256xi1>
    %925 = vector.broadcast %924 : vector<1x256xi1> to vector<8x256xi1>
    %926 = vector.broadcast %cst_107 : f32 to vector<8x256xf32>
    %927 = arith.select %925, %923, %926 : vector<8x256xi1>, vector<8x256xf32>
    %928 = vector.extract_strided_slice %907 {offsets = [0, 0], sizes = [1, 1], strides = [1, 1]} : vector<1x128xf32> to vector<1x1xf32>
    %929 = vector.extract_strided_slice %912 {offsets = [0, 0], sizes = [1, 256], strides = [1, 1]} : vector<8x256xf32> to vector<1x256xf32>
    %930 = vector.broadcast %928 : vector<1x1xf32> to vector<1x256xf32>
    %931 = arith.mulf %930, %929 : vector<1x256xf32>
    %932 = vector.extract_strided_slice %907 {offsets = [0, 1], sizes = [1, 1], strides = [1, 1]} : vector<1x128xf32> to vector<1x1xf32>
    %933 = vector.extract_strided_slice %912 {offsets = [1, 0], sizes = [1, 256], strides = [1, 1]} : vector<8x256xf32> to vector<1x256xf32>
    %934 = vector.broadcast %932 : vector<1x1xf32> to vector<1x256xf32>
    %935 = arith.mulf %934, %933 : vector<1x256xf32>
    %936 = arith.addf %931, %935 : vector<1x256xf32>
    %937 = vector.extract_strided_slice %907 {offsets = [0, 2], sizes = [1, 1], strides = [1, 1]} : vector<1x128xf32> to vector<1x1xf32>
    %938 = vector.extract_strided_slice %912 {offsets = [2, 0], sizes = [1, 256], strides = [1, 1]} : vector<8x256xf32> to vector<1x256xf32>
    %939 = vector.broadcast %937 : vector<1x1xf32> to vector<1x256xf32>
    %940 = arith.mulf %939, %938 : vector<1x256xf32>
    %941 = arith.addf %936, %940 : vector<1x256xf32>
    %942 = vector.extract_strided_slice %907 {offsets = [0, 3], sizes = [1, 1], strides = [1, 1]} : vector<1x128xf32> to vector<1x1xf32>
    %943 = vector.extract_strided_slice %912 {offsets = [3, 0], sizes = [1, 256], strides = [1, 1]} : vector<8x256xf32> to vector<1x256xf32>
    %944 = vector.broadcast %942 : vector<1x1xf32> to vector<1x256xf32>
    %945 = arith.mulf %944, %943 : vector<1x256xf32>
    %946 = arith.addf %941, %945 : vector<1x256xf32>
    %947 = vector.extract_strided_slice %907 {offsets = [0, 4], sizes = [1, 1], strides = [1, 1]} : vector<1x128xf32> to vector<1x1xf32>
    %948 = vector.extract_strided_slice %912 {offsets = [4, 0], sizes = [1, 256], strides = [1, 1]} : vector<8x256xf32> to vector<1x256xf32>
    %949 = vector.broadcast %947 : vector<1x1xf32> to vector<1x256xf32>
    %950 = arith.mulf %949, %948 : vector<1x256xf32>
    %951 = arith.addf %946, %950 : vector<1x256xf32>
    %952 = vector.extract_strided_slice %907 {offsets = [0, 5], sizes = [1, 1], strides = [1, 1]} : vector<1x128xf32> to vector<1x1xf32>
    %953 = vector.extract_strided_slice %912 {offsets = [5, 0], sizes = [1, 256], strides = [1, 1]} : vector<8x256xf32> to vector<1x256xf32>
    %954 = vector.broadcast %952 : vector<1x1xf32> to vector<1x256xf32>
    %955 = arith.mulf %954, %953 : vector<1x256xf32>
    %956 = arith.addf %951, %955 : vector<1x256xf32>
    %957 = vector.extract_strided_slice %907 {offsets = [0, 6], sizes = [1, 1], strides = [1, 1]} : vector<1x128xf32> to vector<1x1xf32>
    %958 = vector.extract_strided_slice %912 {offsets = [6, 0], sizes = [1, 256], strides = [1, 1]} : vector<8x256xf32> to vector<1x256xf32>
    %959 = vector.broadcast %957 : vector<1x1xf32> to vector<1x256xf32>
    %960 = arith.mulf %959, %958 : vector<1x256xf32>
    %961 = arith.addf %956, %960 : vector<1x256xf32>
    %962 = vector.extract_strided_slice %907 {offsets = [0, 7], sizes = [1, 1], strides = [1, 1]} : vector<1x128xf32> to vector<1x1xf32>
    %963 = vector.extract_strided_slice %912 {offsets = [7, 0], sizes = [1, 256], strides = [1, 1]} : vector<8x256xf32> to vector<1x256xf32>
    %964 = vector.broadcast %962 : vector<1x1xf32> to vector<1x256xf32>
    %965 = arith.mulf %964, %963 : vector<1x256xf32>
    %966 = arith.addf %961, %965 : vector<1x256xf32>
    %967 = vector.extract_strided_slice %907 {offsets = [0, 8], sizes = [1, 1], strides = [1, 1]} : vector<1x128xf32> to vector<1x1xf32>
    %968 = vector.extract_strided_slice %917 {offsets = [0, 0], sizes = [1, 256], strides = [1, 1]} : vector<8x256xf32> to vector<1x256xf32>
    %969 = vector.broadcast %967 : vector<1x1xf32> to vector<1x256xf32>
    %970 = arith.mulf %969, %968 : vector<1x256xf32>
    %971 = arith.addf %966, %970 : vector<1x256xf32>
    %972 = vector.extract_strided_slice %907 {offsets = [0, 9], sizes = [1, 1], strides = [1, 1]} : vector<1x128xf32> to vector<1x1xf32>
    %973 = vector.extract_strided_slice %917 {offsets = [1, 0], sizes = [1, 256], strides = [1, 1]} : vector<8x256xf32> to vector<1x256xf32>
    %974 = vector.broadcast %972 : vector<1x1xf32> to vector<1x256xf32>
    %975 = arith.mulf %974, %973 : vector<1x256xf32>
    %976 = arith.addf %971, %975 : vector<1x256xf32>
    %977 = vector.extract_strided_slice %907 {offsets = [0, 10], sizes = [1, 1], strides = [1, 1]} : vector<1x128xf32> to vector<1x1xf32>
    %978 = vector.extract_strided_slice %917 {offsets = [2, 0], sizes = [1, 256], strides = [1, 1]} : vector<8x256xf32> to vector<1x256xf32>
    %979 = vector.broadcast %977 : vector<1x1xf32> to vector<1x256xf32>
    %980 = arith.mulf %979, %978 : vector<1x256xf32>
    %981 = arith.addf %976, %980 : vector<1x256xf32>
    %982 = vector.extract_strided_slice %907 {offsets = [0, 11], sizes = [1, 1], strides = [1, 1]} : vector<1x128xf32> to vector<1x1xf32>
    %983 = vector.extract_strided_slice %917 {offsets = [3, 0], sizes = [1, 256], strides = [1, 1]} : vector<8x256xf32> to vector<1x256xf32>
    %984 = vector.broadcast %982 : vector<1x1xf32> to vector<1x256xf32>
    %985 = arith.mulf %984, %983 : vector<1x256xf32>
    %986 = arith.addf %981, %985 : vector<1x256xf32>
    %987 = vector.extract_strided_slice %907 {offsets = [0, 12], sizes = [1, 1], strides = [1, 1]} : vector<1x128xf32> to vector<1x1xf32>
    %988 = vector.extract_strided_slice %917 {offsets = [4, 0], sizes = [1, 256], strides = [1, 1]} : vector<8x256xf32> to vector<1x256xf32>
    %989 = vector.broadcast %987 : vector<1x1xf32> to vector<1x256xf32>
    %990 = arith.mulf %989, %988 : vector<1x256xf32>
    %991 = arith.addf %986, %990 : vector<1x256xf32>
    %992 = vector.extract_strided_slice %907 {offsets = [0, 13], sizes = [1, 1], strides = [1, 1]} : vector<1x128xf32> to vector<1x1xf32>
    %993 = vector.extract_strided_slice %917 {offsets = [5, 0], sizes = [1, 256], strides = [1, 1]} : vector<8x256xf32> to vector<1x256xf32>
    %994 = vector.broadcast %992 : vector<1x1xf32> to vector<1x256xf32>
    %995 = arith.mulf %994, %993 : vector<1x256xf32>
    %996 = arith.addf %991, %995 : vector<1x256xf32>
    %997 = vector.extract_strided_slice %907 {offsets = [0, 14], sizes = [1, 1], strides = [1, 1]} : vector<1x128xf32> to vector<1x1xf32>
    %998 = vector.extract_strided_slice %917 {offsets = [6, 0], sizes = [1, 256], strides = [1, 1]} : vector<8x256xf32> to vector<1x256xf32>
    %999 = vector.broadcast %997 : vector<1x1xf32> to vector<1x256xf32>
    %1000 = arith.mulf %999, %998 : vector<1x256xf32>
    %1001 = arith.addf %996, %1000 : vector<1x256xf32>
    %1002 = vector.extract_strided_slice %907 {offsets = [0, 15], sizes = [1, 1], strides = [1, 1]} : vector<1x128xf32> to vector<1x1xf32>
    %1003 = vector.extract_strided_slice %917 {offsets = [7, 0], sizes = [1, 256], strides = [1, 1]} : vector<8x256xf32> to vector<1x256xf32>
    %1004 = vector.broadcast %1002 : vector<1x1xf32> to vector<1x256xf32>
    %1005 = arith.mulf %1004, %1003 : vector<1x256xf32>
    %1006 = arith.addf %1001, %1005 : vector<1x256xf32>
    %1007 = vector.extract_strided_slice %907 {offsets = [0, 16], sizes = [1, 1], strides = [1, 1]} : vector<1x128xf32> to vector<1x1xf32>
    %1008 = vector.extract_strided_slice %906 {offsets = [0, 0], sizes = [1, 256], strides = [1, 1]} : vector<8x256xf32> to vector<1x256xf32>
    %1009 = vector.broadcast %1007 : vector<1x1xf32> to vector<1x256xf32>
    %1010 = arith.mulf %1009, %1008 : vector<1x256xf32>
    %1011 = arith.addf %1006, %1010 : vector<1x256xf32>
    %1012 = vector.extract_strided_slice %907 {offsets = [0, 17], sizes = [1, 1], strides = [1, 1]} : vector<1x128xf32> to vector<1x1xf32>
    %1013 = vector.extract_strided_slice %906 {offsets = [1, 0], sizes = [1, 256], strides = [1, 1]} : vector<8x256xf32> to vector<1x256xf32>
    %1014 = vector.broadcast %1012 : vector<1x1xf32> to vector<1x256xf32>
    %1015 = arith.mulf %1014, %1013 : vector<1x256xf32>
    %1016 = arith.addf %1011, %1015 : vector<1x256xf32>
    %1017 = vector.extract_strided_slice %907 {offsets = [0, 18], sizes = [1, 1], strides = [1, 1]} : vector<1x128xf32> to vector<1x1xf32>
    %1018 = vector.extract_strided_slice %906 {offsets = [2, 0], sizes = [1, 256], strides = [1, 1]} : vector<8x256xf32> to vector<1x256xf32>
    %1019 = vector.broadcast %1017 : vector<1x1xf32> to vector<1x256xf32>
    %1020 = arith.mulf %1019, %1018 : vector<1x256xf32>
    %1021 = arith.addf %1016, %1020 : vector<1x256xf32>
    %1022 = vector.extract_strided_slice %907 {offsets = [0, 19], sizes = [1, 1], strides = [1, 1]} : vector<1x128xf32> to vector<1x1xf32>
    %1023 = vector.extract_strided_slice %906 {offsets = [3, 0], sizes = [1, 256], strides = [1, 1]} : vector<8x256xf32> to vector<1x256xf32>
    %1024 = vector.broadcast %1022 : vector<1x1xf32> to vector<1x256xf32>
    %1025 = arith.mulf %1024, %1023 : vector<1x256xf32>
    %1026 = arith.addf %1021, %1025 : vector<1x256xf32>
    %1027 = vector.extract_strided_slice %907 {offsets = [0, 20], sizes = [1, 1], strides = [1, 1]} : vector<1x128xf32> to vector<1x1xf32>
    %1028 = vector.extract_strided_slice %906 {offsets = [4, 0], sizes = [1, 256], strides = [1, 1]} : vector<8x256xf32> to vector<1x256xf32>
    %1029 = vector.broadcast %1027 : vector<1x1xf32> to vector<1x256xf32>
    %1030 = arith.mulf %1029, %1028 : vector<1x256xf32>
    %1031 = arith.addf %1026, %1030 : vector<1x256xf32>
    %1032 = vector.extract_strided_slice %907 {offsets = [0, 21], sizes = [1, 1], strides = [1, 1]} : vector<1x128xf32> to vector<1x1xf32>
    %1033 = vector.extract_strided_slice %906 {offsets = [5, 0], sizes = [1, 256], strides = [1, 1]} : vector<8x256xf32> to vector<1x256xf32>
    %1034 = vector.broadcast %1032 : vector<1x1xf32> to vector<1x256xf32>
    %1035 = arith.mulf %1034, %1033 : vector<1x256xf32>
    %1036 = arith.addf %1031, %1035 : vector<1x256xf32>
    %1037 = vector.extract_strided_slice %907 {offsets = [0, 22], sizes = [1, 1], strides = [1, 1]} : vector<1x128xf32> to vector<1x1xf32>
    %1038 = vector.extract_strided_slice %906 {offsets = [6, 0], sizes = [1, 256], strides = [1, 1]} : vector<8x256xf32> to vector<1x256xf32>
    %1039 = vector.broadcast %1037 : vector<1x1xf32> to vector<1x256xf32>
    %1040 = arith.mulf %1039, %1038 : vector<1x256xf32>
    %1041 = arith.addf %1036, %1040 : vector<1x256xf32>
    %1042 = vector.extract_strided_slice %907 {offsets = [0, 23], sizes = [1, 1], strides = [1, 1]} : vector<1x128xf32> to vector<1x1xf32>
    %1043 = vector.extract_strided_slice %906 {offsets = [7, 0], sizes = [1, 256], strides = [1, 1]} : vector<8x256xf32> to vector<1x256xf32>
    %1044 = vector.broadcast %1042 : vector<1x1xf32> to vector<1x256xf32>
    %1045 = arith.mulf %1044, %1043 : vector<1x256xf32>
    %1046 = arith.addf %1041, %1045 : vector<1x256xf32>
    %1047 = vector.extract_strided_slice %907 {offsets = [0, 24], sizes = [1, 1], strides = [1, 1]} : vector<1x128xf32> to vector<1x1xf32>
    %1048 = vector.extract_strided_slice %922 {offsets = [0, 0], sizes = [1, 256], strides = [1, 1]} : vector<8x256xf32> to vector<1x256xf32>
    %1049 = vector.broadcast %1047 : vector<1x1xf32> to vector<1x256xf32>
    %1050 = arith.mulf %1049, %1048 : vector<1x256xf32>
    %1051 = arith.addf %1046, %1050 : vector<1x256xf32>
    %1052 = vector.extract_strided_slice %907 {offsets = [0, 25], sizes = [1, 1], strides = [1, 1]} : vector<1x128xf32> to vector<1x1xf32>
    %1053 = vector.extract_strided_slice %922 {offsets = [1, 0], sizes = [1, 256], strides = [1, 1]} : vector<8x256xf32> to vector<1x256xf32>
    %1054 = vector.broadcast %1052 : vector<1x1xf32> to vector<1x256xf32>
    %1055 = arith.mulf %1054, %1053 : vector<1x256xf32>
    %1056 = arith.addf %1051, %1055 : vector<1x256xf32>
    %1057 = vector.extract_strided_slice %907 {offsets = [0, 26], sizes = [1, 1], strides = [1, 1]} : vector<1x128xf32> to vector<1x1xf32>
    %1058 = vector.extract_strided_slice %922 {offsets = [2, 0], sizes = [1, 256], strides = [1, 1]} : vector<8x256xf32> to vector<1x256xf32>
    %1059 = vector.broadcast %1057 : vector<1x1xf32> to vector<1x256xf32>
    %1060 = arith.mulf %1059, %1058 : vector<1x256xf32>
    %1061 = arith.addf %1056, %1060 : vector<1x256xf32>
    %1062 = vector.extract_strided_slice %907 {offsets = [0, 27], sizes = [1, 1], strides = [1, 1]} : vector<1x128xf32> to vector<1x1xf32>
    %1063 = vector.extract_strided_slice %922 {offsets = [3, 0], sizes = [1, 256], strides = [1, 1]} : vector<8x256xf32> to vector<1x256xf32>
    %1064 = vector.broadcast %1062 : vector<1x1xf32> to vector<1x256xf32>
    %1065 = arith.mulf %1064, %1063 : vector<1x256xf32>
    %1066 = arith.addf %1061, %1065 : vector<1x256xf32>
    %1067 = vector.extract_strided_slice %907 {offsets = [0, 28], sizes = [1, 1], strides = [1, 1]} : vector<1x128xf32> to vector<1x1xf32>
    %1068 = vector.extract_strided_slice %922 {offsets = [4, 0], sizes = [1, 256], strides = [1, 1]} : vector<8x256xf32> to vector<1x256xf32>
    %1069 = vector.broadcast %1067 : vector<1x1xf32> to vector<1x256xf32>
    %1070 = arith.mulf %1069, %1068 : vector<1x256xf32>
    %1071 = arith.addf %1066, %1070 : vector<1x256xf32>
    %1072 = vector.extract_strided_slice %907 {offsets = [0, 29], sizes = [1, 1], strides = [1, 1]} : vector<1x128xf32> to vector<1x1xf32>
    %1073 = vector.extract_strided_slice %922 {offsets = [5, 0], sizes = [1, 256], strides = [1, 1]} : vector<8x256xf32> to vector<1x256xf32>
    %1074 = vector.broadcast %1072 : vector<1x1xf32> to vector<1x256xf32>
    %1075 = arith.mulf %1074, %1073 : vector<1x256xf32>
    %1076 = arith.addf %1071, %1075 : vector<1x256xf32>
    %1077 = vector.extract_strided_slice %907 {offsets = [0, 30], sizes = [1, 1], strides = [1, 1]} : vector<1x128xf32> to vector<1x1xf32>
    %1078 = vector.extract_strided_slice %922 {offsets = [6, 0], sizes = [1, 256], strides = [1, 1]} : vector<8x256xf32> to vector<1x256xf32>
    %1079 = vector.broadcast %1077 : vector<1x1xf32> to vector<1x256xf32>
    %1080 = arith.mulf %1079, %1078 : vector<1x256xf32>
    %1081 = arith.addf %1076, %1080 : vector<1x256xf32>
    %1082 = vector.extract_strided_slice %907 {offsets = [0, 31], sizes = [1, 1], strides = [1, 1]} : vector<1x128xf32> to vector<1x1xf32>
    %1083 = vector.extract_strided_slice %922 {offsets = [7, 0], sizes = [1, 256], strides = [1, 1]} : vector<8x256xf32> to vector<1x256xf32>
    %1084 = vector.broadcast %1082 : vector<1x1xf32> to vector<1x256xf32>
    %1085 = arith.mulf %1084, %1083 : vector<1x256xf32>
    %1086 = arith.addf %1081, %1085 : vector<1x256xf32>
    %1087 = vector.extract_strided_slice %907 {offsets = [0, 32], sizes = [1, 1], strides = [1, 1]} : vector<1x128xf32> to vector<1x1xf32>
    %1088 = vector.extract_strided_slice %927 {offsets = [0, 0], sizes = [1, 256], strides = [1, 1]} : vector<8x256xf32> to vector<1x256xf32>
    %1089 = vector.broadcast %1087 : vector<1x1xf32> to vector<1x256xf32>
    %1090 = arith.mulf %1089, %1088 : vector<1x256xf32>
    %1091 = arith.addf %1086, %1090 : vector<1x256xf32>
    %1092 = vector.extract_strided_slice %907 {offsets = [0, 33], sizes = [1, 1], strides = [1, 1]} : vector<1x128xf32> to vector<1x1xf32>
    %1093 = vector.extract_strided_slice %927 {offsets = [1, 0], sizes = [1, 256], strides = [1, 1]} : vector<8x256xf32> to vector<1x256xf32>
    %1094 = vector.broadcast %1092 : vector<1x1xf32> to vector<1x256xf32>
    %1095 = arith.mulf %1094, %1093 : vector<1x256xf32>
    %1096 = arith.addf %1091, %1095 : vector<1x256xf32>
    %1097 = vector.extract_strided_slice %907 {offsets = [0, 34], sizes = [1, 1], strides = [1, 1]} : vector<1x128xf32> to vector<1x1xf32>
    %1098 = vector.extract_strided_slice %927 {offsets = [2, 0], sizes = [1, 256], strides = [1, 1]} : vector<8x256xf32> to vector<1x256xf32>
    %1099 = vector.broadcast %1097 : vector<1x1xf32> to vector<1x256xf32>
    %1100 = arith.mulf %1099, %1098 : vector<1x256xf32>
    %1101 = arith.addf %1096, %1100 : vector<1x256xf32>
    %1102 = vector.extract_strided_slice %907 {offsets = [0, 35], sizes = [1, 1], strides = [1, 1]} : vector<1x128xf32> to vector<1x1xf32>
    %1103 = vector.extract_strided_slice %927 {offsets = [3, 0], sizes = [1, 256], strides = [1, 1]} : vector<8x256xf32> to vector<1x256xf32>
    %1104 = vector.broadcast %1102 : vector<1x1xf32> to vector<1x256xf32>
    %1105 = arith.mulf %1104, %1103 : vector<1x256xf32>
    %1106 = arith.addf %1101, %1105 : vector<1x256xf32>
    %1107 = vector.extract_strided_slice %907 {offsets = [0, 36], sizes = [1, 1], strides = [1, 1]} : vector<1x128xf32> to vector<1x1xf32>
    %1108 = vector.extract_strided_slice %927 {offsets = [4, 0], sizes = [1, 256], strides = [1, 1]} : vector<8x256xf32> to vector<1x256xf32>
    %1109 = vector.broadcast %1107 : vector<1x1xf32> to vector<1x256xf32>
    %1110 = arith.mulf %1109, %1108 : vector<1x256xf32>
    %1111 = arith.addf %1106, %1110 : vector<1x256xf32>
    %1112 = vector.extract_strided_slice %907 {offsets = [0, 37], sizes = [1, 1], strides = [1, 1]} : vector<1x128xf32> to vector<1x1xf32>
    %1113 = vector.extract_strided_slice %927 {offsets = [5, 0], sizes = [1, 256], strides = [1, 1]} : vector<8x256xf32> to vector<1x256xf32>
    %1114 = vector.broadcast %1112 : vector<1x1xf32> to vector<1x256xf32>
    %1115 = arith.mulf %1114, %1113 : vector<1x256xf32>
    %1116 = arith.addf %1111, %1115 : vector<1x256xf32>
    %1117 = vector.extract_strided_slice %907 {offsets = [0, 38], sizes = [1, 1], strides = [1, 1]} : vector<1x128xf32> to vector<1x1xf32>
    %1118 = vector.extract_strided_slice %927 {offsets = [6, 0], sizes = [1, 256], strides = [1, 1]} : vector<8x256xf32> to vector<1x256xf32>
    %1119 = vector.broadcast %1117 : vector<1x1xf32> to vector<1x256xf32>
    %1120 = arith.mulf %1119, %1118 : vector<1x256xf32>
    %1121 = arith.addf %1116, %1120 : vector<1x256xf32>
    %1122 = vector.extract_strided_slice %907 {offsets = [0, 39], sizes = [1, 1], strides = [1, 1]} : vector<1x128xf32> to vector<1x1xf32>
    %1123 = vector.extract_strided_slice %927 {offsets = [7, 0], sizes = [1, 256], strides = [1, 1]} : vector<8x256xf32> to vector<1x256xf32>
    %1124 = vector.broadcast %1122 : vector<1x1xf32> to vector<1x256xf32>
    %1125 = arith.mulf %1124, %1123 : vector<1x256xf32>
    %1126 = arith.addf %1121, %1125 : vector<1x256xf32>
    %1127 = vector.extract_strided_slice %907 {offsets = [0, 40], sizes = [1, 1], strides = [1, 1]} : vector<1x128xf32> to vector<1x1xf32>
    %1128 = vector.broadcast %1127 : vector<1x1xf32> to vector<1x256xf32>
    %1129 = arith.addf %1126, %1128 : vector<1x256xf32>
    %c0_108 = arith.constant 0 : index
    %c0_109 = arith.constant 0 : index
    %1130 = vector.load %arg2[%c0_108, %c0_109] : memref<1x256xf32, #tpu.memory_space<vmem>>, vector<1x256xf32>
    tpu.vector_store %arg2[%c0_108, %c0_109], %1129 {strides = array<i32>} : memref<1x256xf32, #tpu.memory_space<vmem>>, vector<1x256xf32>,
    return
  }
}

</mosaic_0001>

<bundles_post_ra>
// kernel: tpu_custom_call.1
= control target key start
LH: loop header
LB: loop body
LE: loop exit
PB: predicated region body
PF: predicated region fallthrough
CT: control target
= control target key end

     0   :  { %7 = vsyncpa [#allocation3], 0  ;;  %s4909_s0 = inlined_call_operand.hbm [shape: f32[2,256], index: 0, kind: input, shape index: {}]   ;;  %s4910_s1 = inlined_call_operand.hbm [shape: f32[72,128], index: 1, kind: input, shape index: {}]   ;;  %s4911_s2 = inlined_call_operand.hbm [shape: f32[1,256], index: 2, kind: output, shape index: {}]  }
   0x1   :  { %8 = vsyncpa [#allocation6], 0 }
   0x2   :  { %9 = vsyncpa [#allocation4], 0  ;;  %s2978_s9 = smov [#allocation2]   ;;  %s2979_s11 = smov [#allocation5]  }
   0x3   :  { %s16_s10 = sshll.u32 %s2978_s9, 4  ;;  %s25_s12 = sshll.u32 %s2979_s11, 4  ;;  %s17_s10 = int_to_ptr.vmem [resolvable:$true] %s16_s10  ;;  %s26_s12 = int_to_ptr.vmem [resolvable:$true] %s25_s12 }
   0x4   :  { %s2920_s13 = scalar_lea.vmem %s17_s10, 64  ;;  %p2925_p1 = scmp.lt.s32.totalorder %s17_s10, %s17_s10 }
   0x5   :  { %p2921_p0 = scmp.ne.s32.totalorder %s17_s10, %s2920_s13  ;;  %p2926_p2 = scmp.lt.s32.totalorder %s2920_s13, %s2920_s13 }
   0x7   :  { %p2927_p3 = por %p2926_p2, %p2925_p1 }
   0x9   :  { %p2928_p4 = pnand %p2927_p3, %p2921_p0 }
   0xb   :  { %2931 = shalt.err (!%p2928_p4)
}
   0xc   :  { %19 = dma.hbm_to_vmem [thread:$0]  %s4909_s0, 64, %s17_s10, [#allocation3]  }
   0xd   :  { %s2940_s16 = scalar_lea.vmem %s26_s12, 1152  ;;  %p2945_p6 = scmp.lt.s32.totalorder %s26_s12, %s26_s12 }
   0xe   :  { %p2941_p5 = scmp.ne.s32.totalorder %s26_s12, %s2940_s16  ;;  %p2946_p7 = scmp.lt.s32.totalorder %s2940_s16, %s2940_s16 }
  0x10   :  { %p2947_p8 = por %p2946_p7, %p2945_p6 }
  0x12   :  { %p2948_p9 = pnand %p2947_p8, %p2941_p5 }
  0x14   :  { %2951 = shalt.err (!%p2948_p9)
}
  0x15   :  { %s2980_s17 = smov 128   ;;  %s2981_s18 = smov 8  }
  0x16   :  { %31 = dma.hbm_to_vmem [thread:$0]  %s4910_s1, 1152, %s26_s12, [#allocation6], %s2980_s17, %s2980_s17, %s2981_s18  }
  0x17   :  { %2972 = dma.done.wait [#allocation3], 64  }
  0x18   :  { %2973 = vsyncadd [#allocation3], 4294967232 }
  0x19   :  { %2974 = dma.done.wait [#allocation6], 1152  }
  0x1a   :  { %2975 = vsyncadd [#allocation6], 4294966144  ;;  %v4912_v0 = vlaneseq  ;;  %v4923_v1 = vmov 1   ;;  %v4939_v2 = vmov 0   ;;  %v38_v6 = vld [vmem:[#allocation2] sm:$0xf] }
  0x1b   :  { %2755 = vset.pattern.permute.xlu1 %v4923_v1  ;;  %2754 = vset.pattern.permute.xlu0 %v4939_v2  ;;  %s2984_s0 = smov 2   ;;  %s2985_s1 = smov 3   ;;  %v39_v9 = vld [vmem:[#allocation5] sm:$0xff]  ;;  %v4945_v10 = vmov 2   ;;  %v4933_v11 = vmov 3   ;;  %v4943_v12 = vmov 4  }
  0x1c   :  { %v3064_v3 = vshrl.u32 %v4912_v0, 7  ;;  %s2986_s21 = smov 1   ;;  %s2987_s22 = smov 127   ;;  %v4921_v13 = vmov 6   ;;  %v3106_v14 = vld [vmem:[#allocation5 + $0x10] sm:$0xff]  ;;  %v4941_v15 = vmov 5  }
  0x1d   :  { %s2988_s23 = smov 126   ;;  %s2989_s24 = smov 125   ;;  %v40_v16 = vld [vmem:[#allocation5 + $0x8] sm:$0xff]  ;;  %v4937_v17 = vmov 7   ;;  %v43_v19 = vld [vmem:[#allocation5 + $0x20] sm:$0xff]  ;;  %v4931_v23 = vmov 10  }
  0x1e   :  { %5075 = vst [vmem:[#allocation11_spill] sm:$0xff] %v3064_v3  ;;  %v3067_v4 = vsub.s32 0, %v3064_v3  ;;  %v3070_v5 = vsub.s32 2, %v3064_v3  ;;  %v3113_v18 = vsub.s32 1, %v3064_v3  ;;  %v1184_v21 = vsub.s32 3, %v3064_v3  ;;  %s3031_s25 = smov 4  }
  0x1f   :  { %v4927_v24 = vmov 13   ;;  %v4935_v25 = vmov 8   ;;  %v4919_v27 = vmov 9   ;;  %v4929_v29 = vmov 11   ;;  %s3032_s26 = smov 124   ;;  %s3039_s27 = smov [#allocation7]  }
  0x20   :  { %5076 = vst [vmem:[#allocation12_spill] sm:$0xff] %v3067_v4  ;;  %v3073_v7 = vrot.slane %v38_v6, %v3067_v4  ;;  %v3080_v8 = vrot.slane %v38_v6, %v3070_v5  ;;  %5077 = vst [vmem:[#allocation13_spill] sm:$0xff] %v3113_v18  ;;  %v3117_v20 = vrot.slane %v38_v6, %v3113_v18  ;;  %v4917_v31 = vmov 12   ;;  %s2670_s28 = sshll.u32 %s3039_s27, 4  ;;  %s2671_s28 = int_to_ptr.vmem [resolvable:$true] %s2670_s28 }
  0x21   :  { %v3125_v22 = vrot.slane %v38_v6, %v1184_v21  ;;  %v4925_v32 = vmov 14   ;;  %v4915_v34 = vmov 15   ;;  %v4913_v36 = vmov 33   ;;  %s2952_s29 = scalar_lea.vmem %s2671_s28, 32  ;;  %p2957_p11 = scmp.lt.s32.totalorder %s2671_s28, %s2671_s28 }
  0x22   :  { %141 = vrot.lane.b32.xlu1 %v3073_v7, %s2984_s0  ;;  %132 = vrot.lane.b32.xlu0 %v3073_v7, %s2985_s1  ;;  %v3214_v57 = vand.u32 127, %v4912_v0  ;;  %p2953_p10 = scmp.ne.s32.totalorder %s2671_s28, %s2952_s29  ;;  %p2958_p12 = scmp.lt.s32.totalorder %s2952_s29, %s2952_s29 }
  0x24   :  { %v50_v59 = vadd.s32 128, %v3214_v57  ;;  %v3226_v63 = vadd.s32 4294967293, %v3214_v57  ;;  %vm4951_vm0 = vcmp.lt.s32.totalorder %v3214_v57, 3  ;;  %vm145_vm1 = vcmp.lt.s32.totalorder %v3214_v57, 2  ;;  %p2959_p13 = por %p2958_p12, %p2957_p11 }
  0x25   :  { %vm154_vm3 = vcmp.lt.s32.totalorder %v3214_v57, 1  ;;  %vm163_vm5 = vcmp.lt.s32.totalorder %v3214_v57, 127  ;;  %vm172_vm11 = vcmp.lt.s32.totalorder %v3214_v57, 126  ;;  %vm181_vm15 = vcmp.lt.s32.totalorder %v3214_v57, 125 }
  0x26   :  { %143 = vrot.lane.b32.xlu1 %v3080_v8, %s2984_s0  ;;  %134 = vrot.lane.b32.xlu0 %v3080_v8, %s2985_s1  ;;  %v3223_v62 = vadd.s32 4294967168, %v50_v59  ;;  %5078 = vst [vmem:[#allocation14_spill] sm:$0xff] %v3226_v63  ;;  %vm4950_vm2 = vcmp.ge.s32.totalorder %v3226_v63, 0  ;;  %p2960_p0 = pnand %p2959_p13, %p2953_p10 }
  0x28   :  { %v3241_v21 = vadd.s32 4294967294, %v3223_v62  ;;  %v3244_v59 = vadd.s32 4294967293, %v3223_v62 }
  0x2a   :  { %152 = vrot.lane.b32.xlu1 %v3080_v8, %s2986_s21  ;;  %150 = vrot.lane.b32.xlu0 %v3073_v7, %s2986_s21  ;;  %5081 = vst [vmem:[#allocation17_spill] sm:$0xff] %v3241_v21  ;;  %5082 = vst [vmem:[#allocation18_spill] sm:$0xff] %v3244_v59  ;;  %vm4949_vm7 = vcmp.ge.s32.totalorder %v3244_v59, 0  ;;  %vm76_vm8 = vcmp.ge.s32.totalorder %v3241_v21, 0  ;;  %v1258_v59 = vrot.slane %v3117_v20, %v3113_v18 }
  0x2e   :  { %161 = vrot.lane.b32.xlu1 %v3080_v8, %s2987_s22  ;;  %159 = vrot.lane.b32.xlu0 %v3073_v7, %s2987_s22 }
  0x32   :  { %170 = vrot.lane.b32.xlu1 %v3080_v8, %s2988_s23  ;;  %168 = vrot.lane.b32.xlu0 %v3073_v7, %s2988_s23 }
  0x36   :  { %179 = vrot.lane.b32.xlu1 %v3080_v8, %s2989_s24  ;;  %177 = vrot.lane.b32.xlu0 %v3073_v7, %s2989_s24 }
  0x3a   :  { %194 = vperm.xlu1 %2755, %v39_v9   ;;  %188 = vperm.xlu0 %2754, %v39_v9  }
  0x3e   :  { %2756 = vset.pattern.permute.xlu1 %v4945_v10  ;;  %2757 = vset.pattern.permute.xlu0 %v4933_v11 }
  0x3f   :  { %202 = vperm.xlu1 %2756, %v39_v9   ;;  %210 = vperm.xlu0 %2757, %v39_v9  }
  0x43   :  { %2758 = vset.pattern.permute.xlu1 %v4943_v12  ;;  %2760 = vset.pattern.permute.xlu0 %v4921_v13 }
  0x44   :  { %218 = vperm.xlu1 %2758, %v39_v9   ;;  %234 = vperm.xlu0 %2760, %v39_v9  }
  0x48   :  { %2759 = vset.pattern.permute.xlu1 %v4941_v15  ;;  %416 = vperm.xlu0 %2760, %v3106_v14  }
  0x49   :  { %226 = vperm.xlu1 %2759, %v39_v9  }
  0x4c   :  { %2767 = vset.pattern.permute.xlu0 %v4923_v1 }
  0x4d   :  { %2761 = vset.pattern.permute.xlu1 %v4937_v17  ;;  %265 = vperm.xlu0 %2767, %v40_v16  }
  0x4e   :  { %242 = vperm.xlu1 %2761, %v39_v9   ;;  %v3232_v9 = vadd.s32 4294967294, %v3214_v57 }
  0x50   :  { %5079 = vst [vmem:[#allocation15_spill] sm:$0xff] %v3232_v9  ;;  %vm75_vm4 = vcmp.ge.s32.totalorder %v3232_v9, 0 }
  0x51   :  { %1236 = vperm.xlu0 %2767, %v43_v19  }
  0x52   :  { %2762 = vset.pattern.permute.xlu1 %v4939_v2 }
  0x53   :  { %251 = vperm.xlu1 %2762, %v40_v16   ;;  %v3235_v16 = vadd.s32 4294967295, %v3214_v57 }
  0x55   :  { %1196 = vrot.lane.b32.xlu0 %v3117_v20, %s2986_s21  ;;  %5080 = vst [vmem:[#allocation16_spill] sm:$0xff] %v3235_v16  ;;  %vm83_vm6 = vcmp.ge.s32.totalorder %v3235_v16, 0 }
  0x56   :  { %2770 = vset.pattern.permute.xlu0 %v4945_v10 }
  0x57   :  { %2763 = vset.pattern.permute.xlu1 %v4923_v1 }
  0x58   :  { %336 = vperm.xlu1 %2763, %v3106_v14  }
  0x59   :  { %1252 = vperm.xlu0 %2770, %v43_v19  }
  0x5c   :  { %2764 = vset.pattern.permute.xlu1 %v4945_v10 }
  0x5d   :  { %352 = vperm.xlu1 %2764, %v3106_v14   ;;  %1206 = vrot.lane.b32.xlu0 %v3125_v22, %s2987_s22 }
  0x5e   :  { %2773 = vset.pattern.permute.xlu0 %v4941_v15 }
  0x61   :  { %2765 = vset.pattern.permute.xlu1 %v4943_v12  ;;  %1212 = vrot.lane.b32.xlu0 %v3117_v20, %s2988_s23 }
  0x62   :  { %384 = vperm.xlu1 %2765, %v3106_v14  }
  0x65   :  { %1300 = vperm.xlu0 %2773, %v43_v19  }
  0x66   :  { %2766 = vset.pattern.permute.xlu1 %v4941_v15 }
  0x67   :  { %400 = vperm.xlu1 %2766, %v3106_v14  }
  0x69   :  { %2776 = vset.pattern.permute.xlu0 %v4931_v23 }
  0x6a   :  { %480 = vperm.xlu0 %2776, %v3106_v14  }
  0x6b   :  { %2768 = vset.pattern.permute.xlu1 %v4937_v17 }
  0x6c   :  { %432 = vperm.xlu1 %2768, %v3106_v14  }
  0x6e   :  { %2779 = vset.pattern.permute.xlu0 %v4927_v24 }
  0x6f   :  { %528 = vperm.xlu0 %2779, %v3106_v14  }
  0x70   :  { %2769 = vset.pattern.permute.xlu1 %v4939_v2 }
  0x71   :  { %1222 = vperm.xlu1 %2769, %v43_v19  }
  0x73   :  { %2804 = vset.pattern.permute.xlu0 %v4913_v36  ;;  %v3250_v36 = vadd.s32 4294967295, %v3223_v62 }
  0x75   :  { %1188 = vrot.lane.b32.xlu1 %v3117_v20, %s2984_s0  ;;  %5083 = vst [vmem:[#allocation19_spill] sm:$0xff] %v3250_v36  ;;  %vm84_vm9 = vcmp.ge.s32.totalorder %v3250_v36, 0 }
  0x76   :  { %2771 = vset.pattern.permute.xlu1 %v4933_v11 }
  0x79   :  { %1190 = vrot.lane.b32.xlu1 %v3125_v22, %s2984_s0 }
  0x7d   :  { %1198 = vrot.lane.b32.xlu1 %v3125_v22, %s2986_s21 }
  0x81   :  { %1268 = vperm.xlu1 %2771, %v43_v19  }
  0x85   :  { %1204 = vrot.lane.b32.xlu1 %v3117_v20, %s2987_s22 }
  0x86   :  { %2772 = vset.pattern.permute.xlu1 %v4943_v12 }
  0x89   :  { %1284 = vperm.xlu1 %2772, %v43_v19  }
  0x8d   :  { %1214 = vrot.lane.b32.xlu1 %v3125_v22, %s2988_s23 }
  0x8e   :  { %2774 = vset.pattern.permute.xlu1 %v4935_v25 }
  0x91   :  { %448 = vperm.xlu1 %2774, %v3106_v14  }
  0x94   :  { %v3159_v26 = vpop.permute.xlu1 %141  ;;  %v133_v38 = vpop.permute.xlu0 %132 }
  0x95   :  { %2775 = vset.pattern.permute.xlu1 %v4919_v27  ;;  %v3258_v27 = vadd.s32 1, %v3223_v62 }
  0x96   :  { %464 = vperm.xlu1 %2775, %v3106_v14  }
  0x97   :  { %5085 = vst [vmem:[#allocation21_spill] sm:$0xff] %v3258_v27  ;;  %vm94_vm12 = vcmp.lt.s32.totalorder %v3258_v27, 128 }
  0x98   :  { %v3163_v28 = vpop.permute.xlu1 %143  ;;  %v135_v40 = vpop.permute.xlu0 %134 }
  0x99   :  { %v138_v0 = vsel %vm4951_vm0, %v135_v40, %v133_v38  ;;  %v147_v13 = vsel %vm145_vm1, %v3163_v28, %v3159_v26 }
  0x9a   :  { %2777 = vset.pattern.permute.xlu1 %v4929_v29  ;;  %v139_v24 = vsel %vm4950_vm2, %v138_v0, 0.0  ;;  %v3275_v29 = vadd.s32 2, %v3223_v62  ;;  %v146_v0 = vsel %vm145_vm1, %v3159_v26, %v3163_v28  ;;  %v3301_v28 = vadd.s32 3, %v3214_v57 }
  0x9b   :  { %496 = vperm.xlu1 %2777, %v3106_v14  }
  0x9c   :  { %v3167_v30 = vpop.permute.xlu1 %152  ;;  %v151_v43 = vpop.permute.xlu0 %150  ;;  %5087 = vst [vmem:[#allocation23_spill] sm:$0xff] %v3275_v29  ;;  %5088 = vst [vmem:[#allocation24_spill] sm:$0xff] %v3301_v28  ;;  %vm102_vm14 = vcmp.lt.s32.totalorder %v3275_v29, 128 }
  0x9d   :  { %v156_v23 = vsel %vm154_vm3, %v3167_v30, %v151_v43  ;;  %v155_v15 = vsel %vm154_vm3, %v151_v43, %v3167_v30 }
  0x9e   :  { %v157_v26 = vsel %vm83_vm6, %v156_v23, 0.0  ;;  %v158_v3 = vsel %vm84_vm9, %v155_v15, 0.0 }
  0x9f   :  { %2778 = vset.pattern.permute.xlu1 %v4917_v31 }
  0xa0   :  { %512 = vperm.xlu1 %2778, %v3106_v14   ;;  %v3172_v33 = vpop.permute.xlu1 %161  ;;  %v3191_v45 = vpop.permute.xlu0 %159 }
  0xa4   :  { %2780 = vset.pattern.permute.xlu1 %v4925_v32  ;;  %v3177_v35 = vpop.permute.xlu1 %170  ;;  %v3195_v47 = vpop.permute.xlu0 %168  ;;  %v137_v32 = vsel %vm4951_vm0, %v133_v38, %v135_v40  ;;  %v148_v40 = vsel %vm75_vm4, %v147_v13, 0.0  ;;  %v149_v13 = vsel %vm76_vm8, %v146_v0, 0.0  ;;  %v164_v0 = vsel %vm163_vm5, %v3191_v45, %v3172_v33 }
  0xa5   :  { %544 = vperm.xlu1 %2780, %v3106_v14   ;;  %v140_v17 = vsel %vm4949_vm7, %v137_v32, 0.0  ;;  %v3309_v32 = vadd.s32 3, %v3223_v62  ;;  %vm5032_vm7 = vcmp.lt.s32.totalorder %v3301_v28, 128  ;;  %vm4952_vm0 = vcmask 1040384  }
  0xa7   :  { %5089 = vst [vmem:[#allocation25_spill] sm:$0xff] %v3309_v32  ;;  %vm5031_vm2 = vcmp.lt.s32.totalorder %v3309_v32, 128 }
  0xa8   :  { %v3181_v37 = vpop.permute.xlu1 %179  ;;  %v3199_v49 = vpop.permute.xlu0 %177 }
  0xa9   :  { %2781 = vset.pattern.permute.xlu1 %v4915_v34  ;;  %v3253_v34 = vadd.s32 1, %v3214_v57 }
  0xaa   :  { %560 = vperm.xlu1 %2781, %v3106_v14  }
  0xab   :  { %5084 = vst [vmem:[#allocation20_spill] sm:$0xff] %v3253_v34  ;;  %vm93_vm10 = vcmp.lt.s32.totalorder %v3253_v34, 128 }
  0xae   :  { %2782 = vset.pattern.permute.xlu1 %v4923_v1  ;;  %v3267_v1 = vadd.s32 2, %v3214_v57 }
  0xb0   :  { %5086 = vst [vmem:[#allocation22_spill] sm:$0xff] %v3267_v1  ;;  %vm101_vm13 = vcmp.lt.s32.totalorder %v3267_v1, 128 }
  0xb5   :  { %v3183_v39 = vpop.permute.xlu1 %194  ;;  %v189_v51 = vpop.permute.xlu0 %188 }
  0xb6   :  { %v197_v25 = vmul.f32 %v3183_v39, %v148_v40  ;;  %v191_v2 = vmul.f32 %v189_v51, %v139_v24  ;;  %v198_v23 = vmul.f32 %v3183_v39, %v149_v13  ;;  %v192_v43 = vmul.f32 %v189_v51, %v140_v17 }
  0xb7   :  { %v165_v17 = vsel %vm163_vm5, %v3172_v33, %v3191_v45 }
  0xba   :  { %v3185_v41 = vpop.permute.xlu1 %202  ;;  %v3205_v53 = vpop.permute.xlu0 %210 }
  0xbb   :  { %v205_v24 = vmul.f32 %v3185_v41, %v157_v26  ;;  %v199_v26 = vadd.f32 %v197_v25, %v191_v2  ;;  %v206_v39 = vmul.f32 %v3185_v41, %v158_v3  ;;  %v213_v15 = vmul.f32 %v3205_v53, %v3073_v7 }
  0xbc   :  { %v173_v3 = vsel %vm172_vm11, %v3195_v47, %v3177_v35  ;;  %v200_v41 = vadd.f32 %v198_v23, %v192_v43  ;;  %v1262_v7 = vrot.slane %v3125_v22, %v3113_v18 }
  0xbd   :  { %v207_v25 = vadd.f32 %v205_v24, %v199_v26  ;;  %v175_v43 = vsel %vm101_vm13, %v173_v3, 0.0 }
  0xbf   :  { %v3187_v42 = vpop.permute.xlu1 %218  ;;  %v3209_v55 = vpop.permute.xlu0 %234 }
  0xc3   :  { %v3216_v58 = vpop.permute.xlu0 %416 }
  0xc4   :  { %v3189_v44 = vpop.permute.xlu1 %226 }
  0xc8   :  { %v3221_v61 = vpop.permute.xlu0 %265 }
  0xc9   :  { %v3193_v46 = vpop.permute.xlu1 %242 }
  0xcc   :  { %v3237_v19 = vpop.permute.xlu0 %1236 }
  0xce   :  { %v3197_v48 = vpop.permute.xlu1 %251 }
  0xd0   :  { %v1197_v11 = vpop.permute.xlu0 %1196 }
  0xd3   :  { %v3201_v50 = vpop.permute.xlu1 %336 }
  0xd4   :  { %v3311_v30 = vpop.permute.xlu0 %1252 }
  0xd8   :  { %v3203_v52 = vpop.permute.xlu1 %352  ;;  %v1207_v13 = vpop.permute.xlu0 %1206 }
  0xdd   :  { %v3207_v54 = vpop.permute.xlu1 %384 }
  0xe2   :  { %v3211_v56 = vpop.permute.xlu1 %400 }
  0xe7   :  { %v3219_v60 = vpop.permute.xlu1 %432 }
  0xec   :  { %v3228_v6 = vpop.permute.xlu1 %1222 }
  0xf0   :  { %v1189_v31 = vpop.permute.xlu1 %1188 }
  0xf4   :  { %v1191_v38 = vpop.permute.xlu1 %1190 }
  0xf5   :  { %v1193_v2 = vsel %vm145_vm1, %v1191_v38, %v1189_v31 }
  0xf6   :  { %v1194_v51 = vsel %vm75_vm4, %v1193_v2, 0.0  ;;  %v229_v2 = vmul.f32 %v3189_v44, %v175_v43 }
  0xf8   :  { %v1199_v40 = vpop.permute.xlu1 %1198 }
  0xf9   :  { %v1200_v12 = vsel %vm154_vm3, %v1197_v11, %v1199_v40  ;;  %v1201_v10 = vsel %vm154_vm3, %v1199_v40, %v1197_v11  ;;  %v1192_v11 = vsel %vm145_vm1, %v1189_v31, %v1191_v38  ;;  %v174_v31 = vsel %vm172_vm11, %v3177_v35, %v3195_v47 }
  0xfa   :  { %v1202_v20 = vsel %vm83_vm6, %v1201_v10, 0.0  ;;  %v1203_v33 = vsel %vm84_vm9, %v1200_v12, 0.0  ;;  %v166_v10 = vsel %vm93_vm10, %v164_v0, 0.0  ;;  %v167_v12 = vsel %vm94_vm12, %v165_v17, 0.0 }
  0xfb   :  { %v1195_v38 = vsel %vm76_vm8, %v1192_v11, 0.0  ;;  %v208_v35 = vadd.f32 %v206_v39, %v200_v41  ;;  %v214_v47 = vmul.f32 %v3205_v53, %v3080_v8  ;;  %v1242_v24 = vrot.slane %v1202_v20, %v3067_v4 }
  0xfc   :  { %v1269_v45 = vpop.permute.xlu1 %1268  ;;  %v1246_v22 = vrot.slane %v1203_v33, %v3067_v4  ;;  %v215_v40 = vadd.f32 %v213_v15, %v207_v25  ;;  %v221_v23 = vmul.f32 %v3187_v42, %v166_v10  ;;  %v176_v0 = vsel %vm102_vm14, %v174_v31, 0.0 }
  0xfd   :  { %v1228_v17 = vrot.slane %v1194_v51, %v3067_v4  ;;  %v1232_v39 = vrot.slane %v1195_v38, %v3067_v4  ;;  %v182_v11 = vsel %vm181_vm15, %v3199_v49, %v3181_v37  ;;  %v183_v20 = vsel %vm181_vm15, %v3181_v37, %v3199_v49 }
  0xfe   :  { %v216_v33 = vadd.f32 %v214_v47, %v208_v35  ;;  %v1247_v3 = vmul.f32 %v1242_v24, %v3237_v19  ;;  %v1248_v31 = vmul.f32 %v1246_v22, %v3237_v19  ;;  %v222_v41 = vmul.f32 %v3187_v42, %v167_v12 }
  0xff   :  { %v223_v10 = vadd.f32 %v221_v23, %v215_v40  ;;  %v1233_v38 = vmul.f32 %v1228_v17, %v3228_v6  ;;  %v184_v37 = vsel %vm5032_vm7, %v182_v11, 0.0  ;;  %v230_v49 = vmul.f32 %v3189_v44, %v176_v0  ;;  %v1213_v40 = vpop.permute.xlu0 %1212 }
 0x100   :  { %v1205_v26 = vpop.permute.xlu1 %1204  ;;  %v1263_v35 = vmul.f32 %v1258_v59, %v3311_v30  ;;  %v224_v47 = vadd.f32 %v222_v41, %v216_v33  ;;  %v185_v24 = vsel %vm5031_vm2, %v183_v20, 0.0  ;;  %v237_v22 = vmul.f32 %v3209_v55, %v184_v37 }
 0x101   :  { %v1208_v8 = vsel %vm163_vm5, %v1205_v26, %v1207_v13  ;;  %v1209_v53 = vsel %vm163_vm5, %v1207_v13, %v1205_v26  ;;  %v1234_v13 = vmul.f32 %v1232_v39, %v3228_v6  ;;  %v231_v42 = vadd.f32 %v229_v2, %v223_v10 }
 0x102   :  { %v1210_v25 = vsel %vm93_vm10, %v1208_v8, 0.0  ;;  %v1211_v15 = vsel %vm94_vm12, %v1209_v53, 0.0  ;;  %v3005_v8 = vmov 1.0   ;;  %v1249_v19 = vadd.f32 %v1247_v3, %v1233_v38 }
 0x103   :  { %v1274_v43 = vrot.slane %v1210_v25, %v3067_v4  ;;  %v1278_v26 = vrot.slane %v1211_v15, %v3067_v4  ;;  %2681 = vmatprep.subr.msk.mxu0 %vm4952_vm0, %v3005_v8  ;;  %v1250_v12 = vadd.f32 %v1248_v31, %v1234_v13  ;;  %v1264_v6 = vmul.f32 %v1262_v7, %v3311_v30  ;;  %v1301_v41 = vpop.permute.xlu0 %1300 }
 0x104   :  { %v1285_v51 = vpop.permute.xlu1 %1284  ;;  %2682 = vmatpush1.msk.msra.mxu0 %vm4952_vm0, %v3005_v8  ;;  %v232_v53 = vadd.f32 %v230_v49, %v224_v47  ;;  %v239_v59 = vadd.f32 %v237_v22, %v231_v42  ;;  %v1265_v11 = vadd.f32 %v1263_v35, %v1249_v19  ;;  %v238_v15 = vmul.f32 %v3209_v55, %v185_v24 }
 0x105   :  { %v1279_v17 = vmul.f32 %v1274_v43, %v1269_v45  ;;  %v1280_v39 = vmul.f32 %v1278_v26, %v1269_v45  ;;  %v1266_v2 = vadd.f32 %v1264_v6, %v1250_v12  ;;  %v3006_v55 = vmov 0.0  }
 0x106   :  { %v240_v10 = vadd.f32 %v238_v15, %v232_v53  ;;  %v245_v38 = vadd.f32 %v3193_v46, %v239_v59  ;;  %1411 = vmatprep.mubr.f32.mxu0 %v3006_v55  ;;  %v5092_v53 = vmov 5   ;;  %v5093_v59 = vmov 0  }
 0x107   :  { %v1281_v20 = vadd.f32 %v1279_v17, %v1265_v11  ;;  %v1282_v33 = vadd.f32 %v1280_v39, %v1266_v2  ;;  %v5090_v17 = vmov 2   ;;  %v3009_v39 = vmov 42  }
 0x108   :  { %v1215_v23 = vpop.permute.xlu1 %1214  ;;  %v246_v37 = vadd.f32 %v3193_v46, %v240_v10  ;;  %v247_v49 = vmax.f32 %v245_v38, 0.0  ;;  %v5095_v11 = vmov 8   ;;  %v5096_v2 = vmov 3  }
 0x109   :  { %v1216_v44 = vsel %vm172_vm11, %v1213_v40, %v1215_v23  ;;  %v1217_v0 = vsel %vm172_vm11, %v1215_v23, %v1213_v40  ;;  %v4953_v23 = vmov 39   ;;  %v5099_v15 = vmov 13  }
 0x10a   :  { %v1218_v30 = vsel %vm101_vm13, %v1216_v44, 0.0  ;;  %v1219_v7 = vsel %vm102_vm14, %v1217_v0, 0.0  ;;  %v257_v12 = vrot.slane %v247_v49, %v3067_v4  ;;  %v5091_v44 = vmov 4  }
 0x10b   :  { %v1290_v25 = vrot.slane %v1218_v30, %v3067_v4  ;;  %v1294_v45 = vrot.slane %v1219_v7, %v3067_v4  ;;  %v3010_v0 = vmov 45   ;;  %v5094_v30 = vmov 7   ;;  %v3486_v7 = vld [vmem:[#allocation5 + $0x30] sm:$0xff] }
 0x10c   :  { %v262_v35 = vmul.f32 %v257_v12, %v3197_v48  ;;  %v4979_v10 = vmov 19   ;;  %v4971_v55 = vmov 23   ;;  %vm1339_vm0 = vcmask 334848  }
 0x10d   :  { %v1295_v3 = vmul.f32 %v1290_v25, %v1285_v51  ;;  %v1296_v31 = vmul.f32 %v1294_v45, %v1285_v51  ;;  %v248_v51 = vmax.f32 %v246_v37, 0.0  ;;  %v5097_v25 = vmov 10  }
 0x10e   :  { %v268_v47 = vadd.f32 %v3221_v61, %v262_v35  ;;  %v5098_v45 = vmov 11  }
 0x10f   :  { %v1297_v13 = vadd.f32 %v1295_v3, %v1281_v20  ;;  %v1298_v43 = vadd.f32 %v1296_v31, %v1282_v33  ;;  %v261_v46 = vrot.slane %v248_v51, %v3067_v4  ;;  %v3500_v20 = vpop.permute.xlu1 %448  ;;  %v5100_v33 = vmov 14  }
 0x110   :  { %v3445_v22 = vmax.f32 %v268_v47, 0.0  ;;  %v4983_v31 = vmov 17  }
 0x111   :  { %v1303_v26 = vadd.f32 %v1301_v41, %v1297_v13  ;;  %v1304_v8 = vadd.f32 %v1301_v41, %v1298_v43  ;;  %v263_v6 = vmul.f32 %v261_v46, %v3197_v48  ;;  %v3461_v48 = vld [vmem:[#allocation5 + $0x18] sm:$0xff]  ;;  %v4977_v13 = vmov 20  }
 0x113   :  { %v3419_v42 = vmax.f32 %v1303_v26, 0.0  ;;  %v3421_v19 = vmax.f32 %v1304_v8, 0.0  ;;  %v269_v24 = vadd.f32 %v3221_v61, %v263_v6  ;;  %v4955_v61 = vmov 36   ;;  %v3504_v3 = vpop.permute.xlu1 %464  ;;  %v3520_v26 = vpop.permute.xlu0 %480 }
 0x114   :  { %v4973_v8 = vmov 22   ;;  %v4967_v6 = vmov 25  }
 0x115   :  { %1333 = vrot.lane.b32.xlu0 %v3421_v19, %s2988_s23  ;;  %1331 = vrot.lane.b32.xlu1 %v3419_v42, %s2988_s23  ;;  %v3451_v40 = vmax.f32 %v269_v24, 0.0 }
 0x117   :  { %v3509_v41 = vpop.permute.xlu1 %496  ;;  %v3526_v49 = vpop.permute.xlu0 %528 }
 0x119   :  { %1325 = vrot.lane.b32.xlu0 %v3421_v19, %s2987_s22  ;;  %1323 = vrot.lane.b32.xlu1 %v3419_v42, %s2987_s22 }
 0x11b   :  { %v3514_v38 = vpop.permute.xlu1 %512 }
 0x11d   :  { %1317 = vrot.lane.b32.xlu0 %v3421_v19, %s2986_s21  ;;  %1315 = vrot.lane.b32.xlu1 %v3419_v42, %s2986_s21 }
 0x120   :  { %v3518_v43 = vpop.permute.xlu1 %544 }
 0x121   :  { %1309 = vrot.lane.b32.xlu0 %v3421_v19, %s2984_s0  ;;  %1307 = vrot.lane.b32.xlu1 %v3419_v42, %s2984_s0 }
 0x125   :  { %284 = vrot.lane.b32.xlu0 %v3445_v22, %s2986_s21  ;;  %272 = vrot.lane.b32.xlu1 %v3445_v22, %s2984_s0  ;;  %v3524_v37 = vpop.permute.xlu1 %560 }
 0x129   :  { %296 = vrot.lane.b32.xlu0 %v3445_v22, %s2987_s22  ;;  %274 = vrot.lane.b32.xlu1 %v3451_v40, %s2984_s0 }
 0x12d   :  { %308 = vrot.lane.b32.xlu0 %v3445_v22, %s2988_s23  ;;  %286 = vrot.lane.b32.xlu1 %v3451_v40, %s2986_s21 }
 0x131   :  { %1031 = vperm.xlu0 %2804, %v3461_v48   ;;  %298 = vrot.lane.b32.xlu1 %v3451_v40, %s2987_s22 }
 0x135   :  { %2807 = vset.pattern.permute.xlu0 %v4955_v61  ;;  %310 = vrot.lane.b32.xlu1 %v3451_v40, %s2988_s23 }
 0x136   :  { %1063 = vperm.xlu0 %2807, %v3461_v48  }
 0x139   :  { %657 = vperm.xlu1 %2782, %v3461_v48  }
 0x13a   :  { %2810 = vset.pattern.permute.xlu0 %v4953_v23  ;;  %v4959_v23 = vmov 31  }
 0x13b   :  { %1101 = vperm.xlu0 %2810, %v3461_v48  }
 0x13d   :  { %2783 = vset.pattern.permute.xlu1 %v5090_v17 }
 0x13e   :  { %671 = vperm.xlu1 %2783, %v3461_v48  }
 0x13f   :  { %2813 = vset.pattern.permute.xlu0 %v3009_v39 }
 0x140   :  { %1135 = vperm.xlu0 %2813, %v3461_v48  }
 0x142   :  { %2784 = vset.pattern.permute.xlu1 %v5091_v44 }
 0x143   :  { %695 = vperm.xlu1 %2784, %v3461_v48  }
 0x144   :  { %2816 = vset.pattern.permute.xlu0 %v3010_v0 }
 0x145   :  { %1171 = vperm.xlu0 %2816, %v3461_v48  }
 0x147   :  { %2785 = vset.pattern.permute.xlu1 %v5092_v53 }
 0x148   :  { %707 = vperm.xlu1 %2785, %v3461_v48  }
 0x149   :  { %2817 = vset.pattern.permute.xlu0 %v5093_v59 }
 0x14a   :  { %322 = vperm.xlu0 %2817, %v3106_v14  }
 0x14c   :  { %2786 = vset.pattern.permute.xlu1 %v5094_v30 }
 0x14d   :  { %729 = vperm.xlu1 %2786, %v3461_v48  }
 0x14e   :  { %651 = vperm.xlu0 %2817, %v3461_v48  }
 0x151   :  { %2787 = vset.pattern.permute.xlu1 %v5095_v11 }
 0x152   :  { %1454 = vperm.xlu0 %2817, %v3486_v7   ;;  %741 = vperm.xlu1 %2787, %v3461_v48  }
 0x156   :  { %2818 = vset.pattern.permute.xlu0 %v5096_v2  ;;  %2788 = vset.pattern.permute.xlu1 %v5097_v25 }
 0x157   :  { %368 = vperm.xlu0 %2818, %v3106_v14   ;;  %765 = vperm.xlu1 %2788, %v3461_v48   ;;  %v4985_v14 = vmov 16  }
 0x15b   :  { %2789 = vset.pattern.permute.xlu1 %v5098_v45  ;;  %683 = vperm.xlu0 %2818, %v3461_v48  }
 0x15c   :  { %773 = vperm.xlu1 %2789, %v3461_v48  }
 0x160   :  { %2790 = vset.pattern.permute.xlu1 %v5099_v15 }
 0x161   :  { %799 = vperm.xlu1 %2790, %v3461_v48  }
 0x165   :  { %2791 = vset.pattern.permute.xlu1 %v5100_v33 }
 0x166   :  { %811 = vperm.xlu1 %2791, %v3461_v48  }
 0x16a   :  { %2792 = vset.pattern.permute.xlu1 %v4985_v14 }
 0x16b   :  { %831 = vperm.xlu1 %2792, %v3461_v48  }
 0x16f   :  { %2793 = vset.pattern.permute.xlu1 %v4983_v31  ;;  %v3028_v31 = vmov 41  }
 0x170   :  { %845 = vperm.xlu1 %2793, %v3461_v48  }
 0x174   :  { %2794 = vset.pattern.permute.xlu1 %v4979_v10 }
 0x175   :  { %869 = vperm.xlu1 %2794, %v3461_v48  }
 0x179   :  { %2795 = vset.pattern.permute.xlu1 %v4977_v13  ;;  %v4991_v13 = vmov 40  }
 0x17a   :  { %881 = vperm.xlu1 %2795, %v3461_v48  }
 0x17e   :  { %2796 = vset.pattern.permute.xlu1 %v4973_v8 }
 0x17f   :  { %903 = vperm.xlu1 %2796, %v3461_v48  }
 0x183   :  { %2797 = vset.pattern.permute.xlu1 %v4971_v55  ;;  %v4987_v55 = vmov 38  }
 0x184   :  { %915 = vperm.xlu1 %2797, %v3461_v48  }
 0x187   :  { %v1332_v51 = vpop.permute.xlu1 %1331  ;;  %v1334_v12 = vpop.permute.xlu0 %1333 }
 0x188   :  { %v1336_v46 = vsel %vm172_vm11, %v1334_v12, %v1332_v51  ;;  %v1335_v35 = vsel %vm172_vm11, %v1332_v51, %v1334_v12  ;;  %2798 = vset.pattern.permute.xlu1 %v4967_v6  ;;  %v4965_v51 = vmov 26  }
 0x189   :  { %2683 = vmatprep.subr.msk.mxu0 %vm102_vm14, %v1336_v46  ;;  %939 = vperm.xlu1 %2798, %v3461_v48  }
 0x18a   :  { %2684 = vmatpush1.msk.msra.mxu0 %vm101_vm13, %v1335_v35 }
 0x18b   :  { %v1324_v47 = vpop.permute.xlu1 %1323  ;;  %v1326_v24 = vpop.permute.xlu0 %1325 }
 0x18c   :  { %v1328_v39 = vsel %vm163_vm5, %v1326_v24, %v1324_v47  ;;  %v1327_v0 = vsel %vm163_vm5, %v1324_v47, %v1326_v24  ;;  %v4961_v24 = vmov 28  }
 0x18d   :  { %2685 = vmatprep.subr.msk.mxu0 %vm94_vm12, %v1328_v39  ;;  %2799 = vset.pattern.permute.xlu1 %v4965_v51  ;;  %v4981_v51 = vmov 37  }
 0x18e   :  { %2686 = vmatpush1.msk.msra.mxu0 %vm93_vm10, %v1327_v0  ;;  %947 = vperm.xlu1 %2799, %v3461_v48  }
 0x18f   :  { %v1316_v12 = vpop.permute.xlu1 %1315  ;;  %1373 = vmatprep.subr.mxu0 %v3421_v19  ;;  %v1318_v46 = vpop.permute.xlu0 %1317 }
 0x190   :  { %1374 = vmatpush1.msra.mxu0 %v3419_v42  ;;  %v1319_v35 = vsel %vm154_vm3, %v1316_v12, %v1318_v46  ;;  %v1320_v47 = vsel %vm154_vm3, %v1318_v46, %v1316_v12  ;;  %v44_v12 = vld [vmem:[#allocation5 + $0x28] sm:$0xff]  ;;  %v4957_v46 = vmov 29  }
 0x191   :  { %2687 = vmatprep.subr.msk.mxu0 %vm84_vm9, %v1319_v35 }
 0x192   :  { %2688 = vmatpush1.msk.msra.mxu0 %vm83_vm6, %v1320_v47  ;;  %2800 = vset.pattern.permute.xlu1 %v4961_v24 }
 0x193   :  { %v1308_v39 = vpop.permute.xlu1 %1307  ;;  %v1310_v19 = vpop.permute.xlu0 %1309  ;;  %973 = vperm.xlu1 %2800, %v3461_v48  }
 0x194   :  { %v1311_v42 = vsel %vm145_vm1, %v1308_v39, %v1310_v19  ;;  %v1312_v0 = vsel %vm145_vm1, %v1310_v19, %v1308_v39  ;;  %v4963_v19 = vmov 32  }
 0x195   :  { %2689 = vmatprep.subr.msk.mxu0 %vm76_vm8, %v1311_v42 }
 0x196   :  { %2690 = vmatpush1.msk.msra.mxu0 %vm75_vm4, %v1312_v0 }
 0x197   :  { %2691 = vmatmul.mubr.msk.f32.vlgmr.msra.gmra.mxu0 %vm1339_vm0, %v44_v12  ;;  %2801 = vset.pattern.permute.xlu1 %v4957_v46  ;;  %v273_v35 = vpop.permute.xlu1 %272  ;;  %v285_v47 = vpop.permute.xlu0 %284  ;;  %v4969_v12 = vmov 34   ;;  %vm571_vm0 = vcmp.lt.s32.totalorder %v3214_v57, 4 }
 0x198   :  { %985 = vperm.xlu1 %2801, %v3461_v48  }
 0x19b   :  { %v275_v39 = vpop.permute.xlu1 %274  ;;  %v3575_v42 = vpop.permute.xlu0 %296 }
 0x19c   :  { %2802 = vset.pattern.permute.xlu1 %v4959_v23  ;;  %v4975_v23 = vmov 35  }
 0x19d   :  { %1005 = vperm.xlu1 %2802, %v3461_v48  }
 0x19f   :  { %v287_v0 = vpop.permute.xlu1 %286  ;;  %v3580_v61 = vpop.permute.xlu0 %308 }
 0x1a1   :  { %2803 = vset.pattern.permute.xlu1 %v4963_v19 }
 0x1a2   :  { %1019 = vperm.xlu1 %2803, %v3461_v48  }
 0x1a3   :  { %v3582_v46 = vpop.permute.xlu1 %298 }
 0x1a6   :  { %2805 = vset.pattern.permute.xlu1 %v4969_v12 }
 0x1a7   :  { %1043 = vperm.xlu1 %2805, %v3461_v48   ;;  %v3588_v19 = vpop.permute.xlu1 %310 }
 0x1ab   :  { %2806 = vset.pattern.permute.xlu1 %v4975_v23 }
 0x1ac   :  { %v3585_v24 = vpop.permute.xlu0 %1031  ;;  %1055 = vperm.xlu1 %2806, %v3461_v48  }
 0x1ad   :  { %5101 = vst [vmem:[#allocation26_spill] sm:$0xff] %v3585_v24 }
 0x1b0   :  { %2808 = vset.pattern.permute.xlu1 %v4981_v51 }
 0x1b1   :  { %v3591_v6 = vpop.permute.xlu0 %1063  ;;  %1077 = vperm.xlu1 %2808, %v3461_v48  }
 0x1b2   :  { %5102 = vst [vmem:[#allocation27_spill] sm:$0xff] %v3591_v6 }
 0x1b4   :  { %v3594_v12 = vpop.permute.xlu1 %657 }
 0x1b5   :  { %5103 = vst [vmem:[#allocation28_spill] sm:$0xff] %v3594_v12  ;;  %2809 = vset.pattern.permute.xlu1 %v4987_v55  ;;  %v276_v55 = vsel %vm145_vm1, %v273_v35, %v275_v39  ;;  %v5113_v12 = vmov 1  }
 0x1b6   :  { %v3597_v8 = vpop.permute.xlu0 %1101  ;;  %1089 = vperm.xlu1 %2809, %v3461_v48  }
 0x1b7   :  { %5104 = vst [vmem:[#allocation29_spill] sm:$0xff] %v3597_v8  ;;  %v277_v8 = vsel %vm145_vm1, %v275_v39, %v273_v35 }
 0x1b9   :  { %v3600_v23 = vpop.permute.xlu1 %671 }
 0x1ba   :  { %5105 = vst [vmem:[#allocation30_spill] sm:$0xff] %v3600_v23  ;;  %2811 = vset.pattern.permute.xlu1 %v4991_v13  ;;  %v3029_v13 = vmov 43  }
 0x1bb   :  { %v3603_v10 = vpop.permute.xlu0 %1135  ;;  %1113 = vperm.xlu1 %2811, %v3461_v48  }
 0x1bc   :  { %5106 = vst [vmem:[#allocation31_spill] sm:$0xff] %v3603_v10 }
 0x1be   :  { %v3606_v51 = vpop.permute.xlu1 %695 }
 0x1bf   :  { %5107 = vst [vmem:[#allocation32_spill] sm:$0xff] %v3606_v51  ;;  %2812 = vset.pattern.permute.xlu1 %v3028_v31  ;;  %v282_v31 = vsel %vm75_vm4, %v277_v8, 0.0  ;;  %v288_v8 = vsel %vm154_vm3, %v285_v47, %v287_v0 }
 0x1c0   :  { %v3608_v14 = vpop.permute.xlu0 %1171  ;;  %1121 = vperm.xlu1 %2812, %v3461_v48   ;;  %v342_v24 = vrot.slane %v282_v31, %v3113_v18  ;;  %v328_v28 = vrot.slane %v282_v31, %v3067_v4  ;;  %v358_v51 = vrot.slane %v282_v31, %v3070_v5 }
 0x1c1   :  { %5108 = vst [vmem:[#allocation33_spill] sm:$0xff] %v3608_v14  ;;  %v283_v14 = vsel %vm76_vm8, %v276_v55, 0.0  ;;  %v289_v55 = vsel %vm154_vm3, %v287_v0, %v285_v47 }
 0x1c2   :  { %v346_v32 = vrot.slane %v283_v14, %v3113_v18  ;;  %v332_v35 = vrot.slane %v283_v14, %v3067_v4  ;;  %v362_v63 = vrot.slane %v283_v14, %v3070_v5  ;;  %v347_v23 = vmul.f32 %v342_v24, %v3201_v50 }
 0x1c3   :  { %v3615_v6 = vpop.permute.xlu1 %707  ;;  %v363_v14 = vmul.f32 %v358_v51, %v3203_v52  ;;  %v422_v51 = vrot.slane %v3445_v22, %v3067_v4 }
 0x1c4   :  { %5109 = vst [vmem:[#allocation34_spill] sm:$0xff] %v3615_v6  ;;  %2814 = vset.pattern.permute.xlu1 %v3029_v13  ;;  %v3030_v6 = vmov 44   ;;  %v364_v24 = vmul.f32 %v362_v63, %v3203_v52  ;;  %v300_v52 = vsel %vm163_vm5, %v3575_v42, %v3582_v46  ;;  %v301_v63 = vsel %vm163_vm5, %v3582_v46, %v3575_v42 }
 0x1c5   :  { %v323_v10 = vpop.permute.xlu0 %322  ;;  %1147 = vperm.xlu1 %2814, %v3461_v48   ;;  %v306_v46 = vsel %vm93_vm10, %v300_v52, 0.0  ;;  %v307_v42 = vsel %vm94_vm12, %v301_v63, 0.0 }
 0x1c6   :  { %v333_v21 = vmul.f32 %v328_v28, %v323_v10  ;;  %v334_v9 = vmul.f32 %v332_v35, %v323_v10  ;;  %v470_v52 = vrot.slane %v306_v46, %v3067_v4  ;;  %v474_v63 = vrot.slane %v307_v42, %v3067_v4 }
 0x1c8   :  { %v3628_v13 = vpop.permute.xlu1 %729  ;;  %v349_v28 = vadd.f32 %v347_v23, %v333_v21 }
 0x1c9   :  { %v3626_v39 = vpop.permute.xlu0 %651  ;;  %5111 = vst [vmem:[#allocation36_spill] sm:$0xff] %v3628_v13  ;;  %2815 = vset.pattern.permute.xlu1 %v3030_v6  ;;  %v348_v13 = vmul.f32 %v346_v32, %v3201_v50  ;;  %v294_v6 = vsel %vm83_vm6, %v289_v55, 0.0 }
 0x1ca   :  { %5110 = vst [vmem:[#allocation35_spill] sm:$0xff] %v3626_v39  ;;  %1159 = vperm.xlu1 %2815, %v3461_v48   ;;  %v295_v39 = vsel %vm84_vm9, %v288_v8, 0.0  ;;  %v390_v50 = vrot.slane %v294_v6, %v3113_v18  ;;  %v374_v0 = vrot.slane %v294_v6, %v3067_v4  ;;  %v406_v35 = vrot.slane %v294_v6, %v3070_v5 }
 0x1cb   :  { %v350_v10 = vadd.f32 %v348_v13, %v334_v9  ;;  %v394_v32 = vrot.slane %v295_v39, %v3113_v18  ;;  %v378_v31 = vrot.slane %v295_v39, %v3067_v4  ;;  %v410_v8 = vrot.slane %v295_v39, %v3070_v5 }
 0x1cc   :  { %v365_v9 = vadd.f32 %v363_v14, %v349_v28  ;;  %v426_v39 = vrot.slane %v3451_v40, %v3067_v4  ;;  %v395_v6 = vmul.f32 %v390_v50, %v3207_v54  ;;  %v438_v50 = vrot.slane %v3445_v22, %v3113_v18 }
 0x1cd   :  { %v3639_v2 = vpop.permute.xlu0 %1454  ;;  %v3646_v47 = vpop.permute.xlu1 %741  ;;  %v366_v23 = vadd.f32 %v364_v24, %v350_v10  ;;  %v396_v28 = vmul.f32 %v394_v32, %v3207_v54  ;;  %v442_v54 = vrot.slane %v3451_v40, %v3113_v18  ;;  %v454_v32 = vrot.slane %v3445_v22, %v3070_v5 }
 0x1ce   :  { %5112 = vst [vmem:[#allocation37_spill] sm:$0xff] %v3639_v2  ;;  %2819 = vset.pattern.permute.xlu1 %v5113_v12  ;;  %v312_v22 = vsel %vm172_vm11, %v3580_v61, %v3588_v19 }
 0x1d2   :  { %v369_v21 = vpop.permute.xlu0 %368  ;;  %v3670_v24 = vpop.permute.xlu1 %765 }
 0x1d3   :  { %v379_v13 = vmul.f32 %v374_v0, %v369_v21  ;;  %v380_v55 = vmul.f32 %v378_v31, %v369_v21  ;;  %v411_v0 = vmul.f32 %v406_v35, %v3211_v56  ;;  %v412_v31 = vmul.f32 %v410_v8, %v3211_v56 }
 0x1d4   :  { %v458_v56 = vrot.slane %v3451_v40, %v3070_v5  ;;  %v427_v35 = vmul.f32 %v422_v51, %v3216_v58  ;;  %v428_v8 = vmul.f32 %v426_v39, %v3216_v58  ;;  %v313_v58 = vsel %vm172_vm11, %v3588_v19, %v3580_v61 }
 0x1d5   :  { %v381_v10 = vadd.f32 %v379_v13, %v365_v9  ;;  %v382_v14 = vadd.f32 %v380_v55, %v366_v23  ;;  %v443_v13 = vmul.f32 %v438_v50, %v3219_v60  ;;  %v444_v55 = vmul.f32 %v442_v54, %v3219_v60 }
 0x1d6   :  { %v486_v60 = vrot.slane %v306_v46, %v3113_v18  ;;  %v490_v39 = vrot.slane %v307_v42, %v3113_v18  ;;  %v318_v61 = vsel %vm101_vm13, %v312_v22, 0.0  ;;  %v319_v19 = vsel %vm102_vm14, %v313_v58, 0.0 }
 0x1d7   :  { %v397_v21 = vadd.f32 %v395_v6, %v381_v10  ;;  %v398_v2 = vadd.f32 %v396_v28, %v382_v14  ;;  %v3700_v51 = vpop.permute.xlu1 %773  ;;  %v459_v6 = vmul.f32 %v454_v32, %v3500_v20  ;;  %v460_v28 = vmul.f32 %v458_v56, %v3500_v20 }
 0x1d8   :  { %v476_v50 = vmul.f32 %v474_v63, %v3504_v3  ;;  %v491_v20 = vmul.f32 %v486_v60, %v3520_v26  ;;  %v492_v56 = vmul.f32 %v490_v39, %v3520_v26  ;;  %v550_v26 = vrot.slane %v318_v61, %v3070_v5 }
 0x1d9   :  { %v413_v9 = vadd.f32 %v411_v0, %v397_v21  ;;  %v414_v23 = vadd.f32 %v412_v31, %v398_v2  ;;  %v502_v0 = vrot.slane %v306_v46, %v3070_v5  ;;  %v506_v31 = vrot.slane %v307_v42, %v3070_v5 }
 0x1da   :  { %v475_v21 = vmul.f32 %v470_v52, %v3504_v3  ;;  %v518_v46 = vrot.slane %v318_v61, %v3067_v4  ;;  %v522_v42 = vrot.slane %v319_v19, %v3067_v4  ;;  %v534_v3 = vrot.slane %v318_v61, %v3113_v18 }
 0x1db   :  { %v429_v40 = vadd.f32 %v427_v35, %v413_v9  ;;  %v430_v2 = vadd.f32 %v428_v8, %v414_v23  ;;  %v507_v23 = vmul.f32 %v502_v0, %v3509_v41  ;;  %v554_v22 = vrot.slane %v319_v19, %v3070_v5 }
 0x1dc   :  { %v3718_v9 = vpop.permute.xlu1 %799  ;;  %v523_v58 = vmul.f32 %v518_v46, %v3514_v38  ;;  %v539_v39 = vmul.f32 %v534_v3, %v3526_v49  ;;  %v5123_v3 = vmov 12   ;;  %v5138_v4 = vmov 20  }
 0x1dd   :  { %v445_v10 = vadd.f32 %v443_v13, %v429_v40  ;;  %v446_v14 = vadd.f32 %v444_v55, %v430_v2  ;;  %v508_v13 = vmul.f32 %v506_v31, %v3509_v41  ;;  %v538_v55 = vrot.slane %v319_v19, %v3113_v18 }
 0x1de   :  { %v524_v40 = vmul.f32 %v522_v42, %v3514_v38  ;;  %v556_v0 = vmul.f32 %v554_v22, %v3518_v43  ;;  %v5118_v42 = vmov 6   ;;  %v5010_v22 = vmov 18  }
 0x1df   :  { %v461_v54 = vadd.f32 %v459_v6, %v445_v10  ;;  %v462_v32 = vadd.f32 %v460_v28, %v446_v14  ;;  %v540_v41 = vmul.f32 %v538_v55, %v3526_v49  ;;  %v555_v14 = vmul.f32 %v550_v26, %v3518_v43 }
 0x1e1   :  { %v477_v35 = vadd.f32 %v475_v21, %v461_v54  ;;  %v478_v8 = vadd.f32 %v476_v50, %v462_v32  ;;  %v3730_v10 = vpop.permute.xlu1 %811 }
 0x1e3   :  { %v493_v52 = vadd.f32 %v491_v20, %v477_v35  ;;  %v494_v63 = vadd.f32 %v492_v56, %v478_v8 }
 0x1e5   :  { %v509_v2 = vadd.f32 %v507_v23, %v493_v52  ;;  %v510_v60 = vadd.f32 %v508_v13, %v494_v63  ;;  %v5121_v23 = vmov 9   ;;  %v5126_v63 = vmov 15  }
 0x1e6   :  { %v3736_v50 = vpop.permute.xlu1 %831 }
 0x1e7   :  { %v525_v6 = vadd.f32 %v523_v58, %v509_v2  ;;  %v526_v28 = vadd.f32 %v524_v40, %v510_v60  ;;  %5114 = vst [vmem:[#allocation38_spill] sm:$0xff] %v3736_v50  ;;  %v5130_v2 = vmov 16  }
 0x1e9   :  { %v541_v31 = vadd.f32 %v539_v39, %v525_v6  ;;  %v542_v5 = vadd.f32 %v540_v41, %v526_v28 }
 0x1eb   :  { %v557_v61 = vadd.f32 %v555_v14, %v541_v31  ;;  %v558_v19 = vadd.f32 %v556_v0, %v542_v5  ;;  %v3744_v43 = vpop.permute.xlu1 %845 }
 0x1ec   :  { %5115 = vst [vmem:[#allocation39_spill] sm:$0xff] %v3744_v43 }
 0x1ed   :  { %v563_v38 = vadd.f32 %v3524_v37, %v557_v61  ;;  %v564_v21 = vadd.f32 %v3524_v37, %v558_v19  ;;  %v3860_v19 = vpop.permute.xlu0 %683 }
 0x1ef   :  { %v3738_v54 = vmax.f32 %v563_v38, 0.0  ;;  %v3740_v49 = vmax.f32 %v564_v21, 0.0  ;;  %v5136_v38 = vmov 17  }
 0x1f0   :  { %v3750_v37 = vpop.permute.xlu1 %869 }
 0x1f1   :  { %569 = vrot.lane.b32.xlu1 %v3740_v49, %s3031_s25  ;;  %567 = vrot.lane.b32.xlu0 %v3738_v54, %s3031_s25  ;;  %5116 = vst [vmem:[#allocation40_spill] sm:$0xff] %v3750_v37 }
 0x1f5   :  { %582 = vrot.lane.b32.xlu1 %v3740_v49, %s2985_s1  ;;  %580 = vrot.lane.b32.xlu0 %v3738_v54, %s2985_s1  ;;  %v3760_v32 = vpop.permute.xlu1 %881 }
 0x1f9   :  { %594 = vrot.lane.b32.xlu1 %v3740_v49, %s2984_s0  ;;  %592 = vrot.lane.b32.xlu0 %v3738_v54, %s2984_s0 }
 0x1fa   :  { %v3766_v20 = vpop.permute.xlu1 %903 }
 0x1fd   :  { %602 = vrot.lane.b32.xlu1 %v3740_v49, %s2986_s21  ;;  %600 = vrot.lane.b32.xlu0 %v3738_v54, %s2986_s21 }
 0x1ff   :  { %v3776_v56 = vpop.permute.xlu1 %915 }
 0x201   :  { %610 = vrot.lane.b32.xlu1 %v3740_v49, %s2987_s22  ;;  %608 = vrot.lane.b32.xlu0 %v3738_v54, %s2987_s22 }
 0x204   :  { %v3780_v46 = vpop.permute.xlu1 %939 }
 0x205   :  { %618 = vrot.lane.b32.xlu1 %v3740_v49, %s2988_s23  ;;  %616 = vrot.lane.b32.xlu0 %v3738_v54, %s2988_s23  ;;  %5117 = vst [vmem:[#allocation41_spill] sm:$0xff] %v3780_v46  ;;  %v5159_v46 = vld [vmem:[#allocation35_spill] sm:$0xff] }
 0x209   :  { %626 = vrot.lane.b32.xlu1 %v3740_v49, %s2989_s24  ;;  %624 = vrot.lane.b32.xlu0 %v3738_v54, %s2989_s24  ;;  %v3786_v35 = vpop.permute.xlu1 %947 }
 0x20a   :  { %5119 = vst [vmem:[#allocation42_spill] sm:$0xff] %v3786_v35 }
 0x20d   :  { %638 = vrot.lane.b32.xlu1 %v3740_v49, %s3032_s26  ;;  %636 = vrot.lane.b32.xlu0 %v3738_v54, %s3032_s26 }
 0x20e   :  { %v3793_v8 = vpop.permute.xlu1 %973 }
 0x20f   :  { %5120 = vst [vmem:[#allocation43_spill] sm:$0xff] %v3793_v8 }
 0x211   :  { %1486 = vperm.xlu0 %2818, %v3486_v7   ;;  %1460 = vperm.xlu1 %2819, %v3486_v7  }
 0x213   :  { %v3799_v13 = vpop.permute.xlu1 %985 }
 0x214   :  { %5122 = vst [vmem:[#allocation44_spill] sm:$0xff] %v3799_v13 }
 0x215   :  { %2821 = vset.pattern.permute.xlu0 %v5118_v42  ;;  %2820 = vset.pattern.permute.xlu1 %v5090_v17 }
 0x216   :  { %715 = vperm.xlu0 %2821, %v3461_v48   ;;  %1474 = vperm.xlu1 %2820, %v3486_v7  }
 0x218   :  { %v3805_v55 = vpop.permute.xlu1 %1005 }
 0x219   :  { %5124 = vst [vmem:[#allocation45_spill] sm:$0xff] %v3805_v55 }
 0x21a   :  { %1522 = vperm.xlu0 %2821, %v3486_v7   ;;  %2822 = vset.pattern.permute.xlu1 %v5091_v44 }
 0x21b   :  { %1498 = vperm.xlu1 %2822, %v3486_v7  }
 0x21d   :  { %v3811_v52 = vpop.permute.xlu1 %1019 }
 0x21e   :  { %2824 = vset.pattern.permute.xlu0 %v5121_v23  ;;  %5125 = vst [vmem:[#allocation46_spill] sm:$0xff] %v3811_v52  ;;  %v5151_v52 = vmov 31  }
 0x21f   :  { %753 = vperm.xlu0 %2824, %v3461_v48   ;;  %2823 = vset.pattern.permute.xlu1 %v5092_v53 }
 0x220   :  { %1510 = vperm.xlu1 %2823, %v3486_v7  }
 0x222   :  { %v3818_v26 = vpop.permute.xlu1 %1043 }
 0x223   :  { %1554 = vperm.xlu0 %2824, %v3486_v7   ;;  %5127 = vst [vmem:[#allocation47_spill] sm:$0xff] %v3818_v26 }
 0x224   :  { %2825 = vset.pattern.permute.xlu1 %v5094_v30 }
 0x225   :  { %1534 = vperm.xlu1 %2825, %v3486_v7  }
 0x227   :  { %2827 = vset.pattern.permute.xlu0 %v5123_v3  ;;  %v3824_v58 = vpop.permute.xlu1 %1055  ;;  %v5141_v3 = vmov 25  }
 0x228   :  { %787 = vperm.xlu0 %2827, %v3461_v48   ;;  %5128 = vst [vmem:[#allocation48_spill] sm:$0xff] %v3824_v58 }
 0x229   :  { %2826 = vset.pattern.permute.xlu1 %v5095_v11 }
 0x22a   :  { %1546 = vperm.xlu1 %2826, %v3486_v7  }
 0x22c   :  { %1592 = vperm.xlu0 %2827, %v3486_v7   ;;  %v3830_v40 = vpop.permute.xlu1 %1077 }
 0x22d   :  { %5129 = vst [vmem:[#allocation49_spill] sm:$0xff] %v3830_v40  ;;  %v5150_v40 = vmov 36  }
 0x22e   :  { %2828 = vset.pattern.permute.xlu1 %v5097_v25 }
 0x22f   :  { %1568 = vperm.xlu1 %2828, %v3486_v7  }
 0x230   :  { %2830 = vset.pattern.permute.xlu0 %v5126_v63 }
 0x231   :  { %823 = vperm.xlu0 %2830, %v3461_v48   ;;  %v3833_v60 = vpop.permute.xlu1 %1089 }
 0x232   :  { %5131 = vst [vmem:[#allocation50_spill] sm:$0xff] %v3833_v60  ;;  %v5148_v60 = vmov 29  }
 0x233   :  { %2829 = vset.pattern.permute.xlu1 %v5098_v45  ;;  %v5021_v45 = vmov 27  }
 0x234   :  { %1580 = vperm.xlu1 %2829, %v3486_v7  }
 0x235   :  { %1628 = vperm.xlu0 %2830, %v3486_v7  }
 0x236   :  { %v3835_v39 = vpop.permute.xlu1 %1113 }
 0x237   :  { %5132 = vst [vmem:[#allocation51_spill] sm:$0xff] %v3835_v39 }
 0x238   :  { %2831 = vset.pattern.permute.xlu1 %v5099_v15 }
 0x239   :  { %2833 = vset.pattern.permute.xlu0 %v5010_v22  ;;  %1604 = vperm.xlu1 %2831, %v3486_v7   ;;  %v5137_v22 = vmov 19  }
 0x23a   :  { %857 = vperm.xlu0 %2833, %v3461_v48  }
 0x23b   :  { %v3837_v41 = vpop.permute.xlu1 %1121 }
 0x23c   :  { %5133 = vst [vmem:[#allocation52_spill] sm:$0xff] %v3837_v41 }
 0x23d   :  { %2832 = vset.pattern.permute.xlu1 %v5100_v33  ;;  %v5139_v33 = vmov 22  }
 0x23e   :  { %1616 = vperm.xlu1 %2832, %v3486_v7  }
 0x240   :  { %v3839_v28 = vpop.permute.xlu1 %1147 }
 0x241   :  { %5134 = vst [vmem:[#allocation53_spill] sm:$0xff] %v3839_v28  ;;  %v5143_v28 = vmov 26  }
 0x242   :  { %2834 = vset.pattern.permute.xlu1 %v5130_v2  ;;  %v5019_v2 = vmov 24  }
 0x245   :  { %v3849_v5 = vpop.permute.xlu1 %1159 }
 0x246   :  { %5135 = vst [vmem:[#allocation54_spill] sm:$0xff] %v3849_v5  ;;  %v5025_v5 = vmov 30  }
 0x257   :  { %v1413_v6 = vpop.f32.mrf.mxu0 }
 0x258   :  { %v3841_v14 = vmax.f32 %v1413_v6, 0.0 }
 0x259   :  { %v1415_v0 = vpop.f32.mrf.mxu0 }
 0x25a   :  { %1420 = vrot.lane.b32.xlu1 %v3841_v14, %s2984_s0  ;;  %1428 = vrot.lane.b32.xlu0 %v3841_v14, %s2986_s21  ;;  %v3847_v31 = vmax.f32 %v1415_v0, 0.0  ;;  %v5015_v0 = vmov 21  }
 0x25e   :  { %1422 = vrot.lane.b32.xlu1 %v3847_v31, %s2984_s0  ;;  %1436 = vrot.lane.b32.xlu0 %v3841_v14, %s2987_s22 }
 0x262   :  { %1640 = vperm.xlu1 %2834, %v3486_v7   ;;  %1444 = vrot.lane.b32.xlu0 %v3841_v14, %s2988_s23 }
 0x263   :  { %v3858_v61 = vpop.permute.xlu1 %569  ;;  %v3867_v6 = vpop.permute.xlu0 %567 }
 0x264   :  { %v573_v55 = vsel %vm571_vm0, %v3858_v61, %v3867_v6 }
 0x266   :  { %2835 = vset.pattern.permute.xlu1 %v5136_v38  ;;  %1662 = vperm.xlu0 %2833, %v3486_v7  }
 0x267   :  { %1648 = vperm.xlu1 %2835, %v3486_v7   ;;  %v3865_v21 = vpop.permute.xlu1 %582  ;;  %v3875_v38 = vpop.permute.xlu0 %580 }
 0x26a   :  { %2836 = vset.pattern.permute.xlu0 %v5015_v0 }
 0x26b   :  { %2837 = vset.pattern.permute.xlu1 %v5137_v22  ;;  %889 = vperm.xlu0 %2836, %v3461_v48   ;;  %v3873_v18 = vpop.permute.xlu1 %594  ;;  %v3886_v22 = vpop.permute.xlu0 %592 }
 0x26c   :  { %1674 = vperm.xlu1 %2837, %v3486_v7  }
 0x26f   :  { %1698 = vperm.xlu0 %2836, %v3486_v7   ;;  %v3882_v0 = vpop.permute.xlu1 %602 }
 0x270   :  { %1430 = vrot.lane.b32.xlu1 %v3847_v31, %s2986_s21 }
 0x271   :  { %2838 = vset.pattern.permute.xlu1 %v5138_v4  ;;  %v3893_v4 = vpop.permute.xlu0 %600 }
 0x273   :  { %2839 = vset.pattern.permute.xlu0 %v5019_v2  ;;  %v3891_v15 = vpop.permute.xlu1 %610  ;;  %v5140_v2 = vmov 23  }
 0x274   :  { %1686 = vperm.xlu1 %2838, %v3486_v7   ;;  %927 = vperm.xlu0 %2839, %v3461_v48  }
 0x277   :  { %v3899_v63 = vpop.permute.xlu1 %618 }
 0x278   :  { %2840 = vset.pattern.permute.xlu1 %v5139_v33  ;;  %1734 = vperm.xlu0 %2839, %v3486_v7   ;;  %v3901_v33 = vpop.permute.xlu0 %608 }
 0x279   :  { %1710 = vperm.xlu1 %2840, %v3486_v7  }
 0x27c   :  { %2842 = vset.pattern.permute.xlu0 %v5021_v45  ;;  %v3907_v45 = vpop.permute.xlu1 %626 }
 0x27d   :  { %2841 = vset.pattern.permute.xlu1 %v5140_v2  ;;  %961 = vperm.xlu0 %2842, %v3461_v48   ;;  %5142 = vst [vmem:[#allocation55_spill] sm:$0xff] %v3907_v45  ;;  %v3910_v2 = vpop.permute.xlu0 %616  ;;  %v5160_v45 = vmov 3  }
 0x27e   :  { %1722 = vperm.xlu1 %2841, %v3486_v7  }
 0x280   :  { %v3915_v41 = vpop.permute.xlu1 %638 }
 0x281   :  { %1768 = vperm.xlu0 %2842, %v3486_v7   ;;  %5144 = vst [vmem:[#allocation56_spill] sm:$0xff] %v3915_v41  ;;  %v3918_v39 = vpop.permute.xlu0 %624  ;;  %v58_v41 = vadd.s32 4294967292, %v3223_v62 }
 0x282   :  { %2843 = vset.pattern.permute.xlu1 %v5141_v3  ;;  %v5145_v3 = vmov 28   ;;  %5146 = vst [vmem:[#allocation57_spill] sm:$0xff] %v3918_v39 }
 0x283   :  { %1742 = vperm.xlu1 %2843, %v3486_v7   ;;  %vm60_vm7 = vcmp.ge.s32.totalorder %v58_v41, 0 }
 0x285   :  { %2845 = vset.pattern.permute.xlu0 %v5025_v5  ;;  %v5147_v5 = vmov 33  }
 0x286   :  { %997 = vperm.xlu0 %2845, %v3461_v48  }
 0x287   :  { %2844 = vset.pattern.permute.xlu1 %v5143_v28  ;;  %v3927_v28 = vpop.permute.xlu0 %636 }
 0x288   :  { %1756 = vperm.xlu1 %2844, %v3486_v7   ;;  %5149 = vst [vmem:[#allocation58_spill] sm:$0xff] %v3927_v28  ;;  %v5152_v28 = vmov 39  }
 0x28a   :  { %1804 = vperm.xlu0 %2845, %v3486_v7  }
 0x28c   :  { %2846 = vset.pattern.permute.xlu1 %v5145_v3  ;;  %v3923_v48 = vpop.permute.xlu1 %1460  ;;  %v57_v3 = vadd.s32 4294967292, %v3214_v57 }
 0x28d   :  { %1780 = vperm.xlu1 %2846, %v3486_v7  }
 0x28e   :  { %2850 = vset.pattern.permute.xlu0 %v5147_v5  ;;  %vm59_vm2 = vcmp.ge.s32.totalorder %v57_v3, 0  ;;  %v5154_v3 = vmov 32  }
 0x28f   :  { %1836 = vperm.xlu0 %2850, %v3486_v7   ;;  %v578_v13 = vsel %vm59_vm2, %v573_v55, 0.0  ;;  %vm5164_vm2 = vcmp.lt.s32.totalorder %v3214_v57, 3 }
 0x290   :  { %v662_v41 = vrot.slane %v578_v13, 1  ;;  %v654_v37 = vmul.f32 %v5159_v46, %v578_v13  ;;  %v674_v39 = vrot.slane %v578_v13, 2 }
 0x291   :  { %2847 = vset.pattern.permute.xlu1 %v5148_v60  ;;  %v3935_v5 = vpop.permute.xlu1 %1474  ;;  %v3938_v60 = vpop.permute.xlu0 %1486 }
 0x292   :  { %1792 = vperm.xlu1 %2847, %v3486_v7  }
 0x293   :  { %2853 = vset.pattern.permute.xlu0 %v5150_v40  ;;  %v572_v40 = vsel %vm571_vm0, %v3867_v6, %v3858_v61 }
 0x294   :  { %1874 = vperm.xlu0 %2853, %v3486_v7   ;;  %v579_v8 = vsel %vm60_vm7, %v572_v40, 0.0  ;;  %v5157_v40 = vmov 34   ;;  %vm5165_vm7 = vmmov %vm5164_vm2 }
 0x295   :  { %v3950_v35 = vpop.permute.xlu0 %715  ;;  %v663_v61 = vrot.slane %v579_v8, 1  ;;  %v655_v26 = vmul.f32 %v5159_v46, %v579_v8  ;;  %v687_v50 = vrot.slane %v579_v8, 3 }
 0x296   :  { %1438 = vrot.lane.b32.xlu1 %v3847_v31, %s2987_s22  ;;  %v3948_v58 = vpop.permute.xlu1 %1498 }
 0x297   :  { %2848 = vset.pattern.permute.xlu1 %v5151_v52  ;;  %5153 = vst [vmem:[#allocation59_spill] sm:$0xff] %v3948_v58  ;;  %v3952_v52 = vld [vmem:[#allocation5 + $0x38] sm:$0xff]  ;;  %v686_v58 = vrot.slane %v578_v13, 3 }
 0x298   :  { %2856 = vset.pattern.permute.xlu0 %v5152_v28  ;;  %v5158_v28 = vld [vmem:[#allocation28_spill] sm:$0xff] }
 0x299   :  { %1910 = vperm.xlu0 %2856, %v3486_v7   ;;  %v3961_v55 = vpop.permute.xlu0 %1522 }
 0x29a   :  { %1816 = vperm.xlu1 %2848, %v3486_v7   ;;  %5156 = vst [vmem:[#allocation61_spill] sm:$0xff] %v3961_v55 }
 0x29b   :  { %v3958_v6 = vpop.permute.xlu1 %1510 }
 0x29c   :  { %5155 = vst [vmem:[#allocation60_spill] sm:$0xff] %v3958_v6  ;;  %v675_v6 = vrot.slane %v579_v8, 2 }
 0x29d   :  { %2858 = vset.pattern.permute.xlu0 %v5093_v59  ;;  %v666_v59 = vmul.f32 %v662_v41, %v5158_v28  ;;  %v5162_v41 = vmov 35  }
 0x29e   :  { %2849 = vset.pattern.permute.xlu1 %v5154_v3  ;;  %1969 = vperm.xlu0 %2858, %v3952_v52   ;;  %v667_v3 = vmul.f32 %v663_v61, %v5158_v28  ;;  %v3976_v28 = vpop.permute.xlu0 %753  ;;  %v5163_v61 = vld [vmem:[#allocation30_spill] sm:$0xff] }
 0x29f   :  { %1828 = vperm.xlu1 %2849, %v3486_v7   ;;  %v678_v43 = vmul.f32 %v674_v39, %v5163_v61  ;;  %v679_v46 = vmul.f32 %v675_v6, %v5163_v61  ;;  %v585_v39 = vsel %vm5165_vm7, %v3865_v21, %v3875_v38  ;;  %v5166_v61 = vmov 37  }
 0x2a0   :  { %v669_v55 = vadd.f32 %v667_v3, %v655_v26  ;;  %v699_v26 = vrot.slane %v579_v8, 4  ;;  %v584_v3 = vsel %vm5164_vm2, %v3875_v38, %v3865_v21 }
 0x2a2   :  { %2860 = vset.pattern.permute.xlu0 %v5090_v17  ;;  %v668_v17 = vadd.f32 %v666_v59, %v654_v37  ;;  %v681_v59 = vadd.f32 %v679_v46, %v669_v55  ;;  %v698_v37 = vrot.slane %v578_v13, 4  ;;  %v3996_v13 = vpop.permute.xlu0 %1554  ;;  %v5167_v46 = vld [vmem:[#allocation14_spill] sm:$0xff] }
 0x2a3   :  { %2851 = vset.pattern.permute.xlu1 %v5157_v40  ;;  %1999 = vperm.xlu0 %2860, %v3952_v52   ;;  %v3973_v40 = vpop.permute.xlu1 %1534  ;;  %vm5168_vm0 = vcmp.ge.s32.totalorder %v5167_v46, 0 }
 0x2a4   :  { %1850 = vperm.xlu1 %2851, %v3486_v7   ;;  %5161 = vst [vmem:[#allocation28_spill] sm:$0xff] %v3973_v40 }
 0x2a7   :  { %2861 = vset.pattern.permute.xlu0 %v5160_v45  ;;  %v680_v45 = vadd.f32 %v678_v43, %v668_v17  ;;  %v690_v17 = vmul.f32 %v686_v58, %v3860_v19  ;;  %v691_v43 = vmul.f32 %v687_v50, %v3860_v19  ;;  %v3994_v6 = vpop.permute.xlu1 %1546  ;;  %v5171_v58 = vld [vmem:[#allocation32_spill] sm:$0xff] }
 0x2a8   :  { %1446 = vrot.lane.b32.xlu1 %v3847_v31, %s2988_s23  ;;  %2015 = vperm.xlu0 %2861, %v3952_v52   ;;  %v702_v50 = vmul.f32 %v698_v37, %v5171_v58  ;;  %v703_v19 = vmul.f32 %v699_v26, %v5171_v58 }
 0x2a9   :  { %2852 = vset.pattern.permute.xlu1 %v5162_v41  ;;  %v692_v8 = vadd.f32 %v690_v17, %v680_v45  ;;  %v693_v55 = vadd.f32 %v691_v43, %v681_v59  ;;  %v590_v41 = vsel %vm5168_vm0, %v585_v39, 0.0  ;;  %v5173_v39 = vld [vmem:[#allocation34_spill] sm:$0xff]  ;;  %vm640_vm0 = vcmp.lt.s32.totalorder %v3214_v57, 124 }
 0x2aa   :  { %v720_v21 = vrot.slane %v590_v41, 1  ;;  %v710_v43 = vmul.f32 %v5173_v39, %v590_v41  ;;  %v732_v58 = vrot.slane %v590_v41, 2 }
 0x2ab   :  { %v704_v45 = vadd.f32 %v702_v50, %v692_v8  ;;  %v705_v38 = vadd.f32 %v703_v19, %v693_v55  ;;  %v4008_v17 = vpop.permute.xlu1 %1568 }
 0x2ac   :  { %1862 = vperm.xlu1 %2852, %v3486_v7   ;;  %2864 = vset.pattern.permute.xlu0 %v5118_v42  ;;  %v5169_v42 = vld [vmem:[#allocation18_spill] sm:$0xff]  ;;  %5172 = vst [vmem:[#allocation35_spill] sm:$0xff] %v4008_v17  ;;  %v724_v37 = vmul.f32 %v720_v21, %v3950_v35  ;;  %v5176_v21 = vld [vmem:[#allocation36_spill] sm:$0xff] }
 0x2ad   :  { %2063 = vperm.xlu0 %2864, %v3952_v52   ;;  %vm5170_vm2 = vcmp.ge.s32.totalorder %v5169_v42, 0  ;;  %v4011_v42 = vpop.permute.xlu0 %787  ;;  %v712_v8 = vadd.f32 %v710_v43, %v704_v45  ;;  %v906_v45 = vrot.slane %v3738_v54, 2 }
 0x2ae   :  { %v591_v40 = vsel %vm5170_vm2, %v584_v3, 0.0  ;;  %v5174_v3 = vmov 38  }
 0x2af   :  { %v721_v59 = vrot.slane %v591_v40, 1  ;;  %v711_v46 = vmul.f32 %v5173_v39, %v591_v40  ;;  %v733_v50 = vrot.slane %v591_v40, 2  ;;  %v726_v19 = vadd.f32 %v724_v37, %v712_v8  ;;  %v4020_v17 = vpop.permute.xlu1 %1580 }
 0x2b0   :  { %2854 = vset.pattern.permute.xlu1 %v5166_v61  ;;  %v744_v39 = vrot.slane %v590_v41, 3  ;;  %v756_v37 = vrot.slane %v590_v41, 4  ;;  %v918_v8 = vrot.slane %v3738_v54, 3 }
 0x2b1   :  { %1886 = vperm.xlu1 %2854, %v3486_v7   ;;  %2865 = vset.pattern.permute.xlu0 %v5094_v30  ;;  %v725_v26 = vmul.f32 %v721_v59, %v3950_v35  ;;  %v713_v55 = vadd.f32 %v711_v46, %v705_v38  ;;  %v5175_v30 = vmov 40   ;;  %v736_v35 = vmul.f32 %v732_v58, %v5176_v21 }
 0x2b2   :  { %2079 = vperm.xlu0 %2865, %v3952_v52   ;;  %v737_v59 = vmul.f32 %v733_v50, %v5176_v21  ;;  %v907_v38 = vrot.slane %v3740_v49, 2  ;;  %v597_v58 = vsel %vm145_vm1, %v3873_v18, %v3886_v22  ;;  %v760_v41 = vmul.f32 %v756_v37, %v3976_v28 }
 0x2b3   :  { %v727_v61 = vadd.f32 %v725_v26, %v713_v55  ;;  %v738_v43 = vadd.f32 %v736_v35, %v726_v19  ;;  %v757_v26 = vrot.slane %v591_v40, 4  ;;  %v919_v55 = vrot.slane %v3740_v49, 3 }
 0x2b4   :  { %v4045_v19 = vpop.permute.xlu1 %1604  ;;  %v4062_v37 = vmul.f32 %v906_v45, %v3766_v20 }
 0x2b5   :  { %2855 = vset.pattern.permute.xlu1 %v5174_v3  ;;  %v4022_v3 = vpop.permute.xlu0 %1592  ;;  %v739_v46 = vadd.f32 %v737_v59, %v727_v61  ;;  %v748_v61 = vmul.f32 %v744_v39, %v3646_v47  ;;  %v761_v50 = vmul.f32 %v757_v26, %v3976_v28  ;;  %v4065_v26 = vmul.f32 %v907_v38, %v3766_v20 }
 0x2b6   :  { %1898 = vperm.xlu1 %2855, %v3486_v7   ;;  %2868 = vset.pattern.permute.xlu0 %v5097_v25  ;;  %v745_v25 = vrot.slane %v591_v40, 3  ;;  %v4083_v20 = vadd.s32 4, %v3214_v57  ;;  %v4086_v38 = vadd.s32 4, %v3223_v62 }
 0x2b7   :  { %v750_v28 = vadd.f32 %v748_v61, %v738_v43 }
 0x2b8   :  { %v749_v40 = vmul.f32 %v745_v25, %v3646_v47  ;;  %v4055_v25 = vmul.f32 %v3760_v32, %v3738_v54  ;;  %v4059_v47 = vmul.f32 %v3760_v32, %v3740_v49  ;;  %v4079_v32 = vmul.f32 %v919_v55, %v3776_v56 }
 0x2b9   :  { %v4047_v21 = vpop.permute.xlu0 %823  ;;  %v762_v43 = vadd.f32 %v760_v41, %v750_v28  ;;  %v4097_v61 = vpop.permute.xlu1 %1616  ;;  %v605_v41 = vsel %vm154_vm3, %v3882_v0, %v3893_v4  ;;  %vm117_vm2 = vcmp.lt.s32.totalorder %v4083_v20, 128 }
 0x2ba   :  { %2857 = vset.pattern.permute.xlu1 %v5175_v30  ;;  %v751_v39 = vadd.f32 %v749_v40, %v739_v46  ;;  %v4076_v30 = vmul.f32 %v918_v8, %v3776_v56 }
 0x2bb   :  { %1922 = vperm.xlu1 %2857, %v3486_v7   ;;  %v596_v7 = vsel %vm145_vm1, %v3886_v22, %v3873_v18  ;;  %v4069_v22 = vsel %vm75_vm4, %v597_v58, 0.0 }
 0x2bc   :  { %v4073_v35 = vsel %vm76_vm8, %v596_v7, 0.0  ;;  %v763_v45 = vadd.f32 %v761_v50, %v751_v39  ;;  %v768_v56 = vmul.f32 %v3670_v24, %v4069_v22  ;;  %v778_v7 = vrot.slane %v4069_v22, 1 }
 0x2bd   :  { %v769_v55 = vmul.f32 %v3670_v24, %v4073_v35  ;;  %v779_v58 = vrot.slane %v4073_v35, 1  ;;  %v4099_v62 = vpop.permute.xlu0 %1628  ;;  %v790_v24 = vrot.slane %v4069_v22, 2  ;;  %v791_v8 = vrot.slane %v4073_v35, 2 }
 0x2be   :  { %v770_v39 = vadd.f32 %v768_v56, %v762_v43  ;;  %v815_v40 = vrot.slane %v4073_v35, 4 }
 0x2bf   :  { %2859 = vset.pattern.permute.xlu1 %v5113_v12  ;;  %v771_v46 = vadd.f32 %v769_v55, %v763_v45  ;;  %v782_v45 = vmul.f32 %v778_v7, %v3700_v51  ;;  %v783_v56 = vmul.f32 %v779_v58, %v3700_v51  ;;  %v794_v55 = vmul.f32 %v790_v24, %v4011_v42 }
 0x2c0   :  { %1983 = vperm.xlu1 %2859, %v3952_v52   ;;  %v795_v50 = vmul.f32 %v791_v8, %v4011_v42  ;;  %v802_v51 = vrot.slane %v4069_v22, 3  ;;  %v803_v58 = vrot.slane %v4073_v35, 3  ;;  %v4134_v8 = vsel %vm83_vm6, %v605_v41, 0.0 }
 0x2c1   :  { %v784_v7 = vadd.f32 %v782_v45, %v770_v39  ;;  %v785_v28 = vadd.f32 %v783_v56, %v771_v46  ;;  %v620_v46 = vsel %vm172_vm11, %v3910_v2, %v3899_v63  ;;  %v814_v39 = vrot.slane %v4069_v22, 4 }
 0x2c3   :  { %v796_v45 = vadd.f32 %v794_v55, %v784_v7  ;;  %v797_v56 = vadd.f32 %v795_v50, %v785_v28  ;;  %v806_v50 = vmul.f32 %v802_v51, %v3718_v9  ;;  %v807_v28 = vmul.f32 %v803_v58, %v3718_v9 }
 0x2c4   :  { %2862 = vset.pattern.permute.xlu1 %v5091_v44  ;;  %v604_v44 = vsel %vm154_vm3, %v3893_v4, %v3882_v0  ;;  %v612_v4 = vsel %vm163_vm5, %v3901_v33, %v3891_v15  ;;  %v4140_v0 = vpop.permute.xlu0 %857  ;;  %v836_v55 = vrot.slane %v4134_v8, 1  ;;  %v819_v58 = vmul.f32 %v815_v40, %v3730_v10 }
 0x2c5   :  { %2031 = vperm.xlu1 %2862, %v3952_v52   ;;  %v4138_v24 = vsel %vm84_vm9, %v604_v44, 0.0  ;;  %v613_v44 = vsel %vm163_vm5, %v3891_v15, %v3901_v33  ;;  %v4156_v43 = vsel %vm93_vm10, %v612_v4, 0.0  ;;  %v621_v15 = vsel %vm172_vm11, %v3899_v63, %v3910_v2 }
 0x2c6   :  { %v837_v7 = vrot.slane %v4138_v24, 1  ;;  %v4171_v33 = vsel %vm101_vm13, %v620_v46, 0.0  ;;  %v808_v22 = vadd.f32 %v806_v50, %v796_v45  ;;  %v809_v4 = vadd.f32 %v807_v28, %v797_v56 }
 0x2c7   :  { %v818_v2 = vmul.f32 %v814_v39, %v3730_v10  ;;  %v827_v45 = vmul.f32 %v4047_v21, %v4138_v24  ;;  %v5179_v39 = vld [vmem:[#allocation37_spill] sm:$0xff] }
 0x2c9   :  { %2863 = vset.pattern.permute.xlu1 %v5092_v53 }
 0x2ca   :  { %2047 = vperm.xlu1 %2863, %v3952_v52  }
 0x2cc   :  { %v1421_v42 = vpop.permute.xlu1 %1420  ;;  %v4173_v35 = vpop.permute.xlu0 %1428 }
 0x2ce   :  { %2866 = vset.pattern.permute.xlu1 %v5095_v11 }
 0x2cf   :  { %2095 = vperm.xlu1 %2866, %v3952_v52  }
 0x2d0   :  { %v1423_v41 = vpop.permute.xlu1 %1422  ;;  %v4208_v1 = vpop.permute.xlu0 %1436 }
 0x2d1   :  { %v1424_v52 = vsel %vm145_vm1, %v1421_v42, %v1423_v41  ;;  %v1425_v9 = vsel %vm145_vm1, %v1423_v41, %v1421_v42  ;;  %v826_v42 = vmul.f32 %v4047_v21, %v4134_v8 }
 0x2d2   :  { %v4181_v51 = vsel %vm75_vm4, %v1425_v9, 0.0  ;;  %v4185_v63 = vsel %vm76_vm8, %v1424_v52, 0.0  ;;  %v820_v52 = vadd.f32 %v818_v2, %v808_v22  ;;  %v821_v9 = vadd.f32 %v819_v58, %v809_v4 }
 0x2d3   :  { %v1465_v46 = vrot.slane %v4181_v51, 1  ;;  %v1466_v11 = vrot.slane %v4185_v63, 1  ;;  %2867 = vset.pattern.permute.xlu1 %v5121_v23  ;;  %v1477_v56 = vrot.slane %v4181_v51, 2  ;;  %v1478_v41 = vrot.slane %v4185_v63, 2 }
 0x2d4   :  { %v1457_v50 = vmul.f32 %v5179_v39, %v4181_v51  ;;  %v1458_v10 = vmul.f32 %v5179_v39, %v4185_v63  ;;  %v1489_v59 = vrot.slane %v4181_v51, 3  ;;  %v1490_v21 = vrot.slane %v4185_v63, 3 }
 0x2d5   :  { %v1469_v40 = vmul.f32 %v1465_v46, %v3923_v48  ;;  %v1470_v28 = vmul.f32 %v1466_v11, %v3923_v48  ;;  %v1481_v12 = vmul.f32 %v1477_v56, %v3935_v5  ;;  %v1482_v23 = vmul.f32 %v1478_v41, %v3935_v5 }
 0x2d6   :  { %v4212_v39 = vsel %vm94_vm12, %v613_v44, 0.0  ;;  %v4216_v11 = vsel %vm102_vm14, %v621_v15, 0.0  ;;  %v848_v22 = vrot.slane %v4134_v8, 2  ;;  %v828_v4 = vadd.f32 %v826_v42, %v820_v52  ;;  %v5180_v15 = vld [vmem:[#allocation38_spill] sm:$0xff]  ;;  %v4232_v52 = vpop.permute.xlu0 %1444 }
 0x2d7   :  { %v1471_v18 = vadd.f32 %v1469_v40, %v1457_v50  ;;  %v1472_v53 = vadd.f32 %v1470_v28, %v1458_v10  ;;  %v829_v2 = vadd.f32 %v827_v45, %v821_v9  ;;  %v1493_v5 = vmul.f32 %v1489_v59, %v3938_v60  ;;  %5181 = vst [vmem:[#allocation30_spill] sm:$0xff] %v4232_v52 }
 0x2d8   :  { %v1494_v56 = vmul.f32 %v1490_v21, %v3938_v60  ;;  %v1501_v41 = vrot.slane %v4181_v51, 4  ;;  %v1502_v44 = vrot.slane %v4185_v63, 4  ;;  %v840_v10 = vmul.f32 %v836_v55, %v5180_v15  ;;  %v5182_v55 = vld [vmem:[#allocation59_spill] sm:$0xff] }
 0x2d9   :  { %v1483_v58 = vadd.f32 %v1481_v12, %v1471_v18  ;;  %v1484_v46 = vadd.f32 %v1482_v23, %v1472_v53  ;;  %v841_v40 = vmul.f32 %v837_v7, %v5180_v15  ;;  %v849_v28 = vrot.slane %v4138_v24, 2 }
 0x2da   :  { %v1046_v42 = vrot.slane %v4171_v33, 4  ;;  %v1047_v53 = vrot.slane %v4216_v11, 4  ;;  %v842_v18 = vadd.f32 %v840_v10, %v828_v4  ;;  %v860_v59 = vrot.slane %v4134_v8, 3  ;;  %v5185_v10 = vld [vmem:[#allocation57_spill] sm:$0xff] }
 0x2db   :  { %v1495_v12 = vadd.f32 %v1493_v5, %v1483_v58  ;;  %v1496_v23 = vadd.f32 %v1494_v56, %v1484_v46  ;;  %v843_v60 = vadd.f32 %v841_v40, %v829_v2  ;;  %v861_v45 = vrot.slane %v4138_v24, 3  ;;  %v5183_v58 = vld [vmem:[#allocation39_spill] sm:$0xff] }
 0x2dc   :  { %v1505_v7 = vmul.f32 %v1501_v41, %v5182_v55  ;;  %v1506_v21 = vmul.f32 %v1502_v44, %v5182_v55  ;;  %v1513_v15 = vrot.slane %v4181_v51, 5  ;;  %v1514_v50 = vrot.slane %v4185_v63, 5  ;;  %v5184_v56 = vld [vmem:[#allocation55_spill] sm:$0xff] }
 0x2dd   :  { %v4234_v9 = vpop.permute.xlu1 %1640  ;;  %v852_v46 = vmul.f32 %v848_v22, %v5183_v58  ;;  %v853_v4 = vmul.f32 %v849_v28, %v5183_v58  ;;  %v864_v2 = vmul.f32 %v860_v59, %v4140_v0  ;;  %v865_v5 = vmul.f32 %v861_v45, %v4140_v0  ;;  %v5186_v0 = vld [vmem:[#allocation60_spill] sm:$0xff] }
 0x2de   :  { %v628_v40 = vsel %vm181_vm15, %v5185_v10, %v5184_v56  ;;  %v629_v41 = vsel %vm181_vm15, %v5184_v56, %v5185_v10  ;;  %v1507_v44 = vadd.f32 %v1505_v7, %v1495_v12  ;;  %v1508_v55 = vadd.f32 %v1506_v21, %v1496_v23  ;;  %v5192_v10 = vld [vmem:[#allocation40_spill] sm:$0xff]  ;;  %v5199_v12 = vld [vmem:[#allocation35_spill] sm:$0xff] }
 0x2df   :  { %v854_v48 = vadd.f32 %v852_v46, %v842_v18  ;;  %v855_v22 = vadd.f32 %v853_v4, %v843_v60  ;;  %v872_v28 = vrot.slane %v4134_v8, 4  ;;  %v873_v59 = vrot.slane %v4138_v24, 4  ;;  %v5187_v60 = vld [vmem:[#allocation47_spill] sm:$0xff]  ;;  %v5190_v4 = vld [vmem:[#allocation25_spill] sm:$0xff] }
 0x2e0   :  { %v1517_v45 = vmul.f32 %v1513_v15, %v5186_v0  ;;  %v1518_v29 = vmul.f32 %v1514_v50, %v5186_v0  ;;  %v1525_v52 = vrot.slane %v4181_v51, 6  ;;  %v1526_v27 = vrot.slane %v4185_v63, 6  ;;  %v5188_v15 = vld [vmem:[#allocation24_spill] sm:$0xff] }
 0x2e1   :  { %v4254_v58 = vpop.permute.xlu0 %1662  ;;  %v866_v18 = vadd.f32 %v864_v2, %v854_v48  ;;  %v867_v8 = vadd.f32 %v865_v5, %v855_v22  ;;  %v4265_v24 = vmul.f32 %v1046_v42, %v5187_v60  ;;  %v4268_v7 = vmul.f32 %v1047_v53, %v5187_v60  ;;  %v5193_v2 = vld [vmem:[#allocation61_spill] sm:$0xff] }
 0x2e2   :  { %v4260_v34 = vpop.permute.xlu1 %1648  ;;  %v1519_v21 = vadd.f32 %v1517_v45, %v1507_v44  ;;  %v1520_v50 = vadd.f32 %v1518_v29, %v1508_v55  ;;  %vm5189_vm15 = vcmp.lt.s32.totalorder %v5188_v15, 128  ;;  %vm5191_vm7 = vcmp.lt.s32.totalorder %v5190_v4, 128 }
 0x2e3   :  { %v4272_v46 = vsel %vm5189_vm15, %v628_v40, 0.0  ;;  %v4276_v56 = vsel %vm5191_vm7, %v629_v41, 0.0  ;;  %v876_v0 = vmul.f32 %v872_v28, %v5192_v10  ;;  %v877_v48 = vmul.f32 %v873_v59, %v5192_v10  ;;  %v5194_v59 = vld [vmem:[#allocation41_spill] sm:$0xff] }
 0x2e4   :  { %v1529_v42 = vmul.f32 %v1525_v52, %v5193_v2  ;;  %v1530_v5 = vmul.f32 %v1526_v27, %v5193_v2  ;;  %v1537_v53 = vrot.slane %v4181_v51, 7  ;;  %v1538_v29 = vrot.slane %v4185_v63, 7 }
 0x2e5   :  { %v878_v55 = vadd.f32 %v876_v0, %v866_v18  ;;  %v879_v40 = vadd.f32 %v877_v48, %v867_v8  ;;  %v952_v41 = vrot.slane %v4156_v43, 1  ;;  %v953_v45 = vrot.slane %v4212_v39, 1 }
 0x2e6   :  { %v890_v44 = vpop.permute.xlu0 %889  ;;  %v1531_v28 = vadd.f32 %v1529_v42, %v1519_v21  ;;  %v1532_v60 = vadd.f32 %v1530_v5, %v1520_v50  ;;  %v4290_v52 = vmul.f32 %v5194_v59, %v4156_v43  ;;  %v4294_v27 = vmul.f32 %v5194_v59, %v4212_v39  ;;  %v5197_v21 = vld [vmem:[#allocation28_spill] sm:$0xff] }
 0x2e7   :  { %v4284_v22 = vpop.permute.xlu1 %1674  ;;  %v5195_v51 = vrot.slane %v3738_v54, 1  ;;  %v5196_v18 = vrot.slane %v3740_v49, 1  ;;  %v1541_v50 = vmul.f32 %v1537_v53, %v5197_v21  ;;  %v1542_v10 = vmul.f32 %v1538_v29, %v5197_v21 }
 0x2e8   :  { %v886_v42 = vadd.f32 %v4055_v25, %v878_v55  ;;  %v887_v5 = vadd.f32 %v4059_v47, %v879_v40  ;;  %vm118_vm15 = vcmp.lt.s32.totalorder %v4086_v38, 128  ;;  %vm5247_vm7 = vcmask 1040384  }
 0x2e9   :  { %v898_v63 = vmul.f32 %v5195_v51, %v890_v44  ;;  %v899_v8 = vmul.f32 %v5196_v18, %v890_v44  ;;  %v5198_v44 = vld [vmem:[#allocation42_spill] sm:$0xff]  ;;  %v1543_v21 = vadd.f32 %v1541_v50, %v1531_v28  ;;  %v1544_v23 = vadd.f32 %v1542_v10, %v1532_v60 }
 0x2ea   :  { %v4304_v0 = vpop.permute.xlu0 %1698  ;;  %v4311_v51 = vmul.f32 %v952_v41, %v5198_v44  ;;  %v4314_v18 = vmul.f32 %v953_v45, %v5198_v44 }
 0x2eb   :  { %v1431_v59 = vpop.permute.xlu1 %1430  ;;  %v900_v25 = vadd.f32 %v898_v63, %v886_v42  ;;  %v901_v55 = vadd.f32 %v899_v8, %v887_v5 }
 0x2ec   :  { %v1432_v53 = vsel %vm154_vm3, %v4173_v35, %v1431_v59  ;;  %v1433_v29 = vsel %vm154_vm3, %v1431_v59, %v4173_v35 }
 0x2ed   :  { %v4324_v47 = vsel %vm83_vm6, %v1433_v29, 0.0  ;;  %v4328_v40 = vsel %vm84_vm9, %v1432_v53, 0.0  ;;  %v912_v53 = vadd.f32 %v4062_v37, %v900_v25  ;;  %v913_v29 = vadd.f32 %v4065_v26, %v901_v55 }
 0x2ee   :  { %v1549_v41 = vmul.f32 %v3994_v6, %v4324_v47  ;;  %v1550_v45 = vmul.f32 %v3994_v6, %v4328_v40  ;;  %v1559_v35 = vrot.slane %v4324_v47, 1  ;;  %v1560_v28 = vrot.slane %v4328_v40, 1 }
 0x2ef   :  { %v1571_v60 = vrot.slane %v4324_v47, 2  ;;  %v1572_v63 = vrot.slane %v4328_v40, 2  ;;  %v1583_v8 = vrot.slane %v4324_v47, 3  ;;  %v1584_v50 = vrot.slane %v4328_v40, 3  ;;  %v4340_v10 = vpop.permute.xlu1 %1686  ;;  %v928_v42 = vpop.permute.xlu0 %927 }
 0x2f0   :  { %v1551_v5 = vadd.f32 %v1549_v41, %v1543_v21  ;;  %v1552_v59 = vadd.f32 %v1550_v45, %v1544_v23  ;;  %v1563_v44 = vmul.f32 %v1559_v35, %v3996_v13  ;;  %v1564_v6 = vmul.f32 %v1560_v28, %v3996_v13 }
 0x2f1   :  { %v1575_v4 = vmul.f32 %v1571_v60, %v5199_v12  ;;  %v1576_v15 = vmul.f32 %v1572_v63, %v5199_v12  ;;  %v1595_v36 = vrot.slane %v4324_v47, 4  ;;  %v1596_v16 = vrot.slane %v4328_v40, 4 }
 0x2f2   :  { %v1565_v2 = vadd.f32 %v1563_v44, %v1551_v5  ;;  %v1566_v48 = vadd.f32 %v1564_v6, %v1552_v59  ;;  %v1607_v23 = vrot.slane %v4324_v47, 5  ;;  %v1608_v21 = vrot.slane %v4328_v40, 5 }
 0x2f3   :  { %v4352_v41 = vpop.permute.xlu0 %1734  ;;  %v988_v13 = vrot.slane %v4156_v43, 4  ;;  %v989_v37 = vrot.slane %v4212_v39, 4  ;;  %v1587_v12 = vmul.f32 %v1583_v8, %v4020_v17  ;;  %v1588_v55 = vmul.f32 %v1584_v50, %v4020_v17 }
 0x2f4   :  { %v1577_v26 = vadd.f32 %v1575_v4, %v1565_v2  ;;  %v1578_v25 = vadd.f32 %v1576_v15, %v1566_v48  ;;  %v4358_v45 = vpop.permute.xlu1 %1710  ;;  %v1619_v35 = vrot.slane %v4324_v47, 6  ;;  %v1620_v28 = vrot.slane %v4328_v40, 6 }
 0x2f5   :  { %v924_v60 = vadd.f32 %v4076_v30, %v912_v53  ;;  %v925_v63 = vadd.f32 %v4079_v32, %v913_v29  ;;  %v1599_v5 = vmul.f32 %v1595_v36, %v4022_v3  ;;  %v1600_v59 = vmul.f32 %v1596_v16, %v4022_v3  ;;  %v5202_v29 = vld [vmem:[#allocation43_spill] sm:$0xff] }
 0x2f6   :  { %v1589_v4 = vadd.f32 %v1587_v12, %v1577_v26  ;;  %v1590_v15 = vadd.f32 %v1588_v55, %v1578_v25  ;;  %v1611_v48 = vmul.f32 %v1607_v23, %v4045_v19  ;;  %v1612_v17 = vmul.f32 %v1608_v21, %v4045_v19 }
 0x2f7   :  { %v5200_v2 = vrot.slane %v3738_v54, 4  ;;  %v5201_v50 = vrot.slane %v3740_v49, 4  ;;  %v1631_v32 = vrot.slane %v4324_v47, 7  ;;  %v1632_v36 = vrot.slane %v4328_v40, 7 }
 0x2f8   :  { %v1601_v6 = vadd.f32 %v1599_v5, %v1589_v4  ;;  %v1602_v30 = vadd.f32 %v1600_v59, %v1590_v15  ;;  %v962_v53 = vpop.permute.xlu0 %961  ;;  %v5203_v23 = vrot.slane %v4156_v43, 3  ;;  %v5204_v54 = vrot.slane %v4212_v39, 3 }
 0x2f9   :  { %v934_v8 = vmul.f32 %v5200_v2, %v928_v42  ;;  %v935_v44 = vmul.f32 %v5201_v50, %v928_v42  ;;  %v4380_v21 = vpop.permute.xlu1 %1722  ;;  %v1623_v25 = vmul.f32 %v1619_v35, %v4097_v61  ;;  %v1624_v47 = vmul.f32 %v1620_v28, %v4097_v61 }
 0x2fa   :  { %v980_v26 = vmul.f32 %v5203_v23, %v5202_v29  ;;  %v981_v19 = vmul.f32 %v5204_v54, %v5202_v29  ;;  %v1613_v49 = vadd.f32 %v1611_v48, %v1601_v6  ;;  %v1614_v42 = vadd.f32 %v1612_v17, %v1602_v30 }
 0x2fb   :  { %v936_v16 = vadd.f32 %v934_v8, %v924_v60  ;;  %v937_v3 = vadd.f32 %v935_v44, %v925_v63  ;;  %v5205_v55 = vrot.slane %v4156_v43, 2  ;;  %v5206_v63 = vrot.slane %v4212_v39, 2  ;;  %v5207_v44 = vld [vmem:[#allocation44_spill] sm:$0xff] }
 0x2fc   :  { %v1625_v59 = vadd.f32 %v1623_v25, %v1613_v49  ;;  %v1626_v4 = vadd.f32 %v1624_v47, %v1614_v42  ;;  %v1635_v15 = vmul.f32 %v1631_v32, %v4099_v62  ;;  %v1636_v48 = vmul.f32 %v1632_v36, %v4099_v62  ;;  %v4392_v17 = vpop.permute.xlu0 %1768 }
 0x2fd   :  { %v944_v40 = vadd.f32 %v4290_v52, %v936_v16  ;;  %v945_v12 = vadd.f32 %v4294_v27, %v937_v3  ;;  %v968_v60 = vmul.f32 %v5205_v55, %v962_v53  ;;  %v969_v5 = vmul.f32 %v5206_v63, %v962_v53 }
 0x2fe   :  { %v1010_v27 = vrot.slane %v4171_v33, 1  ;;  %v1011_v43 = vrot.slane %v4216_v11, 1  ;;  %v1643_v39 = vmul.f32 %v4234_v9, %v3841_v14  ;;  %v1644_v35 = vmul.f32 %v4234_v9, %v3847_v31  ;;  %v4402_v8 = vpop.permute.xlu1 %1742 }
 0x2ff   :  { %v958_v61 = vadd.f32 %v4311_v51, %v944_v40  ;;  %v959_v52 = vadd.f32 %v4314_v18, %v945_v12  ;;  %v1637_v28 = vadd.f32 %v1635_v15, %v1625_v59  ;;  %v1638_v2 = vadd.f32 %v1636_v48, %v1626_v4  ;;  %v5215_v15 = vld [vmem:[#allocation45_spill] sm:$0xff] }
 0x300   :  { %v992_v51 = vmul.f32 %v988_v13, %v5207_v44  ;;  %v993_v18 = vmul.f32 %v989_v37, %v5207_v44  ;;  %v5208_v6 = vrot.slane %v3841_v14, 1  ;;  %v5209_v32 = vrot.slane %v3847_v31, 1  ;;  %v5218_v44 = vld [vmem:[#allocation46_spill] sm:$0xff] }
 0x301   :  { %v970_v62 = vadd.f32 %v968_v60, %v958_v61  ;;  %v971_v50 = vadd.f32 %v969_v5, %v959_v52  ;;  %v1645_v53 = vadd.f32 %v1643_v39, %v1637_v28  ;;  %v1646_v9 = vadd.f32 %v1644_v35, %v1638_v2  ;;  %v998_v54 = vpop.permute.xlu0 %997 }
 0x302   :  { %v1657_v30 = vmul.f32 %v5208_v6, %v4260_v34  ;;  %v1658_v36 = vmul.f32 %v5209_v32, %v4260_v34  ;;  %v5210_v16 = vrot.slane %v3841_v14, 2  ;;  %v5211_v29 = vrot.slane %v3847_v31, 2  ;;  %v5212_v34 = vld [vmem:[#allocation48_spill] sm:$0xff] }
 0x303   :  { %v982_v23 = vadd.f32 %v980_v26, %v970_v62  ;;  %v983_v37 = vadd.f32 %v981_v19, %v971_v50  ;;  %v1000_v25 = vmul.f32 %v998_v54, %v4171_v33  ;;  %v1001_v47 = vmul.f32 %v998_v54, %v4216_v11 }
 0x304   :  { %v1669_v3 = vmul.f32 %v5210_v16, %v4254_v58  ;;  %v1670_v13 = vmul.f32 %v5211_v29, %v4254_v58  ;;  %v1659_v49 = vadd.f32 %v1657_v30, %v1645_v53  ;;  %v1660_v42 = vadd.f32 %v1658_v36, %v1646_v9  ;;  %v4425_v58 = vpop.permute.xlu1 %1756 }
 0x305   :  { %v1058_v40 = vmul.f32 %v5212_v34, %v4272_v46  ;;  %v1059_v12 = vmul.f32 %v5212_v34, %v4276_v56  ;;  %v994_v55 = vadd.f32 %v992_v51, %v982_v23  ;;  %v995_v60 = vadd.f32 %v993_v18, %v983_v37 }
 0x306   :  { %v5213_v26 = vrot.slane %v3841_v14, 3  ;;  %v5214_v63 = vrot.slane %v3847_v31, 3  ;;  %v1671_v59 = vadd.f32 %v1669_v3, %v1659_v49  ;;  %v1672_v4 = vadd.f32 %v1670_v13, %v1660_v42  ;;  %v5221_v3 = vld [vmem:[#allocation26_spill] sm:$0xff] }
 0x307   :  { %v1014_v48 = vmul.f32 %v1010_v27, %v5215_v15  ;;  %v1015_v61 = vmul.f32 %v1011_v43, %v5215_v15  ;;  %v1002_v52 = vadd.f32 %v1000_v25, %v994_v55  ;;  %v1003_v39 = vadd.f32 %v1001_v47, %v995_v60 }
 0x308   :  { %v1681_v19 = vmul.f32 %v5213_v26, %v4284_v22  ;;  %v1682_v5 = vmul.f32 %v5214_v63, %v4284_v22  ;;  %v5216_v2 = vrot.slane %v3841_v14, 4  ;;  %v5217_v22 = vrot.slane %v3847_v31, 4  ;;  %v4451_v16 = vpop.permute.xlu1 %1780 }
 0x309   :  { %v5219_v27 = vrot.slane %v4171_v33, 2  ;;  %v5220_v51 = vrot.slane %v4216_v11, 2  ;;  %v1016_v6 = vadd.f32 %v1014_v48, %v1002_v52  ;;  %v1017_v30 = vadd.f32 %v1015_v61, %v1003_v39  ;;  %v5227_v39 = vld [vmem:[#allocation56_spill] sm:$0xff] }
 0x30a   :  { %v1683_v35 = vadd.f32 %v1681_v19, %v1671_v59  ;;  %v1684_v28 = vadd.f32 %v1682_v5, %v1672_v4  ;;  %v1693_v62 = vmul.f32 %v5216_v2, %v4340_v10  ;;  %v1694_v50 = vmul.f32 %v5217_v22, %v4340_v10  ;;  %v5226_v19 = vld [vmem:[#allocation27_spill] sm:$0xff] }
 0x30b   :  { %v1026_v43 = vmul.f32 %v5219_v27, %v5218_v44  ;;  %v1027_v18 = vmul.f32 %v5220_v51, %v5218_v44  ;;  %v1068_v32 = vrot.slane %v4272_v46, 1  ;;  %v1069_v36 = vrot.slane %v4276_v56, 1 }
 0x30c   :  { %v1695_v53 = vadd.f32 %v1693_v62, %v1683_v35  ;;  %v1696_v9 = vadd.f32 %v1694_v50, %v1684_v28  ;;  %v5222_v10 = vrot.slane %v4171_v33, 3  ;;  %v5223_v13 = vrot.slane %v4216_v11, 3  ;;  %v5228_v35 = vld [vmem:[#allocation58_spill] sm:$0xff]  ;;  %v5231_v62 = vld [vmem:[#allocation49_spill] sm:$0xff] }
 0x30d   :  { %v1028_v37 = vadd.f32 %v1026_v43, %v1016_v6  ;;  %v1029_v54 = vadd.f32 %v1027_v18, %v1017_v30  ;;  %v1080_v49 = vrot.slane %v4272_v46, 2  ;;  %v1081_v42 = vrot.slane %v4276_v56, 2  ;;  %v4475_v52 = vpop.permute.xlu1 %1792  ;;  %v5232_v43 = vld [vmem:[#allocation50_spill] sm:$0xff] }
 0x30e   :  { %v1038_v29 = vmul.f32 %v5222_v10, %v5221_v3  ;;  %v1039_v23 = vmul.f32 %v5223_v13, %v5221_v3  ;;  %v5224_v25 = vrot.slane %v3841_v14, 5  ;;  %v5225_v34 = vrot.slane %v3847_v31, 5 }
 0x30f   :  { %v1092_v33 = vrot.slane %v4272_v46, 3  ;;  %v1093_v60 = vrot.slane %v4276_v56, 3  ;;  %v1072_v63 = vmul.f32 %v1068_v32, %v5226_v19  ;;  %v1073_v5 = vmul.f32 %v1069_v36, %v5226_v19 }
 0x310   :  { %v1705_v47 = vmul.f32 %v5224_v25, %v4304_v0  ;;  %v1706_v55 = vmul.f32 %v5225_v34, %v4304_v0  ;;  %v1040_v11 = vadd.f32 %v1038_v29, %v1028_v37  ;;  %v1041_v26 = vadd.f32 %v1039_v23, %v1029_v54  ;;  %v5237_v25 = vld [vmem:[#allocation29_spill] sm:$0xff] }
 0x311   :  { %v1104_v15 = vrot.slane %v4272_v46, 4  ;;  %v1105_v48 = vrot.slane %v4276_v56, 4  ;;  %v641_v28 = vsel %vm640_vm0, %v5228_v35, %v5227_v39  ;;  %v642_v2 = vsel %vm640_vm0, %v5227_v39, %v5228_v35  ;;  %vm5248_vm0 = vmmov %vm5247_vm7 }
 0x312   :  { %v1707_v59 = vadd.f32 %v1705_v47, %v1695_v53  ;;  %v1708_v4 = vadd.f32 %v1706_v55, %v1696_v9  ;;  %v1052_v61 = vadd.f32 %v4265_v24, %v1040_v11  ;;  %v1053_v0 = vadd.f32 %v4268_v7, %v1041_v26  ;;  %v1439_v9 = vpop.permute.xlu1 %1438 }
 0x313   :  { %v5229_v46 = vrot.slane %v3841_v14, 6  ;;  %v5230_v24 = vrot.slane %v3847_v31, 6  ;;  %v1084_v22 = vmul.f32 %v1080_v49, %v5231_v62  ;;  %v1085_v50 = vmul.f32 %v1081_v42, %v5231_v62 }
 0x314   :  { %v1060_v44 = vadd.f32 %v1058_v40, %v1052_v61  ;;  %v1061_v27 = vadd.f32 %v1059_v12, %v1053_v0  ;;  %v1096_v51 = vmul.f32 %v1092_v33, %v5232_v43  ;;  %v1097_v18 = vmul.f32 %v1093_v60, %v5232_v43  ;;  %v5238_v60 = vld [vmem:[#allocation51_spill] sm:$0xff] }
 0x315   :  { %v1717_v56 = vmul.f32 %v5229_v46, %v4358_v45  ;;  %v1718_v7 = vmul.f32 %v5230_v24, %v4358_v45  ;;  %v4497_v32 = vsel %vm117_vm2, %v641_v28, 0.0  ;;  %v4501_v36 = vsel %vm118_vm15, %v642_v2, 0.0 }
 0x316   :  { %v1074_v45 = vadd.f32 %v1072_v63, %v1060_v44  ;;  %v1075_v53 = vadd.f32 %v1073_v5, %v1061_v27  ;;  %v5233_v40 = vrot.slane %v3841_v14, 7  ;;  %v5234_v3 = vrot.slane %v3847_v31, 7  ;;  %v1817_v34 = vpop.permute.xlu1 %1816 }
 0x317   :  { %v1719_v6 = vadd.f32 %v1717_v56, %v1707_v59  ;;  %v1720_v30 = vadd.f32 %v1718_v7, %v1708_v4  ;;  %v1440_v20 = vsel %vm163_vm5, %v4208_v1, %v1439_v9  ;;  %v1441_v38 = vsel %vm163_vm5, %v1439_v9, %v4208_v1 }
 0x318   :  { %v1729_v12 = vmul.f32 %v5233_v40, %v4380_v21  ;;  %v1730_v10 = vmul.f32 %v5234_v3, %v4380_v21  ;;  %v1086_v29 = vadd.f32 %v1084_v22, %v1074_v45  ;;  %v1087_v13 = vadd.f32 %v1085_v50, %v1075_v53 }
 0x319   :  { %v4517_v37 = vsel %vm93_vm10, %v1440_v20, 0.0  ;;  %v4521_v54 = vsel %vm94_vm12, %v1441_v38, 0.0  ;;  %v1108_v1 = vmul.f32 %v1104_v15, %v5237_v25  ;;  %v1109_v47 = vmul.f32 %v1105_v48, %v5237_v25 }
 0x31a   :  { %v1731_v31 = vadd.f32 %v1729_v12, %v1719_v6  ;;  %v1732_v21 = vadd.f32 %v1730_v10, %v1720_v30  ;;  %v1737_v49 = vmul.f32 %v4352_v41, %v4517_v37  ;;  %v1738_v42 = vmul.f32 %v4352_v41, %v4521_v54  ;;  %v1829_v7 = vpop.permute.xlu1 %1828  ;;  %v1805_v10 = vpop.permute.xlu0 %1804 }
 0x31b   :  { %v1747_v55 = vrot.slane %v4517_v37, 1  ;;  %v1748_v33 = vrot.slane %v4521_v54, 1  ;;  %v1116_v11 = vmul.f32 %v5238_v60, %v4497_v32  ;;  %v1117_v26 = vmul.f32 %v5238_v60, %v4501_v36 }
 0x31c   :  { %v1739_v19 = vadd.f32 %v1737_v49, %v1731_v31  ;;  %v1740_v63 = vadd.f32 %v1738_v42, %v1732_v21  ;;  %v1098_v5 = vadd.f32 %v1096_v51, %v1086_v29  ;;  %v1099_v59 = vadd.f32 %v1097_v18, %v1087_v13  ;;  %v5239_v49 = vld [vmem:[#allocation52_spill] sm:$0xff] }
 0x31d   :  { %v1751_v41 = vmul.f32 %v1747_v55, %v4402_v8  ;;  %v1752_v4 = vmul.f32 %v1748_v33, %v4402_v8  ;;  %v1759_v15 = vrot.slane %v4517_v37, 2  ;;  %v1760_v48 = vrot.slane %v4521_v54, 2 }
 0x31e   :  { %v1771_v61 = vrot.slane %v4517_v37, 3  ;;  %v1772_v0 = vrot.slane %v4521_v54, 3  ;;  %v1783_v28 = vrot.slane %v4517_v37, 4  ;;  %v1784_v2 = vrot.slane %v4521_v54, 4 }
 0x31f   :  { %v1753_v39 = vadd.f32 %v1751_v41, %v1739_v19  ;;  %v1754_v35 = vadd.f32 %v1752_v4, %v1740_v63  ;;  %v1126_v46 = vrot.slane %v4497_v32, 1  ;;  %v1127_v56 = vrot.slane %v4501_v36, 1  ;;  %v1851_v20 = vpop.permute.xlu1 %1850 }
 0x320   :  { %v1763_v8 = vmul.f32 %v1759_v15, %v4425_v58  ;;  %v1764_v24 = vmul.f32 %v1760_v48, %v4425_v58  ;;  %v1110_v62 = vadd.f32 %v1108_v1, %v1098_v5  ;;  %v1111_v22 = vadd.f32 %v1109_v47, %v1099_v59 }
 0x321   :  { %v1775_v50 = vmul.f32 %v1771_v61, %v4392_v17  ;;  %v1776_v44 = vmul.f32 %v1772_v0, %v4392_v17  ;;  %v1795_v51 = vrot.slane %v4517_v37, 5  ;;  %v1796_v18 = vrot.slane %v4521_v54, 5 }
 0x322   :  { %v1765_v27 = vadd.f32 %v1763_v8, %v1753_v39  ;;  %v1766_v43 = vadd.f32 %v1764_v24, %v1754_v35  ;;  %v1138_v6 = vrot.slane %v4497_v32, 2  ;;  %v1139_v30 = vrot.slane %v4501_v36, 2  ;;  %v5243_v35 = vld [vmem:[#allocation31_spill] sm:$0xff]  ;;  %v1837_v8 = vpop.permute.xlu0 %1836 }
 0x323   :  { %v1787_v45 = vmul.f32 %v1783_v28, %v4451_v16  ;;  %v1788_v58 = vmul.f32 %v1784_v2, %v4451_v16  ;;  %v1807_v40 = vrot.slane %v4517_v37, 6  ;;  %v1808_v17 = vrot.slane %v4521_v54, 6 }
 0x324   :  { %v1777_v53 = vadd.f32 %v1775_v50, %v1765_v27  ;;  %v1778_v9 = vadd.f32 %v1776_v44, %v1766_v43  ;;  %v1819_v12 = vrot.slane %v4517_v37, 7  ;;  %v1820_v3 = vrot.slane %v4521_v54, 7 }
 0x325   :  { %v1118_v38 = vadd.f32 %v1116_v11, %v1110_v62  ;;  %v1119_v29 = vadd.f32 %v1117_v26, %v1111_v22  ;;  %v1799_v21 = vmul.f32 %v1795_v51, %v4475_v52  ;;  %v1800_v16 = vmul.f32 %v1796_v18, %v4475_v52  ;;  %v1447_v26 = vpop.permute.xlu1 %1446  ;;  %v5240_v52 = vld [vmem:[#allocation30_spill] sm:$0xff] }
 0x326   :  { %v1789_v13 = vadd.f32 %v1787_v45, %v1777_v53  ;;  %v1790_v31 = vadd.f32 %v1788_v58, %v1778_v9  ;;  %v1130_v42 = vmul.f32 %v1126_v46, %v5239_v49  ;;  %v1131_v25 = vmul.f32 %v1127_v56, %v5239_v49 }
 0x327   :  { %v1150_v1 = vrot.slane %v4497_v32, 3  ;;  %v1151_v37 = vrot.slane %v4501_v36, 3  ;;  %v1811_v55 = vmul.f32 %v1807_v40, %v1805_v10  ;;  %v1812_v33 = vmul.f32 %v1808_v17, %v1805_v10 }
 0x328   :  { %v1801_v47 = vadd.f32 %v1799_v21, %v1789_v13  ;;  %v1802_v54 = vadd.f32 %v1800_v16, %v1790_v31  ;;  %v1823_v60 = vmul.f32 %v1819_v12, %v1817_v34  ;;  %v1824_v11 = vmul.f32 %v1820_v3, %v1817_v34  ;;  %v5244_v3 = vld [vmem:[#allocation53_spill] sm:$0xff]  ;;  %v1875_v21 = vpop.permute.xlu0 %1874 }
 0x329   :  { %v1132_v19 = vadd.f32 %v1130_v42, %v1118_v38  ;;  %v1133_v63 = vadd.f32 %v1131_v25, %v1119_v29  ;;  %v1448_v41 = vsel %vm172_vm11, %v5240_v52, %v1447_v26  ;;  %v1449_v4 = vsel %vm172_vm11, %v1447_v26, %v5240_v52  ;;  %v1863_v24 = vpop.permute.xlu1 %1862  ;;  %v5245_v29 = vld [vmem:[#allocation54_spill] sm:$0xff] }
 0x32a   :  { %v1813_v5 = vadd.f32 %v1811_v55, %v1801_v47  ;;  %v1814_v59 = vadd.f32 %v1812_v33, %v1802_v54  ;;  %v1162_v15 = vrot.slane %v4497_v32, 4  ;;  %v1163_v48 = vrot.slane %v4501_v36, 4 }
 0x32b   :  { %v4575_v34 = vsel %vm101_vm13, %v1448_v41, 0.0  ;;  %v4579_v39 = vsel %vm102_vm14, %v1449_v4, 0.0  ;;  %v1142_v28 = vmul.f32 %v1138_v6, %v5243_v35  ;;  %v1143_v2 = vmul.f32 %v1139_v30, %v5243_v35 }
 0x32c   :  { %v1825_v46 = vadd.f32 %v1823_v60, %v1813_v5  ;;  %v1826_v56 = vadd.f32 %v1824_v11, %v1814_v59  ;;  %v1831_v32 = vmul.f32 %v1829_v7, %v4575_v34  ;;  %v1832_v36 = vmul.f32 %v1829_v7, %v4579_v39 }
 0x32d   :  { %v1841_v62 = vrot.slane %v4575_v34, 1  ;;  %v1842_v22 = vrot.slane %v4579_v39, 1  ;;  %v1853_v50 = vrot.slane %v4575_v34, 2  ;;  %v1854_v44 = vrot.slane %v4579_v39, 2  ;;  %v1887_v16 = vpop.permute.xlu1 %1886 }
 0x32e   :  { %v1144_v27 = vadd.f32 %v1142_v28, %v1132_v19  ;;  %v1145_v43 = vadd.f32 %v1143_v2, %v1133_v63  ;;  %v1833_v51 = vadd.f32 %v1831_v32, %v1825_v46  ;;  %v1834_v18 = vadd.f32 %v1832_v36, %v1826_v56 }
 0x32f   :  { %v1845_v6 = vmul.f32 %v1841_v62, %v1837_v8  ;;  %v1846_v30 = vmul.f32 %v1842_v22, %v1837_v8  ;;  %v1877_v45 = vrot.slane %v4575_v34, 4  ;;  %v1878_v58 = vrot.slane %v4579_v39, 4 }
 0x330   :  { %v1865_v7 = vrot.slane %v4575_v34, 3  ;;  %v1866_v53 = vrot.slane %v4579_v39, 3  ;;  %v1857_v17 = vmul.f32 %v1853_v50, %v1851_v20  ;;  %v1858_v12 = vmul.f32 %v1854_v44, %v1851_v20 }
 0x331   :  { %v1847_v9 = vadd.f32 %v1845_v6, %v1833_v51  ;;  %v1848_v40 = vadd.f32 %v1846_v30, %v1834_v18  ;;  %v1154_v10 = vmul.f32 %v1150_v1, %v5244_v3  ;;  %v1155_v38 = vmul.f32 %v1151_v37, %v5244_v3 }
 0x332   :  { %v1166_v13 = vmul.f32 %v1162_v15, %v5245_v29  ;;  %v1167_v31 = vmul.f32 %v1163_v48, %v5245_v29  ;;  %v1869_v25 = vmul.f32 %v1865_v7, %v1863_v24  ;;  %v1870_v47 = vmul.f32 %v1866_v53, %v1863_v24  ;;  %v1899_v15 = vpop.permute.xlu1 %1898  ;;  %v1911_v48 = vpop.permute.xlu0 %1910  ;;  %v2911_v53 = vld [vmem:[#allocation5 + $0x38] sm:$0xff] }
 0x333   :  { %v1859_v49 = vadd.f32 %v1857_v17, %v1847_v9  ;;  %v1860_v42 = vadd.f32 %v1858_v12, %v1848_v40  ;;  %v1881_v54 = vmul.f32 %v1877_v45, %v1875_v21  ;;  %v1882_v55 = vmul.f32 %v1878_v58, %v1875_v21  ;;  %v4617_v9 = vld [vmem:[#allocation5 + $0x40] sm:$0xff] }
 0x334   :  { %v1156_v33 = vadd.f32 %v1154_v10, %v1144_v27  ;;  %v1157_v60 = vadd.f32 %v1155_v38, %v1145_v43  ;;  %v1889_v1 = vrot.slane %v4575_v34, 5  ;;  %v1890_v37 = vrot.slane %v4579_v39, 5 }
 0x335   :  { %v1871_v11 = vadd.f32 %v1869_v25, %v1859_v49  ;;  %v1872_v20 = vadd.f32 %v1870_v47, %v1860_v42  ;;  %v1913_v26 = vrot.slane %v4575_v34, 7  ;;  %v1914_v19 = vrot.slane %v4579_v39, 7 }
 0x336   :  { %v1901_v63 = vrot.slane %v4575_v34, 6  ;;  %v1902_v5 = vrot.slane %v4579_v39, 6  ;;  %v1893_v41 = vmul.f32 %v1889_v1, %v1887_v16  ;;  %v1894_v4 = vmul.f32 %v1890_v37, %v1887_v16  ;;  %v1923_v22 = vpop.permute.xlu1 %1922  ;;  %v5246_v34 = vld [vmem:[#allocation33_spill] sm:$0xff] }
 0x337   :  { %v1883_v59 = vadd.f32 %v1881_v54, %v1871_v11  ;;  %v1884_v52 = vadd.f32 %v1882_v55, %v1872_v20  ;;  %v1168_v56 = vadd.f32 %v1166_v13, %v1156_v33  ;;  %v1169_v8 = vadd.f32 %v1167_v31, %v1157_v60 }
 0x338   :  { %v1905_v35 = vmul.f32 %v1901_v63, %v1899_v15  ;;  %v1906_v28 = vmul.f32 %v1902_v5, %v1899_v15  ;;  %v1917_v24 = vmul.f32 %v1913_v26, %v1911_v48  ;;  %v1918_v32 = vmul.f32 %v1914_v19, %v1911_v48  ;;  %v1970_v26 = vpop.permute.xlu0 %1969 }
 0x339   :  { %v1895_v2 = vadd.f32 %v1893_v41, %v1883_v59  ;;  %v1896_v46 = vadd.f32 %v1894_v4, %v1884_v52  ;;  %v1174_v50 = vadd.f32 %v5246_v34, %v1168_v56  ;;  %v1175_v39 = vadd.f32 %v5246_v34, %v1169_v8  ;;  %v5271_v8 = vld [vmem:[#allocation13_spill] sm:$0xff] }
 0x33a   :  { %v5249_v40 = vmov 0   ;;  %v5250_v17 = vmov 3   ;;  %v5251_v12 = vmov 6   ;;  %v5252_v3 = vmov 9  }
 0x33b   :  { %v1907_v36 = vadd.f32 %v1905_v35, %v1895_v2  ;;  %v1908_v62 = vadd.f32 %v1906_v28, %v1896_v46  ;;  %v1176_v18 = vmax.f32 %v1174_v50, 0.0  ;;  %v1177_v6 = vmax.f32 %v1175_v39, 0.0  ;;  %v1984_v11 = vpop.permute.xlu1 %1983  ;;  %v5270_v28 = vld [vmem:[#allocation12_spill] sm:$0xff] }
 0x33c   :  { %v5253_v10 = vmov 12   ;;  %v5254_v38 = vmov 1   ;;  %v5255_v29 = vmov 15   ;;  %v5256_v13 = vmov 2   ;;  %v2000_v63 = vpop.permute.xlu0 %1999 }
 0x33d   :  { %v1919_v44 = vadd.f32 %v1917_v24, %v1907_v36  ;;  %v1920_v27 = vadd.f32 %v1918_v32, %v1908_v62  ;;  %v5257_v31 = vmov 18   ;;  %v5258_v21 = vmov 4  }
 0x33e   :  { %v5259_v16 = vmov 21   ;;  %v5260_v49 = vmov 5   ;;  %v5261_v42 = vmov 7   ;;  %v5262_v25 = vmov 8  }
 0x33f   :  { %v1925_v43 = vadd.f32 %v1923_v22, %v1919_v44  ;;  %v1926_v51 = vadd.f32 %v1923_v22, %v1920_v27  ;;  %v5263_v47 = vmov 10   ;;  %v5264_v54 = vmov 11  }
 0x340   :  { %v5265_v55 = vmov 13   ;;  %v5266_v33 = vmov 14   ;;  %v5267_v60 = vmov 16   ;;  %v2032_v20 = vpop.permute.xlu1 %2031  ;;  %v2016_v35 = vpop.permute.xlu0 %2015 }
 0x341   :  { %v1929_v30 = vrot.slane %v1925_v43, 7  ;;  %v1930_v45 = vrot.slane %v1926_v51, 7 }
 0x343   :  { %v4606_v58 = vsel %vm5247_vm7, %v1176_v18, %v1929_v30  ;;  %v4609_v7 = vsel %vm5248_vm0, %v1177_v6, %v1930_v45 }
 0x344   :  { %1961 = vrot.lane.b32.xlu0 %v4609_v7, %s2988_s23  ;;  %1935 = vrot.lane.b32.xlu1 %v4606_v58, %s2984_s0  ;;  %v2064_v34 = vpop.permute.xlu0 %2063 }
 0x345   :  { %v2048_v1 = vpop.permute.xlu1 %2047 }
 0x348   :  { %2127 = vperm.xlu0 %2868, %v2911_v53   ;;  %1937 = vrot.lane.b32.xlu1 %v4609_v7, %s2984_s0 }
 0x34a   :  { %v4665_v37 = vpop.permute.xlu1 %2095 }
 0x34c   :  { %2869 = vset.pattern.permute.xlu0 %v5249_v40  ;;  %1943 = vrot.lane.b32.xlu1 %v4606_v58, %s2986_s21 }
 0x34d   :  { %2168 = vperm.xlu0 %2869, %v4617_v9  }
 0x350   :  { %1945 = vrot.lane.b32.xlu1 %v4609_v7, %s2986_s21 }
 0x351   :  { %2872 = vset.pattern.permute.xlu0 %v5250_v17 }
 0x352   :  { %2200 = vperm.xlu0 %2872, %v4617_v9  }
 0x354   :  { %1951 = vrot.lane.b32.xlu1 %v4606_v58, %s2987_s22 }
 0x356   :  { %2875 = vset.pattern.permute.xlu0 %v5251_v12 }
 0x357   :  { %2236 = vperm.xlu0 %2875, %v4617_v9  }
 0x358   :  { %1953 = vrot.lane.b32.xlu1 %v4609_v7, %s2987_s22 }
 0x35b   :  { %2878 = vset.pattern.permute.xlu0 %v5252_v3 }
 0x35c   :  { %2268 = vperm.xlu0 %2878, %v4617_v9   ;;  %1959 = vrot.lane.b32.xlu1 %v4606_v58, %s2988_s23 }
 0x360   :  { %2881 = vset.pattern.permute.xlu0 %v5253_v10  ;;  %2111 = vperm.xlu1 %2867, %v2911_v53  }
 0x361   :  { %2306 = vperm.xlu0 %2881, %v4617_v9  }
 0x364   :  { %2870 = vset.pattern.permute.xlu1 %v5254_v38 }
 0x365   :  { %2884 = vset.pattern.permute.xlu0 %v5255_v29  ;;  %2174 = vperm.xlu1 %2870, %v4617_v9   ;;  %v2037_v29 = vrot.slane %v4606_v58, %v5270_v28 }
 0x366   :  { %2342 = vperm.xlu0 %2884, %v4617_v9  }
 0x369   :  { %2871 = vset.pattern.permute.xlu1 %v5256_v13  ;;  %v2041_v13 = vrot.slane %v4609_v7, %v5270_v28 }
 0x36a   :  { %2887 = vset.pattern.permute.xlu0 %v5257_v31  ;;  %2188 = vperm.xlu1 %2871, %v4617_v9   ;;  %v2080_v31 = vpop.permute.xlu0 %2079 }
 0x36b   :  { %2376 = vperm.xlu0 %2887, %v4617_v9  }
 0x36e   :  { %2873 = vset.pattern.permute.xlu1 %v5258_v21 }
 0x36f   :  { %2212 = vperm.xlu1 %2873, %v4617_v9   ;;  %2890 = vset.pattern.permute.xlu0 %v5259_v16 }
 0x373   :  { %2874 = vset.pattern.permute.xlu1 %v5260_v49 }
 0x374   :  { %2224 = vperm.xlu1 %2874, %v4617_v9  }
 0x378   :  { %2876 = vset.pattern.permute.xlu1 %v5261_v42 }
 0x379   :  { %2248 = vperm.xlu1 %2876, %v4617_v9  }
 0x37d   :  { %2877 = vset.pattern.permute.xlu1 %v5262_v25  ;;  %v2042_v25 = vmul.f32 %v2037_v29, %v2032_v20 }
 0x37e   :  { %2260 = vperm.xlu1 %2877, %v4617_v9  }
 0x382   :  { %2879 = vset.pattern.permute.xlu1 %v5263_v47  ;;  %v2043_v47 = vmul.f32 %v2041_v13, %v2032_v20 }
 0x383   :  { %2282 = vperm.xlu1 %2879, %v4617_v9  }
 0x387   :  { %2880 = vset.pattern.permute.xlu1 %v5264_v54  ;;  %v2053_v54 = vrot.slane %v4606_v58, %v5271_v8 }
 0x388   :  { %2294 = vperm.xlu1 %2880, %v4617_v9  }
 0x38c   :  { %2882 = vset.pattern.permute.xlu1 %v5265_v55  ;;  %v2057_v55 = vrot.slane %v4609_v7, %v5271_v8 }
 0x38d   :  { %2318 = vperm.xlu1 %2882, %v4617_v9  }
 0x391   :  { %2883 = vset.pattern.permute.xlu1 %v5266_v33 }
 0x392   :  { %2330 = vperm.xlu1 %2883, %v4617_v9  }
 0x396   :  { %2885 = vset.pattern.permute.xlu1 %v5267_v60 }
 0x3b6   :  { %v1936_v19 = vpop.permute.xlu1 %1935 }
 0x3ba   :  { %v1938_v5 = vpop.permute.xlu1 %1937 }
 0x3bb   :  { %v1939_v59 = vsel %vm145_vm1, %v1936_v19, %v1938_v5  ;;  %v1940_v52 = vsel %vm145_vm1, %v1938_v5, %v1936_v19  ;;  %v2059_v5 = vmul.f32 %v2057_v55, %v2048_v1  ;;  %v5278_v55 = vmov 30  }
 0x3bc   :  { %v1941_v4 = vsel %vm75_vm4, %v1940_v52, 0.0  ;;  %v1942_v48 = vsel %vm76_vm8, %v1939_v59, 0.0 }
 0x3bd   :  { %v1975_v2 = vrot.slane %v1941_v4, %v5270_v28  ;;  %v1979_v46 = vrot.slane %v1942_v48, %v5270_v28  ;;  %v1989_v24 = vrot.slane %v1941_v4, %v5271_v8  ;;  %v1993_v32 = vrot.slane %v1942_v48, %v5271_v8 }
 0x3be   :  { %v1944_v56 = vpop.permute.xlu1 %1943 }
 0x3bf   :  { %v1980_v36 = vmul.f32 %v1975_v2, %v1970_v26  ;;  %v1981_v62 = vmul.f32 %v1979_v46, %v1970_v26  ;;  %v1994_v50 = vmul.f32 %v1989_v24, %v1984_v11  ;;  %v1995_v39 = vmul.f32 %v1993_v32, %v1984_v11 }
 0x3c1   :  { %v1996_v12 = vadd.f32 %v1994_v50, %v1980_v36  ;;  %v1997_v3 = vadd.f32 %v1995_v39, %v1981_v62 }
 0x3c2   :  { %v1946_v22 = vpop.permute.xlu1 %1945 }
 0x3c3   :  { %v1947_v44 = vsel %vm154_vm3, %v1944_v56, %v1946_v22  ;;  %v1948_v27 = vsel %vm154_vm3, %v1946_v22, %v1944_v56 }
 0x3c4   :  { %v1949_v51 = vsel %vm83_vm6, %v1948_v27, 0.0  ;;  %v1950_v6 = vsel %vm84_vm9, %v1947_v44, 0.0 }
 0x3c5   :  { %v2005_v30 = vrot.slane %v1949_v51, %v5270_v28  ;;  %v2009_v45 = vrot.slane %v1950_v6, %v5270_v28  ;;  %v2021_v53 = vrot.slane %v1949_v51, %v5271_v8  ;;  %v2025_v40 = vrot.slane %v1950_v6, %v5271_v8 }
 0x3c6   :  { %v1952_v17 = vpop.permute.xlu1 %1951 }
 0x3c7   :  { %v2010_v10 = vmul.f32 %v2005_v30, %v2000_v63  ;;  %v2011_v38 = vmul.f32 %v2009_v45, %v2000_v63  ;;  %v2026_v49 = vmul.f32 %v2021_v53, %v2016_v35  ;;  %v2027_v42 = vmul.f32 %v2025_v40, %v2016_v35  ;;  %v1962_v35 = vpop.permute.xlu0 %1961 }
 0x3c8   :  { %v2058_v63 = vmul.f32 %v2053_v54, %v2048_v1  ;;  %v5277_v54 = vmov 19  }
 0x3c9   :  { %v2012_v21 = vadd.f32 %v2010_v10, %v1996_v12  ;;  %v2013_v16 = vadd.f32 %v2011_v38, %v1997_v3 }
 0x3ca   :  { %v1954_v33 = vpop.permute.xlu1 %1953 }
 0x3cb   :  { %v2028_v60 = vadd.f32 %v2026_v49, %v2012_v21  ;;  %v2029_v11 = vadd.f32 %v2027_v42, %v2013_v16  ;;  %v1955_v26 = vsel %vm163_vm5, %v1952_v17, %v1954_v33  ;;  %v1956_v19 = vsel %vm163_vm5, %v1954_v33, %v1952_v17 }
 0x3cc   :  { %v1957_v20 = vsel %vm93_vm10, %v1955_v26, 0.0  ;;  %v1958_v58 = vsel %vm94_vm12, %v1956_v19, 0.0  ;;  %v5279_v33 = vmov 20   ;;  %v5282_v26 = vmov 36  }
 0x3cd   :  { %v2044_v59 = vadd.f32 %v2042_v25, %v2028_v60  ;;  %v2045_v52 = vadd.f32 %v2043_v47, %v2029_v11  ;;  %v2069_v7 = vrot.slane %v1957_v20, %v5270_v28  ;;  %v2073_v4 = vrot.slane %v1958_v58, %v5270_v28 }
 0x3ce   :  { %v1960_v48 = vpop.permute.xlu1 %1959  ;;  %v2085_v22 = vrot.slane %v1957_v20, %v5271_v8  ;;  %v2089_v50 = vrot.slane %v1958_v58, %v5271_v8  ;;  %v5275_v25 = vmov 17   ;;  %v5276_v47 = vmov 27  }
 0x3cf   :  { %v2060_v2 = vadd.f32 %v2058_v63, %v2044_v59  ;;  %v2061_v46 = vadd.f32 %v2059_v5, %v2045_v52  ;;  %v2074_v56 = vmul.f32 %v2069_v7, %v2064_v34  ;;  %v2075_v24 = vmul.f32 %v2073_v4, %v2064_v34 }
 0x3d0   :  { %v1963_v1 = vsel %vm172_vm11, %v1960_v48, %v1962_v35  ;;  %v1964_v32 = vsel %vm172_vm11, %v1962_v35, %v1960_v48  ;;  %v2090_v51 = vmul.f32 %v2085_v22, %v2080_v31  ;;  %v2091_v6 = vmul.f32 %v2089_v50, %v2080_v31 }
 0x3d1   :  { %v1965_v36 = vsel %vm101_vm13, %v1963_v1, 0.0  ;;  %v1966_v62 = vsel %vm102_vm14, %v1964_v32, 0.0  ;;  %v2076_v39 = vadd.f32 %v2074_v56, %v2060_v2  ;;  %v2077_v44 = vadd.f32 %v2075_v24, %v2061_v46 }
 0x3d2   :  { %v2101_v34 = vrot.slane %v1965_v36, %v5270_v28  ;;  %v2105_v27 = vrot.slane %v1966_v62, %v5270_v28  ;;  %v2117_v17 = vrot.slane %v1965_v36, %v5271_v8  ;;  %v2121_v12 = vrot.slane %v1966_v62, %v5271_v8  ;;  %v2128_v28 = vpop.permute.xlu0 %2127 }
 0x3d3   :  { %v2092_v53 = vadd.f32 %v2090_v51, %v2076_v39  ;;  %v2093_v40 = vadd.f32 %v2091_v6, %v2077_v44  ;;  %v5274_v8 = vmov 24   ;;  %v5280_v60 = vmov 33  }
 0x3d4   :  { %v2106_v30 = vmul.f32 %v2101_v34, %v4665_v37  ;;  %v2107_v45 = vmul.f32 %v2105_v27, %v4665_v37  ;;  %v5281_v11 = vmov 22   ;;  %v5283_v19 = vmov 23  }
 0x3d5   :  { %v5284_v63 = vmov 39   ;;  %v5285_v5 = vmov 25   ;;  %v5286_v20 = vmov 40   ;;  %v5287_v58 = vmov 26  }
 0x3d6   :  { %v2108_v10 = vadd.f32 %v2106_v30, %v2092_v53  ;;  %v2109_v38 = vadd.f32 %v2107_v45, %v2093_v40  ;;  %v5288_v59 = vmov 28   ;;  %v5289_v7 = vmov 29   ;;  %v2169_v44 = vpop.permute.xlu0 %2168 }
 0x3d7   :  { %v5290_v48 = vmov 31   ;;  %v5291_v2 = vmov 32   ;;  %v5292_v56 = vmov 34   ;;  %v5293_v1 = vmov 35  }
 0x3d8   :  { %v5294_v36 = vmov 37   ;;  %v5295_v22 = vmov 38  }
 0x3da   :  { %v2201_v27 = vpop.permute.xlu0 %2200 }
 0x3db   :  { %v2112_v3 = vpop.permute.xlu1 %2111 }
 0x3dc   :  { %v2122_v29 = vmul.f32 %v2117_v17, %v2112_v3  ;;  %v2123_v13 = vmul.f32 %v2121_v12, %v2112_v3 }
 0x3de   :  { %v2124_v21 = vadd.f32 %v2122_v29, %v2108_v10  ;;  %v2125_v16 = vadd.f32 %v2123_v13, %v2109_v38  ;;  %v2237_v6 = vpop.permute.xlu0 %2236 }
 0x3e0   :  { %v2130_v49 = vadd.f32 %v2128_v28, %v2124_v21  ;;  %v2131_v31 = vadd.f32 %v2128_v28, %v2125_v16  ;;  %v2175_v52 = vpop.permute.xlu1 %2174 }
 0x3e2   :  { %v4725_v42 = vmax.f32 %v2130_v49, 0.0  ;;  %v4731_v37 = vmax.f32 %v2131_v31, 0.0  ;;  %v4812_v38 = vpop.permute.xlu0 %2268 }
 0x3e4   :  { %2142 = vrot.lane.b32.xlu0 %v4725_v42, %s2986_s21  ;;  %2134 = vrot.lane.b32.xlu1 %v4725_v42, %s2984_s0 }
 0x3e5   :  { %v2189_v4 = vpop.permute.xlu1 %2188 }
 0x3e6   :  { %v4814_v15 = vpop.permute.xlu0 %2306 }
 0x3e8   :  { %2412 = vperm.xlu0 %2890, %v4617_v9   ;;  %2136 = vrot.lane.b32.xlu1 %v4731_v37, %s2984_s0 }
 0x3ea   :  { %v2213_v35 = vpop.permute.xlu1 %2212 }
 0x3ec   :  { %2893 = vset.pattern.permute.xlu0 %v5274_v8  ;;  %2354 = vperm.xlu1 %2885, %v4617_v9  }
 0x3ed   :  { %2448 = vperm.xlu0 %2893, %v4617_v9  }
 0x3ef   :  { %v2225_v46 = vpop.permute.xlu1 %2224 }
 0x3f0   :  { %2886 = vset.pattern.permute.xlu1 %v5275_v25 }
 0x3f1   :  { %2896 = vset.pattern.permute.xlu0 %v5276_v47  ;;  %2362 = vperm.xlu1 %2886, %v4617_v9  }
 0x3f2   :  { %2482 = vperm.xlu0 %2896, %v4617_v9  }
 0x3f4   :  { %v4784_v24 = vpop.permute.xlu1 %2248 }
 0x3f5   :  { %2888 = vset.pattern.permute.xlu1 %v5277_v54 }
 0x3f6   :  { %2150 = vrot.lane.b32.xlu0 %v4725_v42, %s2987_s22  ;;  %2388 = vperm.xlu1 %2888, %v4617_v9  }
 0x3f7   :  { %2899 = vset.pattern.permute.xlu0 %v5278_v55 }
 0x3f9   :  { %v4788_v32 = vpop.permute.xlu1 %2260 }
 0x3fa   :  { %2518 = vperm.xlu0 %2899, %v4617_v9   ;;  %2144 = vrot.lane.b32.xlu1 %v4731_v37, %s2986_s21 }
 0x3fb   :  { %2889 = vset.pattern.permute.xlu1 %v5279_v33 }
 0x3fe   :  { %2902 = vset.pattern.permute.xlu0 %v5280_v60  ;;  %2400 = vperm.xlu1 %2889, %v4617_v9   ;;  %v4792_v62 = vpop.permute.xlu1 %2282 }
 0x3ff   :  { %2550 = vperm.xlu0 %2902, %v4617_v9  }
 0x402   :  { %2891 = vset.pattern.permute.xlu1 %v5281_v11 }
 0x403   :  { %2158 = vrot.lane.b32.xlu0 %v4725_v42, %s2988_s23  ;;  %2424 = vperm.xlu1 %2891, %v4617_v9   ;;  %v4797_v50 = vpop.permute.xlu1 %2294 }
 0x404   :  { %2905 = vset.pattern.permute.xlu0 %v5282_v26 }
 0x407   :  { %2892 = vset.pattern.permute.xlu1 %v5283_v19  ;;  %2588 = vperm.xlu0 %2905, %v4617_v9  }
 0x408   :  { %2436 = vperm.xlu1 %2892, %v4617_v9   ;;  %v4800_v39 = vpop.permute.xlu1 %2318 }
 0x40b   :  { %2908 = vset.pattern.permute.xlu0 %v5284_v63 }
 0x40c   :  { %2894 = vset.pattern.permute.xlu1 %v5285_v5  ;;  %2624 = vperm.xlu0 %2908, %v4617_v9  }
 0x40d   :  { %2456 = vperm.xlu1 %2894, %v4617_v9   ;;  %v4802_v34 = vpop.permute.xlu1 %2330 }
 0x410   :  { %2910 = vset.pattern.permute.xlu0 %v5286_v20 }
 0x411   :  { %2895 = vset.pattern.permute.xlu1 %v5287_v58 }
 0x412   :  { %2470 = vperm.xlu1 %2895, %v4617_v9  }
 0x416   :  { %2897 = vset.pattern.permute.xlu1 %v5288_v59 }
 0x417   :  { %2494 = vperm.xlu1 %2897, %v4617_v9  }
 0x41b   :  { %2898 = vset.pattern.permute.xlu1 %v5289_v7 }
 0x41c   :  { %2506 = vperm.xlu1 %2898, %v4617_v9  }
 0x420   :  { %2152 = vrot.lane.b32.xlu1 %v4731_v37, %s2987_s22 }
 0x421   :  { %2900 = vset.pattern.permute.xlu1 %v5290_v48 }
 0x424   :  { %2530 = vperm.xlu1 %2900, %v4617_v9  }
 0x428   :  { %2901 = vset.pattern.permute.xlu1 %v5291_v2 }
 0x429   :  { %2542 = vperm.xlu1 %2901, %v4617_v9  }
 0x42d   :  { %2903 = vset.pattern.permute.xlu1 %v5292_v56 }
 0x42e   :  { %2564 = vperm.xlu1 %2903, %v4617_v9  }
 0x432   :  { %2160 = vrot.lane.b32.xlu1 %v4731_v37, %s2988_s23 }
 0x433   :  { %2904 = vset.pattern.permute.xlu1 %v5293_v1 }
 0x436   :  { %2576 = vperm.xlu1 %2904, %v4617_v9  }
 0x43a   :  { %2906 = vset.pattern.permute.xlu1 %v5294_v36 }
 0x43b   :  { %2600 = vperm.xlu1 %2906, %v4617_v9  }
 0x43f   :  { %2907 = vset.pattern.permute.xlu1 %v5295_v22 }
 0x440   :  { %2612 = vperm.xlu1 %2907, %v4617_v9  }
 0x444   :  { %2909 = vset.pattern.permute.xlu1 %v5286_v20 }
 0x445   :  { %2636 = vperm.xlu1 %2909, %v4617_v9  }
 0x456   :  { %v2135_v51 = vpop.permute.xlu1 %2134 }
 0x45a   :  { %v2137_v30 = vpop.permute.xlu1 %2136 }
 0x45b   :  { %v2138_v45 = vsel %vm145_vm1, %v2135_v51, %v2137_v30  ;;  %v2139_v53 = vsel %vm145_vm1, %v2137_v30, %v2135_v51 }
 0x45c   :  { %v2140_v40 = vsel %vm75_vm4, %v2139_v53, 0.0  ;;  %v2141_v9 = vsel %vm76_vm8, %v2138_v45, 0.0 }
 0x45d   :  { %v2179_v17 = vrot.slane %v2140_v40, 1  ;;  %v2180_v12 = vrot.slane %v2141_v9, 1  ;;  %v2191_v3 = vrot.slane %v2140_v40, 2  ;;  %v2192_v10 = vrot.slane %v2141_v9, 2 }
 0x45e   :  { %v2171_v29 = vmul.f32 %v2169_v44, %v2140_v40  ;;  %v2172_v13 = vmul.f32 %v2169_v44, %v2141_v9  ;;  %v2203_v28 = vrot.slane %v2140_v40, 3  ;;  %v2204_v49 = vrot.slane %v2141_v9, 3 }
 0x45f   :  { %v2183_v21 = vmul.f32 %v2179_v17, %v2175_v52  ;;  %v2184_v16 = vmul.f32 %v2180_v12, %v2175_v52  ;;  %v2195_v25 = vmul.f32 %v2191_v3, %v2189_v4  ;;  %v2196_v41 = vmul.f32 %v2192_v10, %v2189_v4  ;;  %v4818_v52 = vpop.permute.xlu0 %2342 }
 0x460   :  { %v2207_v55 = vmul.f32 %v2203_v28, %v2201_v27  ;;  %v2208_v33 = vmul.f32 %v2204_v49, %v2201_v27  ;;  %v2215_v60 = vrot.slane %v2140_v40, 4  ;;  %v2216_v11 = vrot.slane %v2141_v9, 4 }
 0x461   :  { %v2185_v31 = vadd.f32 %v2183_v21, %v2171_v29  ;;  %v2186_v8 = vadd.f32 %v2184_v16, %v2172_v13  ;;  %v2227_v58 = vrot.slane %v2140_v40, 5  ;;  %v2228_v59 = vrot.slane %v2141_v9, 5 }
 0x462   :  { %v2219_v5 = vmul.f32 %v2215_v60, %v2213_v35  ;;  %v2220_v20 = vmul.f32 %v2216_v11, %v2213_v35  ;;  %v2239_v1 = vrot.slane %v2140_v40, 6  ;;  %v2240_v36 = vrot.slane %v2141_v9, 6 }
 0x463   :  { %v2197_v47 = vadd.f32 %v2195_v25, %v2185_v31  ;;  %v2198_v54 = vadd.f32 %v2196_v41, %v2186_v8  ;;  %v2231_v2 = vmul.f32 %v2227_v58, %v2225_v46  ;;  %v2232_v56 = vmul.f32 %v2228_v59, %v2225_v46  ;;  %v4822_v27 = vpop.permute.xlu0 %2376 }
 0x464   :  { %v2243_v51 = vmul.f32 %v2239_v1, %v2237_v6  ;;  %v2244_v30 = vmul.f32 %v2240_v36, %v2237_v6  ;;  %v2251_v45 = vrot.slane %v2140_v40, 7  ;;  %v2252_v35 = vrot.slane %v2141_v9, 7 }
 0x465   :  { %v2209_v26 = vadd.f32 %v2207_v55, %v2197_v47  ;;  %v2210_v19 = vadd.f32 %v2208_v33, %v2198_v54 }
 0x466   :  { %v2255_v10 = vmul.f32 %v2251_v45, %v4784_v24  ;;  %v2256_v29 = vmul.f32 %v2252_v35, %v4784_v24 }
 0x467   :  { %v4816_v63 = vpop.permute.xlu1 %2354  ;;  %v2221_v7 = vadd.f32 %v2219_v5, %v2209_v26  ;;  %v2222_v4 = vadd.f32 %v2220_v20, %v2210_v19  ;;  %v2143_v3 = vpop.permute.xlu0 %2142 }
 0x469   :  { %v2233_v22 = vadd.f32 %v2231_v2, %v2221_v7  ;;  %v2234_v44 = vadd.f32 %v2232_v56, %v2222_v4 }
 0x46b   :  { %v2245_v17 = vadd.f32 %v2243_v51, %v2233_v22  ;;  %v2246_v12 = vadd.f32 %v2244_v30, %v2234_v44 }
 0x46c   :  { %v4820_v48 = vpop.permute.xlu1 %2362 }
 0x46d   :  { %v2257_v9 = vadd.f32 %v2255_v10, %v2245_v17  ;;  %v2258_v16 = vadd.f32 %v2256_v29, %v2246_v12 }
 0x471   :  { %v4824_v53 = vpop.permute.xlu1 %2388 }
 0x475   :  { %v2145_v46 = vpop.permute.xlu1 %2144 }
 0x476   :  { %v2146_v13 = vsel %vm154_vm3, %v2143_v3, %v2145_v46  ;;  %v2147_v21 = vsel %vm154_vm3, %v2145_v46, %v2143_v3 }
 0x477   :  { %v2148_v6 = vsel %vm83_vm6, %v2147_v21, 0.0  ;;  %v2149_v40 = vsel %vm84_vm9, %v2146_v13, 0.0 }
 0x478   :  { %v2263_v28 = vmul.f32 %v4788_v32, %v2148_v6  ;;  %v2264_v49 = vmul.f32 %v4788_v32, %v2149_v40  ;;  %v2273_v24 = vrot.slane %v2148_v6, 1  ;;  %v2274_v31 = vrot.slane %v2149_v40, 1 }
 0x479   :  { %v2285_v8 = vrot.slane %v2148_v6, 2  ;;  %v2286_v25 = vrot.slane %v2149_v40, 2  ;;  %v2297_v41 = vrot.slane %v2148_v6, 3  ;;  %v2298_v47 = vrot.slane %v2149_v40, 3  ;;  %v4838_v54 = vpop.permute.xlu1 %2400 }
 0x47a   :  { %v2265_v55 = vadd.f32 %v2263_v28, %v2257_v9  ;;  %v2266_v43 = vadd.f32 %v2264_v49, %v2258_v16  ;;  %v2277_v33 = vmul.f32 %v2273_v24, %v4812_v38  ;;  %v2278_v18 = vmul.f32 %v2274_v31, %v4812_v38 }
 0x47b   :  { %v2289_v60 = vmul.f32 %v2285_v8, %v4792_v62  ;;  %v2290_v11 = vmul.f32 %v2286_v25, %v4792_v62  ;;  %v2309_v19 = vrot.slane %v2148_v6, 4  ;;  %v2310_v5 = vrot.slane %v2149_v40, 4 }
 0x47c   :  { %v2279_v26 = vadd.f32 %v2277_v33, %v2265_v55  ;;  %v2280_v32 = vadd.f32 %v2278_v18, %v2266_v43  ;;  %v2321_v20 = vrot.slane %v2148_v6, 5  ;;  %v2322_v58 = vrot.slane %v2149_v40, 5 }
 0x47d   :  { %v2301_v4 = vmul.f32 %v2297_v41, %v4797_v50  ;;  %v2302_v2 = vmul.f32 %v2298_v47, %v4797_v50  ;;  %v2333_v1 = vrot.slane %v2148_v6, 6  ;;  %v2334_v38 = vrot.slane %v2149_v40, 6  ;;  %v2413_v47 = vpop.permute.xlu0 %2412 }
 0x47e   :  { %v2291_v59 = vadd.f32 %v2289_v60, %v2279_v26  ;;  %v2292_v7 = vadd.f32 %v2290_v11, %v2280_v32  ;;  %v4846_v56 = vpop.permute.xlu1 %2424  ;;  %v2313_v36 = vmul.f32 %v2309_v19, %v4814_v15  ;;  %v2314_v62 = vmul.f32 %v2310_v5, %v4814_v15 }
 0x47f   :  { %v2325_v51 = vmul.f32 %v2321_v20, %v4800_v39  ;;  %v2326_v30 = vmul.f32 %v2322_v58, %v4800_v39  ;;  %v2345_v17 = vrot.slane %v2148_v6, 7  ;;  %v2346_v12 = vrot.slane %v2149_v40, 7 }
 0x480   :  { %v2303_v22 = vadd.f32 %v2301_v4, %v2291_v59  ;;  %v2304_v44 = vadd.f32 %v2302_v2, %v2292_v7  ;;  %v2337_v29 = vmul.f32 %v2333_v1, %v4802_v34  ;;  %v2338_v46 = vmul.f32 %v2334_v38, %v4802_v34 }
 0x481   :  { %v2349_v15 = vmul.f32 %v2345_v17, %v4818_v52  ;;  %v2350_v9 = vmul.f32 %v2346_v12, %v4818_v52  ;;  %v2379_v16 = vrot.slane %v4725_v42, 2  ;;  %v2380_v39 = vrot.slane %v4731_v37, 2  ;;  %v2449_v58 = vpop.permute.xlu0 %2448 }
 0x482   :  { %v2315_v45 = vadd.f32 %v2313_v36, %v2303_v22  ;;  %v2316_v35 = vadd.f32 %v2314_v62, %v2304_v44  ;;  %v2368_v6 = vrot.slane %v4731_v37, 1  ;;  %v2367_v40 = vrot.slane %v4725_v42, 1 }
 0x483   :  { %v2437_v3 = vpop.permute.xlu1 %2436  ;;  %v2357_v28 = vmul.f32 %v4816_v63, %v4725_v42  ;;  %v2358_v34 = vmul.f32 %v4816_v63, %v4731_v37  ;;  %v2392_v55 = vrot.slane %v4731_v37, 3  ;;  %v2391_v43 = vrot.slane %v4725_v42, 3 }
 0x484   :  { %v2327_v50 = vadd.f32 %v2325_v51, %v2315_v45  ;;  %v2328_v10 = vadd.f32 %v2326_v30, %v2316_v35  ;;  %v2371_v52 = vmul.f32 %v2367_v40, %v4820_v48  ;;  %v2372_v8 = vmul.f32 %v2368_v6, %v4820_v48 }
 0x485   :  { %v2383_v33 = vmul.f32 %v2379_v16, %v4822_v27  ;;  %v2384_v18 = vmul.f32 %v2380_v39, %v4822_v27  ;;  %v2404_v11 = vrot.slane %v4731_v37, 4  ;;  %v2403_v26 = vrot.slane %v4725_v42, 4  ;;  %v2483_v51 = vpop.permute.xlu0 %2482 }
 0x486   :  { %v2339_v13 = vadd.f32 %v2337_v29, %v2327_v50  ;;  %v2340_v21 = vadd.f32 %v2338_v46, %v2328_v10  ;;  %v2395_v48 = vmul.f32 %v2391_v43, %v4824_v53  ;;  %v2396_v19 = vmul.f32 %v2392_v55, %v4824_v53 }
 0x487   :  { %v2407_v4 = vmul.f32 %v2403_v26, %v4838_v54  ;;  %v2408_v27 = vmul.f32 %v2404_v11, %v4838_v54  ;;  %v2415_v2 = vrot.slane %v4725_v42, 5  ;;  %v2416_v1 = vrot.slane %v4731_v37, 5 }
 0x488   :  { %v2351_v49 = vadd.f32 %v2349_v15, %v2339_v13  ;;  %v2352_v24 = vadd.f32 %v2350_v9, %v2340_v21  ;;  %v4864_v31 = vpop.permute.xlu1 %2456  ;;  %v2428_v53 = vrot.slane %v4731_v37, 6  ;;  %v2427_v35 = vrot.slane %v4725_v42, 6 }
 0x489   :  { %v2419_v22 = vmul.f32 %v2415_v2, %v2413_v47  ;;  %v2420_v44 = vmul.f32 %v2416_v1, %v2413_v47  ;;  %v2440_v29 = vrot.slane %v4731_v37, 7  ;;  %v2439_v46 = vrot.slane %v4725_v42, 7  ;;  %v2151_v13 = vpop.permute.xlu0 %2150 }
 0x48a   :  { %v2359_v25 = vadd.f32 %v2357_v28, %v2351_v49  ;;  %v2360_v41 = vadd.f32 %v2358_v34, %v2352_v24  ;;  %v2431_v17 = vmul.f32 %v2427_v35, %v4846_v56  ;;  %v2432_v54 = vmul.f32 %v2428_v53, %v4846_v56 }
 0x48b   :  { %v2443_v21 = vmul.f32 %v2439_v46, %v2437_v3  ;;  %v2444_v15 = vmul.f32 %v2440_v29, %v2437_v3 }
 0x48c   :  { %v2373_v63 = vadd.f32 %v2371_v52, %v2359_v25  ;;  %v2374_v60 = vadd.f32 %v2372_v8, %v2360_v41 }
 0x48d   :  { %v2471_v32 = vpop.permute.xlu1 %2470  ;;  %v2519_v23 = vpop.permute.xlu0 %2518 }
 0x48e   :  { %v2385_v5 = vadd.f32 %v2383_v33, %v2373_v63  ;;  %v2386_v20 = vadd.f32 %v2384_v18, %v2374_v60 }
 0x490   :  { %v2397_v59 = vadd.f32 %v2395_v48, %v2385_v5  ;;  %v2398_v7 = vadd.f32 %v2396_v19, %v2386_v20 }
 0x492   :  { %v2409_v38 = vadd.f32 %v2407_v4, %v2397_v59  ;;  %v2410_v36 = vadd.f32 %v2408_v27, %v2398_v7  ;;  %v2495_v62 = vpop.permute.xlu1 %2494 }
 0x494   :  { %v2421_v30 = vadd.f32 %v2419_v22, %v2409_v38  ;;  %v2422_v45 = vadd.f32 %v2420_v44, %v2410_v36  ;;  %v2551_v38 = vpop.permute.xlu0 %2550 }
 0x496   :  { %v2433_v50 = vadd.f32 %v2431_v17, %v2421_v30  ;;  %v2434_v10 = vadd.f32 %v2432_v54, %v2422_v45 }
 0x497   :  { %v2507_v12 = vpop.permute.xlu1 %2506 }
 0x498   :  { %v2445_v6 = vadd.f32 %v2443_v21, %v2433_v50  ;;  %v2446_v40 = vadd.f32 %v2444_v15, %v2434_v10  ;;  %v2159_v29 = vpop.permute.xlu0 %2158 }
 0x49b   :  { %v2153_v9 = vpop.permute.xlu1 %2152 }
 0x49c   :  { %v2154_v16 = vsel %vm163_vm5, %v2151_v13, %v2153_v9  ;;  %v2155_v39 = vsel %vm163_vm5, %v2153_v9, %v2151_v13 }
 0x49d   :  { %v2156_v56 = vsel %vm93_vm10, %v2154_v16, 0.0  ;;  %v2157_v37 = vsel %vm94_vm12, %v2155_v39, 0.0 }
 0x49e   :  { %v2451_v28 = vmul.f32 %v2449_v58, %v2156_v56  ;;  %v2452_v42 = vmul.f32 %v2449_v58, %v2157_v37  ;;  %v2461_v34 = vrot.slane %v2156_v56, 1  ;;  %v2462_v49 = vrot.slane %v2157_v37, 1 }
 0x49f   :  { %v2531_v3 = vpop.permute.xlu1 %2530  ;;  %v2473_v24 = vrot.slane %v2156_v56, 2  ;;  %v2474_v52 = vrot.slane %v2157_v37, 2  ;;  %v2485_v8 = vrot.slane %v2156_v56, 3  ;;  %v2486_v25 = vrot.slane %v2157_v37, 3 }
 0x4a0   :  { %v2453_v41 = vadd.f32 %v2451_v28, %v2445_v6  ;;  %v2454_v47 = vadd.f32 %v2452_v42, %v2446_v40  ;;  %v2465_v55 = vmul.f32 %v2461_v34, %v4864_v31  ;;  %v2466_v43 = vmul.f32 %v2462_v49, %v4864_v31 }
 0x4a1   :  { %v2477_v33 = vmul.f32 %v2473_v24, %v2471_v32  ;;  %v2478_v18 = vmul.f32 %v2474_v52, %v2471_v32  ;;  %v2497_v60 = vrot.slane %v2156_v56, 4  ;;  %v2498_v11 = vrot.slane %v2157_v37, 4 }
 0x4a2   :  { %v2467_v14 = vadd.f32 %v2465_v55, %v2453_v41  ;;  %v2468_v63 = vadd.f32 %v2466_v43, %v2454_v47  ;;  %v2489_v26 = vmul.f32 %v2485_v8, %v2483_v51  ;;  %v2490_v48 = vmul.f32 %v2486_v25, %v2483_v51  ;;  %v2589_v43 = vpop.permute.xlu0 %2588 }
 0x4a3   :  { %v2509_v20 = vrot.slane %v2156_v56, 5  ;;  %v2510_v58 = vrot.slane %v2157_v37, 5  ;;  %v2521_v7 = vrot.slane %v2156_v56, 6  ;;  %v2522_v4 = vrot.slane %v2157_v37, 6 }
 0x4a4   :  { %v2479_v19 = vadd.f32 %v2477_v33, %v2467_v14  ;;  %v2480_v5 = vadd.f32 %v2478_v18, %v2468_v63  ;;  %v2543_v59 = vpop.permute.xlu1 %2542  ;;  %v2501_v1 = vmul.f32 %v2497_v60, %v2495_v62  ;;  %v2502_v31 = vmul.f32 %v2498_v11, %v2495_v62 }
 0x4a5   :  { %v2513_v22 = vmul.f32 %v2509_v20, %v2507_v12  ;;  %v2514_v44 = vmul.f32 %v2510_v58, %v2507_v12  ;;  %v2525_v53 = vmul.f32 %v2521_v7, %v2519_v23  ;;  %v2526_v30 = vmul.f32 %v2522_v4, %v2519_v23 }
 0x4a6   :  { %v2491_v27 = vadd.f32 %v2489_v26, %v2479_v19  ;;  %v2492_v2 = vadd.f32 %v2490_v48, %v2480_v5  ;;  %v2533_v17 = vrot.slane %v2156_v56, 7  ;;  %v2534_v54 = vrot.slane %v2157_v37, 7 }
 0x4a7   :  { %v3038_v26 = vmov 1966171168  }
 0x4a8   :  { %v2503_v36 = vadd.f32 %v2501_v1, %v2491_v27  ;;  %v2504_v32 = vadd.f32 %v2502_v31, %v2492_v2  ;;  %v2537_v13 = vmul.f32 %v2533_v17, %v2531_v3  ;;  %v2538_v21 = vmul.f32 %v2534_v54, %v2531_v3 }
 0x4a9   :  { %v2565_v45 = vpop.permute.xlu1 %2564  ;;  %v2645_v48 = vunpack.c.l.s4 %v3038_v26 }
 0x4aa   :  { %v2515_v51 = vadd.f32 %v2513_v22, %v2503_v36  ;;  %v2516_v35 = vadd.f32 %v2514_v44, %v2504_v32  ;;  %v2625_v32 = vpop.permute.xlu0 %2624 }
 0x4ac   :  { %v2527_v50 = vadd.f32 %v2525_v53, %v2515_v51  ;;  %v2528_v10 = vadd.f32 %v2526_v30, %v2516_v35 }
 0x4ad   :  { %v2161_v46 = vpop.permute.xlu1 %2160 }
 0x4ae   :  { %v2162_v62 = vsel %vm172_vm11, %v2159_v29, %v2161_v46  ;;  %v2163_v15 = vsel %vm172_vm11, %v2161_v46, %v2159_v29  ;;  %v2539_v16 = vadd.f32 %v2537_v13, %v2527_v50  ;;  %v2540_v39 = vadd.f32 %v2538_v21, %v2528_v10  ;;  %v5296_v46 = vld [vmem:[#allocation11_spill] sm:$0xff] }
 0x4af   :  { %v2164_v12 = vsel %vm101_vm13, %v2162_v62, 0.0  ;;  %v2165_v9 = vsel %vm102_vm14, %v2163_v15, 0.0 }
 0x4b0   :  { %v2545_v6 = vmul.f32 %v2543_v59, %v2164_v12  ;;  %v2546_v40 = vmul.f32 %v2543_v59, %v2165_v9  ;;  %v2555_v37 = vrot.slane %v2164_v12, 1  ;;  %v2556_v28 = vrot.slane %v2165_v9, 1 }
 0x4b1   :  { %v2577_v56 = vpop.permute.xlu1 %2576  ;;  %v2567_v42 = vrot.slane %v2164_v12, 2  ;;  %v2568_v34 = vrot.slane %v2165_v9, 2  ;;  %v2591_v52 = vrot.slane %v2164_v12, 4  ;;  %v2592_v8 = vrot.slane %v2165_v9, 4 }
 0x4b2   :  { %v2547_v49 = vadd.f32 %v2545_v6, %v2539_v16  ;;  %v2548_v3 = vadd.f32 %v2546_v40, %v2540_v39  ;;  %v2559_v24 = vmul.f32 %v2555_v37, %v2551_v38  ;;  %v2560_v57 = vmul.f32 %v2556_v28, %v2551_v38 }
 0x4b3   :  { %v2579_v61 = vrot.slane %v2164_v12, 3  ;;  %v2580_v25 = vrot.slane %v2165_v9, 3  ;;  %v2571_v47 = vmul.f32 %v2567_v42, %v2565_v45  ;;  %v2572_v55 = vmul.f32 %v2568_v34, %v2565_v45 }
 0x4b4   :  { %v2561_v41 = vadd.f32 %v2559_v24, %v2547_v49  ;;  %v2562_v0 = vadd.f32 %v2560_v57, %v2548_v3  ;;  %v2595_v60 = vmul.f32 %v2591_v52, %v2589_v43  ;;  %v2596_v11 = vmul.f32 %v2592_v8, %v2589_v43 }
 0x4b5   :  { %v2583_v14 = vmul.f32 %v2579_v61, %v2577_v56  ;;  %v2584_v63 = vmul.f32 %v2580_v25, %v2577_v56  ;;  %v2603_v20 = vrot.slane %v2164_v12, 5  ;;  %v2604_v58 = vrot.slane %v2165_v9, 5 }
 0x4b6   :  { %v2601_v23 = vpop.permute.xlu1 %2600  ;;  %v2573_v33 = vadd.f32 %v2571_v47, %v2561_v41  ;;  %v2574_v18 = vadd.f32 %v2572_v55, %v2562_v0  ;;  %v2627_v59 = vrot.slane %v2164_v12, 7  ;;  %v2628_v7 = vrot.slane %v2165_v9, 7 }
 0x4b7   :  { %v2615_v4 = vrot.slane %v2164_v12, 6  ;;  %v2616_v27 = vrot.slane %v2165_v9, 6  ;;  %v2607_v31 = vmul.f32 %v2603_v20, %v2601_v23  ;;  %v2608_v38 = vmul.f32 %v2604_v58, %v2601_v23 }
 0x4b8   :  { %v2585_v19 = vadd.f32 %v2583_v14, %v2573_v33  ;;  %v2586_v5 = vadd.f32 %v2584_v63, %v2574_v18  ;;  %v2646_v45 = vunpack.c.0.s8 %v2645_v48  ;;  %v2631_v51 = vmul.f32 %v2627_v59, %v2625_v32 }
 0x4b9   :  { %v2632_v35 = vmul.f32 %v2628_v7, %v2625_v32  ;;  %v5297_v9 = vlaneseq }
 0x4ba   :  { %v2597_v2 = vadd.f32 %v2595_v60, %v2585_v19  ;;  %v2598_v1 = vadd.f32 %v2596_v11, %v2586_v5  ;;  %v2649_v13 = vsub.s32 %v2646_v45, %v5296_v46 }
 0x4bb   :  { %v2613_v36 = vpop.permute.xlu1 %2612  ;;  %vm2661_vm1 = vcmp.lt.s32.totalorder %v5297_v9, 256 }
 0x4bc   :  { %v2619_v22 = vmul.f32 %v2615_v4, %v2613_v36  ;;  %v2620_v44 = vmul.f32 %v2616_v27, %v2613_v36  ;;  %v2609_v53 = vadd.f32 %v2607_v31, %v2597_v2  ;;  %v2610_v30 = vadd.f32 %v2608_v38, %v2598_v1 }
 0x4be   :  { %v2621_v17 = vadd.f32 %v2619_v22, %v2609_v53  ;;  %v2622_v54 = vadd.f32 %v2620_v44, %v2610_v30 }
 0x4c0   :  { %v2637_v50 = vpop.permute.xlu1 %2636  ;;  %v2633_v10 = vadd.f32 %v2631_v51, %v2621_v17  ;;  %v2634_v29 = vadd.f32 %v2632_v35, %v2622_v54 }
 0x4c2   :  { %v2639_v21 = vadd.f32 %v2637_v50, %v2633_v10  ;;  %v2640_v62 = vadd.f32 %v2637_v50, %v2634_v29 }
 0x4c4   :  { %v2643_v15 = vcombine.low %v2639_v21, %v2640_v62 }
 0x4c6   :  { %v2650_v12 = vrot.slane %v2643_v15, %v2649_v13 }
 0x4c8   :  { %v2657_v16 = vrot.slane %v2650_v12, %v2649_v13 }
 0x4ca   :  { %2663 = vst.msk [vmem:[#allocation7] sm:$0x3] %vm2661_vm1, %v2657_v16 }
 0x4cb   :  { %2963 = shalt.err (!%p2960_p0)
}
 0x4cc   :  { %2673 = dma.vmem_to_hbm [thread:$0]  %s2671_s28, 32, %s4911_s2, [#allocation4]  }
 0x4cd   :  { %2976 = dma.done.wait [#allocation4], 32  }
 0x4ce   :  { %2977 = vsyncadd [#allocation4], 4294967264 }
 0x4cf   :  { %2677 = vsyncpa [#allocation3], 1 }
 0x4d0   :  { %2678 = vsyncpa [#allocation6], 1 }
 0x4d1   :  { %2679 = vsyncpa [#allocation4], 1 }

</bundles_post_ra>
